<compile_context>
chip_gen: v7x
topology: tpu7x:2x2x1
jax: 0.10.0
libtpu: 0.0.40
codegen_flags: <defaults>
</compile_context>

<pallas_src>
import functools

import jax
import jax.numpy as jnp
from jax.experimental import pallas as pl
from jax.experimental.pallas import tpu as pltpu

LANE = 128            # lane width / padded output-channel count
CIN0_PAD = 8          # pad nc=3 -> 8 so conv0's contraction K = 4*4*8 = 128
BN_EPS = 1e-5
NEG = -1e30           # finite "-inf" for padded log-softmax columns

ROW_PAD = 16          # pad rows (M / batch) to a multiple of this (bf16 pack)
TM = 256              # row tile for the gridded conv path
SINGLE_SHOT_MAX_BYTES = 12 * 2**20   # single-shot fused conv below this
VMEM_LIMIT = 32 * 2**20              # raised scoped-VMEM limit (safe on all gens)

_VMEM = pl.BlockSpec(memory_space=pltpu.MemorySpace.VMEM)


# ----------------------------- Pallas kernels ------------------------------

def _bn_lrelu(acc, gamma, beta, inv_m):
    """Training-mode BatchNorm over rows + LeakyReLU(0.2), single-pass stats.

    `acc` is the f32 GEMM result.  Zero (padded) rows contribute nothing to
    the sums and `inv_m` = 1/real_rows, so statistics are exact.  Padded
    columns stay exactly zero because gamma/beta padding is zero.
    Note: E[x^2]-mu^2 is slightly less stable than the centered form; fine
    here since activations are O(1) after the previous BN.
    """
    s = jnp.sum(acc, axis=0, keepdims=True)
    ss = jnp.sum(acc * acc, axis=0, keepdims=True)
    mu = s * inv_m
    var = jnp.maximum(ss * inv_m - mu * mu, 0.0)
    scale = gamma * jax.lax.rsqrt(var + BN_EPS)
    shift = beta - mu * scale
    y = acc * scale + shift
    return jnp.where(y > 0, y, 0.2 * y)


def conv_bn_lrelu_kernel(x_ref, w_ref, g_ref, b_ref, o_ref, *, inv_m):
    """Single-shot fused conv-GEMM + BN + LeakyReLU (small M, one launch)."""
    acc = jnp.dot(x_ref[...], w_ref[...], preferred_element_type=jnp.float32)
    o_ref[...] = _bn_lrelu(acc, g_ref[...], b_ref[...], inv_m).astype(o_ref.dtype)


def conv_gemm_stats_kernel(x_ref, w_ref, y_ref, ps_ref):
    """Gridded pass 1: conv GEMM row-tile + per-tile partial col sum / sum-sq."""
    acc = jnp.dot(x_ref[...], w_ref[...], preferred_element_type=jnp.float32)
    s = jnp.sum(acc, axis=0, keepdims=True)
    ss = jnp.sum(acc * acc, axis=0, keepdims=True)
    ps_ref[...] = jnp.concatenate([s, ss], axis=0).reshape(1, 2, LANE)
    y_ref[...] = acc.astype(y_ref.dtype)


def bn_lrelu_kernel(y_ref, st_ref, g_ref, b_ref, o_ref, *, inv_m):
    """Gridded pass 2: normalize + LeakyReLU on a lane-dense row tile."""
    x = y_ref[...].astype(jnp.float32)
    mu = st_ref[0:1, :] * inv_m
    var = jnp.maximum(st_ref[1:2, :] * inv_m - mu * mu, 0.0)
    scale = g_ref[...] * jax.lax.rsqrt(var + BN_EPS)
    shift = b_ref[...] - mu * scale
    y = x * scale + shift
    o_ref[...] = jnp.where(y > 0, y, 0.2 * y).astype(o_ref.dtype)


def head_kernel(x_ref, wc_ref, g_ref, b_ref,
                w0_ref, b0_ref, w1_ref, b1_ref, w2_ref, b2_ref,
                w3_ref, b3_ref, wp_ref, bp_ref, o_ref, *, inv_m, out_dims):
    """Fused: conv3 (4x4/s1 as GEMM) + BN + LReLU -> embedder (4 Linear) ->
    predictor (LReLU + Linear + LogSoftmax).  Intermediates never leave VMEM."""

    def gemm(h, w):
        return jnp.dot(h.astype(jnp.bfloat16), w[...],
                       preferred_element_type=jnp.float32)

    def lrelu(y):
        return jnp.where(y > 0, y, 0.2 * y)

    h = _bn_lrelu(gemm(x_ref[...], wc_ref), g_ref[...], b_ref[...], inv_m)
    h = lrelu(gemm(h, w0_ref) + b0_ref[...])
    h = lrelu(gemm(h, w1_ref) + b1_ref[...])
    h = lrelu(gemm(h, w2_ref) + b2_ref[...])
    emb = gemm(h, w3_ref) + b3_ref[...]               # embedder output (no act)
    logits = gemm(lrelu(emb), wp_ref) + bp_ref[...]   # predictor Linear

    # LogSoftmax(dim=1) over the REAL output columns only (rest is lane pad).
    col = jax.lax.broadcasted_iota(jnp.int32, logits.shape, 1)
    valid = col < out_dims
    masked = jnp.where(valid, logits, NEG)
    mx = jnp.max(masked, axis=1, keepdims=True)
    ex = jnp.where(valid, jnp.exp(masked - mx), 0.0)
    lse = mx + jnp.log(jnp.sum(ex, axis=1, keepdims=True))
    o_ref[...] = (logits - lse).astype(o_ref.dtype)


# ---------------------------- pallas_call wrappers --------------------------

def _round_up(x, m):
    return -(-x // m) * m


def _pad_rows(x, rows):
    return jnp.pad(x, ((0, rows - x.shape[0]), (0, 0))) if rows > x.shape[0] else x


def _conv_single_shot(patches, w_mat, gamma, beta, real_m):
    """One fused GEMM+BN+LReLU launch (small M, latency-optimal)."""
    m_pad = _round_up(max(patches.shape[0], ROW_PAD), ROW_PAD)
    x = _pad_rows(patches, m_pad)
    k = x.shape[1]
    cost = pl.CostEstimate(flops=2 * m_pad * k * LANE, transcendentals=0,
                           bytes_accessed=2 * m_pad * (k + LANE) + 2 * k * LANE)
    y = pl.pallas_call(
        functools.partial(conv_bn_lrelu_kernel, inv_m=1.0 / real_m),
        out_shape=jax.ShapeDtypeStruct((m_pad, LANE), jnp.bfloat16),
        in_specs=[_VMEM] * 4,
        out_specs=_VMEM,
        compiler_params=pltpu.CompilerParams(vmem_limit_bytes=VMEM_LIMIT),
        cost_estimate=cost,
    )(x, w_mat, gamma, beta)
    return y[:real_m]


def _conv_gridded(patches, w_mat, gamma, beta, real_m):
    """Gridded two-pass conv path for large M: pipelined + megacore-parallel."""
    m_pad = _round_up(max(patches.shape[0], TM), TM)
    x = _pad_rows(patches, m_pad)
    k = x.shape[1]
    mt = m_pad // TM
    cost = pl.CostEstimate(flops=2 * m_pad * k * LANE, transcendentals=0,
                           bytes_accessed=2 * m_pad * (k + LANE))
    y_raw, part = pl.pallas_call(
        conv_gemm_stats_kernel,
        grid=(mt,),
        in_specs=[pl.BlockSpec((TM, k), lambda i: (i, 0)),
                  pl.BlockSpec((k, LANE), lambda i: (0, 0))],
        out_specs=(pl.BlockSpec((TM, LANE), lambda i: (i, 0)),
                   pl.BlockSpec((1, 2, LANE), lambda i: (i, 0, 0))),
        out_shape=(jax.ShapeDtypeStruct((m_pad, LANE), jnp.bfloat16),
                   jax.ShapeDtypeStruct((mt, 2, LANE), jnp.float32)),
        compiler_params=pltpu.CompilerParams(
            dimension_semantics=("parallel",), vmem_limit_bytes=VMEM_LIMIT),
        cost_estimate=cost,
    )(x, w_mat)
    stats = jnp.sum(part, axis=0)          # (2, LANE): tiny XLA reduction
    y = pl.pallas_call(
        functools.partial(bn_lrelu_kernel, inv_m=1.0 / real_m),
        grid=(mt,),
        in_specs=[pl.BlockSpec((TM, LANE), lambda i: (i, 0)),
                  pl.BlockSpec((2, LANE), lambda i: (0, 0)),
                  pl.BlockSpec((1, LANE), lambda i: (0, 0)),
                  pl.BlockSpec((1, LANE), lambda i: (0, 0))],
        out_specs=pl.BlockSpec((TM, LANE), lambda i: (i, 0)),
        out_shape=jax.ShapeDtypeStruct((m_pad, LANE), jnp.bfloat16),
        compiler_params=pltpu.CompilerParams(
            dimension_semantics=("parallel",), vmem_limit_bytes=VMEM_LIMIT),
    )(y_raw, stats, gamma, beta)
    return y[:real_m]


def conv_bn_lrelu(patches, w_mat, gamma, beta):
    """Static dispatch: single-shot when the working set fits VMEM comfortably."""
    real_m, k = patches.shape
    footprint = 2 * real_m * (k + LANE)      # bf16 patches + bf16 output
    if footprint <= SINGLE_SHOT_MAX_BYTES:
        return _conv_single_shot(patches, w_mat, gamma, beta, real_m)
    return _conv_gridded(patches, w_mat, gamma, beta, real_m)


def head(x_flat, prep, real_b, out_dims):
    b_pad = _round_up(max(real_b, ROW_PAD), ROW_PAD)
    x = _pad_rows(x_flat, b_pad)
    args = (x, prep["conv3_w"], prep["bn3_gamma"], prep["bn3_beta"],
            prep["fc0_w"], prep["fc0_b"], prep["fc1_w"], prep["fc1_b"],
            prep["fc2_w"], prep["fc2_b"], prep["fc3_w"], prep["fc3_b"],
            prep["fcp_w"], prep["fcp_b"])
    out = pl.pallas_call(
        functools.partial(head_kernel, inv_m=1.0 / real_b, out_dims=out_dims),
        out_shape=jax.ShapeDtypeStruct((b_pad, LANE), jnp.float32),
        in_specs=[_VMEM] * len(args),
        out_specs=_VMEM,
        compiler_params=pltpu.CompilerParams(vmem_limit_bytes=VMEM_LIMIT),
    )(*args)
    return out[:real_b, :out_dims]


# ------------------------------ plain-JAX glue ------------------------------

def im2col(x_nhwc, k, stride, pad):
    """k x k patches -> ((B*Ho*Wo, k*k*C), Ho, Wo).  Pure layout glue (XLA).

    TODO(synk): for very large batches this materializes a ~4x-expanded patch
    tensor in HBM; forming patches in-kernel (pl.ANY + manual DMA, review
    item 5) would cut per-stage HBM traffic further.
    """
    B, H, W, C = x_nhwc.shape
    xp = jnp.pad(x_nhwc, ((0, 0), (pad, pad), (pad, pad), (0, 0)))
    Ho = (H + 2 * pad - k) // stride + 1
    Wo = (W + 2 * pad - k) // stride + 1
    cols = []
    for i in range(k):
        for j in range(k):
            cols.append(xp[:, i:i + (Ho - 1) * stride + 1:stride,
                              j:j + (Wo - 1) * stride + 1:stride, :])
    patches = jnp.stack(cols, axis=3)                  # (B, Ho, Wo, k*k, C)
    return patches.reshape(B * Ho * Wo, k * k * C), Ho, Wo


def _conv_w_to_mat(w, cin_pad, cout_pad):
    """PyTorch conv weight (Cout, Cin, kH, kW) -> bf16 (kH*kW*cin_pad, cout_pad)."""
    Cout, Cin, kH, kW = w.shape
    wt = jnp.transpose(w, (2, 3, 1, 0))                # (kH, kW, Cin, Cout)
    wt = jnp.pad(wt, ((0, 0), (0, 0), (0, cin_pad - Cin), (0, cout_pad - Cout)))
    return wt.reshape(kH * kW * cin_pad, cout_pad).astype(jnp.bfloat16)


def _fc_w_to_mat(w, in_pad, out_pad):
    """PyTorch Linear weight (out, in) -> bf16 (in_pad, out_pad)."""
    out_d, in_d = w.shape
    return jnp.pad(w.T, ((0, in_pad - in_d), (0, out_pad - out_d))).astype(jnp.bfloat16)


def _pad_vec(v, n):
    return jnp.pad(v, (0, n - v.shape[0])).reshape(1, n).astype(jnp.float32)


def prepare_params(params, nc, ndf, embedding_dims, output_dims):
    """One-time layout transform: transpose / lane-pad / bf16-cast all weights."""
    del nc, embedding_dims, output_dims
    cins = [CIN0_PAD, ndf, ndf * 2, ndf * 4]           # conv0's Cin is padded
    prep = {}
    for li in range(4):
        prep[f"conv{li}_w"] = _conv_w_to_mat(params[f"conv{li}_w"], cins[li], LANE)
        prep[f"bn{li}_gamma"] = _pad_vec(params[f"bn{li}_gamma"], LANE)
        prep[f"bn{li}_beta"] = _pad_vec(params[f"bn{li}_beta"], LANE)
    for li in range(4):
        prep[f"fc{li}_w"] = _fc_w_to_mat(params[f"fc{li}_w"], LANE, LANE)
        prep[f"fc{li}_b"] = _pad_vec(params[f"fc{li}_b"], LANE)
    prep["fcp_w"] = _fc_w_to_mat(params["fcp_w"], LANE, LANE)
    prep["fcp_b"] = _pad_vec(params["fcp_b"], LANE)
    return prep


def _forward(images_nchw, prep, ndf, out_dims):
    x = jnp.transpose(images_nchw, (0, 2, 3, 1)).astype(jnp.bfloat16)   # NHWC bf16
    B, _, _, nc = x.shape
    x = jnp.pad(x, ((0, 0), (0, 0), (0, 0), (0, CIN0_PAD - nc)))
    for li, cout in enumerate((ndf, ndf * 2, ndf * 4)):
        patches, Ho, Wo = im2col(x, 4, 2, 1)
        y = conv_bn_lrelu(patches, prep[f"conv{li}_w"],
                          prep[f"bn{li}_gamma"], prep[f"bn{li}_beta"])
        x = y[:, :cout].reshape(B, Ho, Wo, cout)       # drop lane padding (bf16)
    # Last 4x4/s1/p0 conv on the 4x4 map is a GEMM -> fused into the head
    # kernel together with BN + LReLU + embedder + predictor.
    h = x.reshape(B, -1)                               # (B, 4*4*ndf*4) bf16
    return head(h, prep, B, out_dims)                  # (B, out_dims) log-probs


netc32_forward = jax.jit(_forward, static_argnums=(2, 3))


# ------------------------------ init & reference ----------------------------

def init_params(key, nc, ndf, embedding_dims, output_dims):
    """Deterministic params in native PyTorch layouts."""
    params = {}
    keys = jax.random.split(key, 16)
    ki = 0
    conv_chans = [nc, ndf, ndf * 2, ndf * 4, ndf * 4]
    for li in range(4):
        cin, cout = conv_chans[li], conv_chans[li + 1]
        params[f"conv{li}_w"] = 0.05 * jax.random.normal(
            keys[ki], (cout, cin, 4, 4), jnp.float32); ki += 1
        params[f"bn{li}_gamma"] = 1.0 + 0.1 * jnp.arange(cout, dtype=jnp.float32) / cout
        params[f"bn{li}_beta"] = 0.01 * jnp.arange(cout, dtype=jnp.float32)
    fc_dims = [ndf * 4, ndf * 4, ndf * 4, ndf * 4, embedding_dims]
    for li in range(4):
        din, dout = fc_dims[li], fc_dims[li + 1]
        params[f"fc{li}_w"] = 0.1 * jax.random.normal(
            keys[ki], (dout, din), jnp.float32); ki += 1
        params[f"fc{li}_b"] = 0.01 * jnp.arange(dout, dtype=jnp.float32)
    params["fcp_w"] = 0.1 * jax.random.normal(
        keys[ki], (output_dims, embedding_dims), jnp.float32); ki += 1
    params["fcp_b"] = 0.01 * jnp.arange(output_dims, dtype=jnp.float32)
    return params


def reference_forward(images, params):
    """Pure-JAX f32 reference (training-mode BN) for correctness checking."""
    def conv(x, w, stride, pad):
        return jax.lax.conv_general_dilated(
            x, w, (stride, stride), ((pad, pad), (pad, pad)),
            dimension_numbers=("NCHW", "OIHW", "NCHW"))

    def bn(x, g, b):
        mu = jnp.mean(x, axis=(0, 2, 3), keepdims=True)
        var = jnp.mean((x - mu) ** 2, axis=(0, 2, 3), keepdims=True)
        return ((x - mu) * jax.lax.rsqrt(var + BN_EPS) * g.reshape(1, -1, 1, 1)
                + b.reshape(1, -1, 1, 1))

    def lrelu(x):
        return jnp.where(x > 0, x, 0.2 * x)

    x = images
    for li, (stride, pad) in enumerate(((2, 1), (2, 1), (2, 1), (1, 0))):
        x = lrelu(bn(conv(x, params[f"conv{li}_w"], stride, pad),
                     params[f"bn{li}_gamma"], params[f"bn{li}_beta"]))
    h = x.reshape(x.shape[0], -1)
    for li in range(4):
        h = h @ params[f"fc{li}_w"].T + params[f"fc{li}_b"]
        if li < 3:
            h = lrelu(h)
    logits = lrelu(h) @ params["fcp_w"].T + params["fcp_b"]
    return jax.nn.log_softmax(logits, axis=1)


if __name__ == "__main__":
    # NetC32 expects 32x32 inputs (3 stride-2 convs: 32->16->8->4, then 4x4/s1 -> 1x1).
    B, nc, ndf = 2, 3, 8
    embedding_dims, output_dims = 16, 10
    key = jax.random.PRNGKey(0)
    k_img, k_par = jax.random.split(key)
    images = jax.random.normal(k_img, (B, nc, 32, 32), jnp.float32)   # NCHW
    params = init_params(k_par, nc, ndf, embedding_dims, output_dims)
    prep = prepare_params(params, nc, ndf, embedding_dims, output_dims)

    logp = netc32_forward(images, prep, ndf, output_dims)
    logp = jax.block_until_ready(logp)
    assert logp.shape == (B, output_dims), logp.shape

    # LogSoftmax rows must exponentiate to ~1.
    row_sums = jnp.sum(jnp.exp(logp), axis=1)
    assert bool(jnp.all(jnp.abs(row_sums - 1.0) < 1e-3)), row_sums

    # Cross-check against a pure-JAX f32 reference (bf16 GEMMs -> loose tol;
    # a genuine layout / BN bug would overshoot this by orders of magnitude).
    ref = reference_forward(images, params)
    err = float(jnp.max(jnp.abs(logp - ref)))
    assert err < 1e-1, f"max |pallas - reference| = {err}"

    # Exercise the gridded (large-batch) conv path and check it against the
    # single-shot path at this small size (conv0: M = 512 -> 2 row tiles).
    x0 = jnp.pad(jnp.transpose(images, (0, 2, 3, 1)).astype(jnp.bfloat16),
                 ((0, 0), (0, 0), (0, 0), (0, CIN0_PAD - nc)))
    p0, _, _ = im2col(x0, 4, 2, 1)
    y_single = _conv_single_shot(p0, prep["conv0_w"], prep["bn0_gamma"],
                                 prep["bn0_beta"], p0.shape[0])
    y_grid = _conv_gridded(p0, prep["conv0_w"], prep["bn0_gamma"],
                           prep["bn0_beta"], p0.shape[0])
    y_grid = jax.block_until_ready(y_grid)
    gerr = float(jnp.max(jnp.abs(y_single.astype(jnp.float32)
                                 - y_grid.astype(jnp.float32))))
    assert gerr < 1e-1, f"gridded vs single-shot mismatch = {gerr}"

    print("KERNEL_OK")
</pallas_src>

<mosaic_0001>
module attributes {stable_mosaic.version = 11 : i64} {
  func.func @conv_bn_lrelu_kernel(%arg0: memref<512x128xbf16, #tpu.memory_space<vmem>>, %arg1: memref<128x128xbf16, #tpu.memory_space<vmem>>, %arg2: memref<1x128xf32, #tpu.memory_space<vmem>>, %arg3: memref<1x128xf32, #tpu.memory_space<vmem>>, %arg4: memref<512x128xbf16, #tpu.memory_space<vmem>>) attributes {dimension_semantics = [], scalar_prefetch = 0 : i64, scratch_operands = 0 : i64, tpu.core_type = #tpu.core_type<tc>} {
    %c0 = arith.constant 0 : index
    %c0_0 = arith.constant 0 : index
    %0 = vector.load %arg0[%c0, %c0_0] : memref<512x128xbf16, #tpu.memory_space<vmem>>, vector<512x128xbf16>
    %c0_1 = arith.constant 0 : index
    %c0_2 = arith.constant 0 : index
    %1 = vector.load %arg1[%c0_1, %c0_2] : memref<128x128xbf16, #tpu.memory_space<vmem>>, vector<128x128xbf16>
    %cst = arith.constant dense<0.000000e+00> : vector<512x128xf32>
    %2 = tpu.matmul %0, %1, %cst {dimension_numbers = #tpu.dot_dimension_numbers<[1], [0], [0], [1], [0, 0, 1, 1], [], []>} : vector<512x128xbf16>, vector<128x128xbf16>, vector<512x128xf32> -> vector<512x128xf32>
    %c0_3 = arith.constant 0 : index
    %c0_4 = arith.constant 0 : index
    %3 = vector.load %arg2[%c0_3, %c0_4] : memref<1x128xf32, #tpu.memory_space<vmem>>, vector<1x128xf32>
    %c0_5 = arith.constant 0 : index
    %c0_6 = arith.constant 0 : index
    %4 = vector.load %arg3[%c0_5, %c0_6] : memref<1x128xf32, #tpu.memory_space<vmem>>, vector<1x128xf32>
    %cst_7 = arith.constant dense<0.000000e+00> : vector<128xf32>
    %5 = vector.multi_reduction <add>, %2, %cst_7 [0] : vector<512x128xf32> to vector<128xf32>
    %6 = vector.shape_cast %5 : vector<128xf32> to vector<1x128xf32>
    %7 = arith.mulf %2, %2 : vector<512x128xf32>
    %cst_8 = arith.constant dense<0.000000e+00> : vector<128xf32>
    %8 = vector.multi_reduction <add>, %7, %cst_8 [0] : vector<512x128xf32> to vector<128xf32>
    %9 = vector.shape_cast %8 : vector<128xf32> to vector<1x128xf32>
    %cst_9 = arith.constant 0.001953125 : f32
    %10 = vector.broadcast %cst_9 : f32 to vector<1x128xf32>
    %11 = arith.mulf %6, %10 : vector<1x128xf32>
    %cst_10 = arith.constant 0.001953125 : f32
    %12 = vector.broadcast %cst_10 : f32 to vector<1x128xf32>
    %13 = arith.mulf %9, %12 : vector<1x128xf32>
    %14 = arith.mulf %11, %11 : vector<1x128xf32>
    %15 = arith.subf %13, %14 : vector<1x128xf32>
    %cst_11 = arith.constant 0.000000e+00 : f32
    %16 = vector.broadcast %cst_11 : f32 to vector<1x128xf32>
    %17 = arith.maximumf %15, %16 : vector<1x128xf32>
    %cst_12 = arith.constant 9.99999974E-6 : f32
    %18 = vector.broadcast %cst_12 : f32 to vector<1x128xf32>
    %19 = arith.addf %17, %18 : vector<1x128xf32>
    %20 = math.rsqrt %19 : vector<1x128xf32>
    %21 = arith.mulf %3, %20 : vector<1x128xf32>
    %22 = arith.mulf %11, %21 : vector<1x128xf32>
    %23 = arith.subf %4, %22 : vector<1x128xf32>
    %24 = vector.broadcast %21 : vector<1x128xf32> to vector<512x128xf32>
    %25 = arith.mulf %2, %24 : vector<512x128xf32>
    %26 = vector.broadcast %23 : vector<1x128xf32> to vector<512x128xf32>
    %27 = arith.addf %25, %26 : vector<512x128xf32>
    %cst_13 = arith.constant 0.000000e+00 : f32
    %28 = vector.broadcast %cst_13 : f32 to vector<512x128xf32>
    %29 = arith.cmpf ogt, %27, %28 : vector<512x128xf32>
    %cst_14 = arith.constant 2.000000e-01 : f32
    %30 = vector.broadcast %cst_14 : f32 to vector<512x128xf32>
    %31 = arith.mulf %30, %27 : vector<512x128xf32>
    %32 = arith.select %29, %27, %31 : vector<512x128xi1>, vector<512x128xf32>
    %33 = arith.truncf %32 : vector<512x128xf32> to vector<512x128xbf16>
    %c0_15 = arith.constant 0 : index
    %c0_16 = arith.constant 0 : index
    %34 = vector.load %arg4[%c0_15, %c0_16] : memref<512x128xbf16, #tpu.memory_space<vmem>>, vector<512x128xbf16>
    tpu.vector_store %arg4[%c0_15, %c0_16], %33 {strides = array<i32>} : memref<512x128xbf16, #tpu.memory_space<vmem>>, vector<512x128xbf16>,
    return
  }
}

module attributes {stable_mosaic.version = 11 : i64} {
  func.func @conv_bn_lrelu_kernel(%arg0: memref<128x128xbf16, #tpu.memory_space<vmem>>, %arg1: memref<128x128xbf16, #tpu.memory_space<vmem>>, %arg2: memref<1x128xf32, #tpu.memory_space<vmem>>, %arg3: memref<1x128xf32, #tpu.memory_space<vmem>>, %arg4: memref<128x128xbf16, #tpu.memory_space<vmem>>) attributes {dimension_semantics = [], scalar_prefetch = 0 : i64, scratch_operands = 0 : i64, tpu.core_type = #tpu.core_type<tc>} {
    %c0 = arith.constant 0 : index
    %c0_0 = arith.constant 0 : index
    %0 = vector.load %arg0[%c0, %c0_0] : memref<128x128xbf16, #tpu.memory_space<vmem>>, vector<128x128xbf16>
    %c0_1 = arith.constant 0 : index
    %c0_2 = arith.constant 0 : index
    %1 = vector.load %arg1[%c0_1, %c0_2] : memref<128x128xbf16, #tpu.memory_space<vmem>>, vector<128x128xbf16>
    %cst = arith.constant dense<0.000000e+00> : vector<128x128xf32>
    %2 = tpu.matmul %0, %1, %cst {dimension_numbers = #tpu.dot_dimension_numbers<[1], [0], [0], [1], [0, 0, 1, 1], [], []>} : vector<128x128xbf16>, vector<128x128xbf16>, vector<128x128xf32> -> vector<128x128xf32>
    %c0_3 = arith.constant 0 : index
    %c0_4 = arith.constant 0 : index
    %3 = vector.load %arg2[%c0_3, %c0_4] : memref<1x128xf32, #tpu.memory_space<vmem>>, vector<1x128xf32>
    %c0_5 = arith.constant 0 : index
    %c0_6 = arith.constant 0 : index
    %4 = vector.load %arg3[%c0_5, %c0_6] : memref<1x128xf32, #tpu.memory_space<vmem>>, vector<1x128xf32>
    %cst_7 = arith.constant dense<0.000000e+00> : vector<128xf32>
    %5 = vector.multi_reduction <add>, %2, %cst_7 [0] : vector<128x128xf32> to vector<128xf32>
    %6 = vector.shape_cast %5 : vector<128xf32> to vector<1x128xf32>
    %7 = arith.mulf %2, %2 : vector<128x128xf32>
    %cst_8 = arith.constant dense<0.000000e+00> : vector<128xf32>
    %8 = vector.multi_reduction <add>, %7, %cst_8 [0] : vector<128x128xf32> to vector<128xf32>
    %9 = vector.shape_cast %8 : vector<128xf32> to vector<1x128xf32>
    %cst_9 = arith.constant 7.812500e-03 : f32
    %10 = vector.broadcast %cst_9 : f32 to vector<1x128xf32>
    %11 = arith.mulf %6, %10 : vector<1x128xf32>
    %cst_10 = arith.constant 7.812500e-03 : f32
    %12 = vector.broadcast %cst_10 : f32 to vector<1x128xf32>
    %13 = arith.mulf %9, %12 : vector<1x128xf32>
    %14 = arith.mulf %11, %11 : vector<1x128xf32>
    %15 = arith.subf %13, %14 : vector<1x128xf32>
    %cst_11 = arith.constant 0.000000e+00 : f32
    %16 = vector.broadcast %cst_11 : f32 to vector<1x128xf32>
    %17 = arith.maximumf %15, %16 : vector<1x128xf32>
    %cst_12 = arith.constant 9.99999974E-6 : f32
    %18 = vector.broadcast %cst_12 : f32 to vector<1x128xf32>
    %19 = arith.addf %17, %18 : vector<1x128xf32>
    %20 = math.rsqrt %19 : vector<1x128xf32>
    %21 = arith.mulf %3, %20 : vector<1x128xf32>
    %22 = arith.mulf %11, %21 : vector<1x128xf32>
    %23 = arith.subf %4, %22 : vector<1x128xf32>
    %24 = vector.broadcast %21 : vector<1x128xf32> to vector<128x128xf32>
    %25 = arith.mulf %2, %24 : vector<128x128xf32>
    %26 = vector.broadcast %23 : vector<1x128xf32> to vector<128x128xf32>
    %27 = arith.addf %25, %26 : vector<128x128xf32>
    %cst_13 = arith.constant 0.000000e+00 : f32
    %28 = vector.broadcast %cst_13 : f32 to vector<128x128xf32>
    %29 = arith.cmpf ogt, %27, %28 : vector<128x128xf32>
    %cst_14 = arith.constant 2.000000e-01 : f32
    %30 = vector.broadcast %cst_14 : f32 to vector<128x128xf32>
    %31 = arith.mulf %30, %27 : vector<128x128xf32>
    %32 = arith.select %29, %27, %31 : vector<128x128xi1>, vector<128x128xf32>
    %33 = arith.truncf %32 : vector<128x128xf32> to vector<128x128xbf16>
    %c0_15 = arith.constant 0 : index
    %c0_16 = arith.constant 0 : index
    %34 = vector.load %arg4[%c0_15, %c0_16] : memref<128x128xbf16, #tpu.memory_space<vmem>>, vector<128x128xbf16>
    tpu.vector_store %arg4[%c0_15, %c0_16], %33 {strides = array<i32>} : memref<128x128xbf16, #tpu.memory_space<vmem>>, vector<128x128xbf16>,
    return
  }
}

module attributes {stable_mosaic.version = 11 : i64} {
  func.func @conv_bn_lrelu_kernel(%arg0: memref<32x256xbf16, #tpu.memory_space<vmem>>, %arg1: memref<256x128xbf16, #tpu.memory_space<vmem>>, %arg2: memref<1x128xf32, #tpu.memory_space<vmem>>, %arg3: memref<1x128xf32, #tpu.memory_space<vmem>>, %arg4: memref<32x128xbf16, #tpu.memory_space<vmem>>) attributes {dimension_semantics = [], scalar_prefetch = 0 : i64, scratch_operands = 0 : i64, tpu.core_type = #tpu.core_type<tc>} {
    %c0 = arith.constant 0 : index
    %c0_0 = arith.constant 0 : index
    %0 = vector.load %arg0[%c0, %c0_0] : memref<32x256xbf16, #tpu.memory_space<vmem>>, vector<32x256xbf16>
    %c0_1 = arith.constant 0 : index
    %c0_2 = arith.constant 0 : index
    %1 = vector.load %arg1[%c0_1, %c0_2] : memref<256x128xbf16, #tpu.memory_space<vmem>>, vector<256x128xbf16>
    %cst = arith.constant dense<0.000000e+00> : vector<32x128xf32>
    %2 = tpu.matmul %0, %1, %cst {dimension_numbers = #tpu.dot_dimension_numbers<[1], [0], [0], [1], [0, 0, 1, 1], [], []>} : vector<32x256xbf16>, vector<256x128xbf16>, vector<32x128xf32> -> vector<32x128xf32>
    %c0_3 = arith.constant 0 : index
    %c0_4 = arith.constant 0 : index
    %3 = vector.load %arg2[%c0_3, %c0_4] : memref<1x128xf32, #tpu.memory_space<vmem>>, vector<1x128xf32>
    %c0_5 = arith.constant 0 : index
    %c0_6 = arith.constant 0 : index
    %4 = vector.load %arg3[%c0_5, %c0_6] : memref<1x128xf32, #tpu.memory_space<vmem>>, vector<1x128xf32>
    %cst_7 = arith.constant dense<0.000000e+00> : vector<128xf32>
    %5 = vector.multi_reduction <add>, %2, %cst_7 [0] : vector<32x128xf32> to vector<128xf32>
    %6 = vector.shape_cast %5 : vector<128xf32> to vector<1x128xf32>
    %7 = arith.mulf %2, %2 : vector<32x128xf32>
    %cst_8 = arith.constant dense<0.000000e+00> : vector<128xf32>
    %8 = vector.multi_reduction <add>, %7, %cst_8 [0] : vector<32x128xf32> to vector<128xf32>
    %9 = vector.shape_cast %8 : vector<128xf32> to vector<1x128xf32>
    %cst_9 = arith.constant 3.125000e-02 : f32
    %10 = vector.broadcast %cst_9 : f32 to vector<1x128xf32>
    %11 = arith.mulf %6, %10 : vector<1x128xf32>
    %cst_10 = arith.constant 3.125000e-02 : f32
    %12 = vector.broadcast %cst_10 : f32 to vector<1x128xf32>
    %13 = arith.mulf %9, %12 : vector<1x128xf32>
    %14 = arith.mulf %11, %11 : vector<1x128xf32>
    %15 = arith.subf %13, %14 : vector<1x128xf32>
    %cst_11 = arith.constant 0.000000e+00 : f32
    %16 = vector.broadcast %cst_11 : f32 to vector<1x128xf32>
    %17 = arith.maximumf %15, %16 : vector<1x128xf32>
    %cst_12 = arith.constant 9.99999974E-6 : f32
    %18 = vector.broadcast %cst_12 : f32 to vector<1x128xf32>
    %19 = arith.addf %17, %18 : vector<1x128xf32>
    %20 = math.rsqrt %19 : vector<1x128xf32>
    %21 = arith.mulf %3, %20 : vector<1x128xf32>
    %22 = arith.mulf %11, %21 : vector<1x128xf32>
    %23 = arith.subf %4, %22 : vector<1x128xf32>
    %24 = vector.broadcast %21 : vector<1x128xf32> to vector<32x128xf32>
    %25 = arith.mulf %2, %24 : vector<32x128xf32>
    %26 = vector.broadcast %23 : vector<1x128xf32> to vector<32x128xf32>
    %27 = arith.addf %25, %26 : vector<32x128xf32>
    %cst_13 = arith.constant 0.000000e+00 : f32
    %28 = vector.broadcast %cst_13 : f32 to vector<32x128xf32>
    %29 = arith.cmpf ogt, %27, %28 : vector<32x128xf32>
    %cst_14 = arith.constant 2.000000e-01 : f32
    %30 = vector.broadcast %cst_14 : f32 to vector<32x128xf32>
    %31 = arith.mulf %30, %27 : vector<32x128xf32>
    %32 = arith.select %29, %27, %31 : vector<32x128xi1>, vector<32x128xf32>
    %33 = arith.truncf %32 : vector<32x128xf32> to vector<32x128xbf16>
    %c0_15 = arith.constant 0 : index
    %c0_16 = arith.constant 0 : index
    %34 = vector.load %arg4[%c0_15, %c0_16] : memref<32x128xbf16, #tpu.memory_space<vmem>>, vector<32x128xbf16>
    tpu.vector_store %arg4[%c0_15, %c0_16], %33 {strides = array<i32>} : memref<32x128xbf16, #tpu.memory_space<vmem>>, vector<32x128xbf16>,
    return
  }
}

module attributes {stable_mosaic.version = 11 : i64} {
  func.func @head_kernel(%arg0: memref<16x512xbf16, #tpu.memory_space<vmem>>, %arg1: memref<512x128xbf16, #tpu.memory_space<vmem>>, %arg2: memref<1x128xf32, #tpu.memory_space<vmem>>, %arg3: memref<1x128xf32, #tpu.memory_space<vmem>>, %arg4: memref<128x128xbf16, #tpu.memory_space<vmem>>, %arg5: memref<1x128xf32, #tpu.memory_space<vmem>>, %arg6: memref<128x128xbf16, #tpu.memory_space<vmem>>, %arg7: memref<1x128xf32, #tpu.memory_space<vmem>>, %arg8: memref<128x128xbf16, #tpu.memory_space<vmem>>, %arg9: memref<1x128xf32, #tpu.memory_space<vmem>>, %arg10: memref<128x128xbf16, #tpu.memory_space<vmem>>, %arg11: memref<1x128xf32, #tpu.memory_space<vmem>>, %arg12: memref<128x128xbf16, #tpu.memory_space<vmem>>, %arg13: memref<1x128xf32, #tpu.memory_space<vmem>>, %arg14: memref<16x128xf32, #tpu.memory_space<vmem>>) attributes {dimension_semantics = [], scalar_prefetch = 0 : i64, scratch_operands = 0 : i64, tpu.core_type = #tpu.core_type<tc>} {
    %c0 = arith.constant 0 : index
    %c0_0 = arith.constant 0 : index
    %0 = vector.load %arg0[%c0, %c0_0] : memref<16x512xbf16, #tpu.memory_space<vmem>>, vector<16x512xbf16>
    %c0_1 = arith.constant 0 : index
    %c0_2 = arith.constant 0 : index
    %1 = vector.load %arg1[%c0_1, %c0_2] : memref<512x128xbf16, #tpu.memory_space<vmem>>, vector<512x128xbf16>
    %cst = arith.constant dense<0.000000e+00> : vector<16x128xf32>
    %2 = tpu.matmul %0, %1, %cst {dimension_numbers = #tpu.dot_dimension_numbers<[1], [0], [0], [1], [0, 0, 1, 1], [], []>} : vector<16x512xbf16>, vector<512x128xbf16>, vector<16x128xf32> -> vector<16x128xf32>
    %c0_3 = arith.constant 0 : index
    %c0_4 = arith.constant 0 : index
    %3 = vector.load %arg2[%c0_3, %c0_4] : memref<1x128xf32, #tpu.memory_space<vmem>>, vector<1x128xf32>
    %c0_5 = arith.constant 0 : index
    %c0_6 = arith.constant 0 : index
    %4 = vector.load %arg3[%c0_5, %c0_6] : memref<1x128xf32, #tpu.memory_space<vmem>>, vector<1x128xf32>
    %cst_7 = arith.constant dense<0.000000e+00> : vector<128xf32>
    %5 = vector.multi_reduction <add>, %2, %cst_7 [0] : vector<16x128xf32> to vector<128xf32>
    %6 = vector.shape_cast %5 : vector<128xf32> to vector<1x128xf32>
    %7 = arith.mulf %2, %2 : vector<16x128xf32>
    %cst_8 = arith.constant dense<0.000000e+00> : vector<128xf32>
    %8 = vector.multi_reduction <add>, %7, %cst_8 [0] : vector<16x128xf32> to vector<128xf32>
    %9 = vector.shape_cast %8 : vector<128xf32> to vector<1x128xf32>
    %cst_9 = arith.constant 5.000000e-01 : f32
    %10 = vector.broadcast %cst_9 : f32 to vector<1x128xf32>
    %11 = arith.mulf %6, %10 : vector<1x128xf32>
    %cst_10 = arith.constant 5.000000e-01 : f32
    %12 = vector.broadcast %cst_10 : f32 to vector<1x128xf32>
    %13 = arith.mulf %9, %12 : vector<1x128xf32>
    %14 = arith.mulf %11, %11 : vector<1x128xf32>
    %15 = arith.subf %13, %14 : vector<1x128xf32>
    %cst_11 = arith.constant 0.000000e+00 : f32
    %16 = vector.broadcast %cst_11 : f32 to vector<1x128xf32>
    %17 = arith.maximumf %15, %16 : vector<1x128xf32>
    %cst_12 = arith.constant 9.99999974E-6 : f32
    %18 = vector.broadcast %cst_12 : f32 to vector<1x128xf32>
    %19 = arith.addf %17, %18 : vector<1x128xf32>
    %20 = math.rsqrt %19 : vector<1x128xf32>
    %21 = arith.mulf %3, %20 : vector<1x128xf32>
    %22 = arith.mulf %11, %21 : vector<1x128xf32>
    %23 = arith.subf %4, %22 : vector<1x128xf32>
    %24 = vector.broadcast %21 : vector<1x128xf32> to vector<16x128xf32>
    %25 = arith.mulf %2, %24 : vector<16x128xf32>
    %26 = vector.broadcast %23 : vector<1x128xf32> to vector<16x128xf32>
    %27 = arith.addf %25, %26 : vector<16x128xf32>
    %cst_13 = arith.constant 0.000000e+00 : f32
    %28 = vector.broadcast %cst_13 : f32 to vector<16x128xf32>
    %29 = arith.cmpf ogt, %27, %28 : vector<16x128xf32>
    %cst_14 = arith.constant 2.000000e-01 : f32
    %30 = vector.broadcast %cst_14 : f32 to vector<16x128xf32>
    %31 = arith.mulf %30, %27 : vector<16x128xf32>
    %32 = arith.select %29, %27, %31 : vector<16x128xi1>, vector<16x128xf32>
    %33 = arith.truncf %32 : vector<16x128xf32> to vector<16x128xbf16>
    %c0_15 = arith.constant 0 : index
    %c0_16 = arith.constant 0 : index
    %34 = vector.load %arg4[%c0_15, %c0_16] : memref<128x128xbf16, #tpu.memory_space<vmem>>, vector<128x128xbf16>
    %cst_17 = arith.constant dense<0.000000e+00> : vector<16x128xf32>
    %35 = tpu.matmul %33, %34, %cst_17 {dimension_numbers = #tpu.dot_dimension_numbers<[1], [0], [0], [1], [0, 0, 1, 1], [], []>} : vector<16x128xbf16>, vector<128x128xbf16>, vector<16x128xf32> -> vector<16x128xf32>
    %c0_18 = arith.constant 0 : index
    %c0_19 = arith.constant 0 : index
    %36 = vector.load %arg5[%c0_18, %c0_19] : memref<1x128xf32, #tpu.memory_space<vmem>>, vector<1x128xf32>
    %37 = vector.broadcast %36 : vector<1x128xf32> to vector<16x128xf32>
    %38 = arith.addf %35, %37 : vector<16x128xf32>
    %cst_20 = arith.constant 0.000000e+00 : f32
    %39 = vector.broadcast %cst_20 : f32 to vector<16x128xf32>
    %40 = arith.cmpf ogt, %38, %39 : vector<16x128xf32>
    %cst_21 = arith.constant 2.000000e-01 : f32
    %41 = vector.broadcast %cst_21 : f32 to vector<16x128xf32>
    %42 = arith.mulf %41, %38 : vector<16x128xf32>
    %43 = arith.select %40, %38, %42 : vector<16x128xi1>, vector<16x128xf32>
    %44 = arith.truncf %43 : vector<16x128xf32> to vector<16x128xbf16>
    %c0_22 = arith.constant 0 : index
    %c0_23 = arith.constant 0 : index
    %45 = vector.load %arg6[%c0_22, %c0_23] : memref<128x128xbf16, #tpu.memory_space<vmem>>, vector<128x128xbf16>
    %cst_24 = arith.constant dense<0.000000e+00> : vector<16x128xf32>
    %46 = tpu.matmul %44, %45, %cst_24 {dimension_numbers = #tpu.dot_dimension_numbers<[1], [0], [0], [1], [0, 0, 1, 1], [], []>} : vector<16x128xbf16>, vector<128x128xbf16>, vector<16x128xf32> -> vector<16x128xf32>
    %c0_25 = arith.constant 0 : index
    %c0_26 = arith.constant 0 : index
    %47 = vector.load %arg7[%c0_25, %c0_26] : memref<1x128xf32, #tpu.memory_space<vmem>>, vector<1x128xf32>
    %48 = vector.broadcast %47 : vector<1x128xf32> to vector<16x128xf32>
    %49 = arith.addf %46, %48 : vector<16x128xf32>
    %cst_27 = arith.constant 0.000000e+00 : f32
    %50 = vector.broadcast %cst_27 : f32 to vector<16x128xf32>
    %51 = arith.cmpf ogt, %49, %50 : vector<16x128xf32>
    %cst_28 = arith.constant 2.000000e-01 : f32
    %52 = vector.broadcast %cst_28 : f32 to vector<16x128xf32>
    %53 = arith.mulf %52, %49 : vector<16x128xf32>
    %54 = arith.select %51, %49, %53 : vector<16x128xi1>, vector<16x128xf32>
    %55 = arith.truncf %54 : vector<16x128xf32> to vector<16x128xbf16>
    %c0_29 = arith.constant 0 : index
    %c0_30 = arith.constant 0 : index
    %56 = vector.load %arg8[%c0_29, %c0_30] : memref<128x128xbf16, #tpu.memory_space<vmem>>, vector<128x128xbf16>
    %cst_31 = arith.constant dense<0.000000e+00> : vector<16x128xf32>
    %57 = tpu.matmul %55, %56, %cst_31 {dimension_numbers = #tpu.dot_dimension_numbers<[1], [0], [0], [1], [0, 0, 1, 1], [], []>} : vector<16x128xbf16>, vector<128x128xbf16>, vector<16x128xf32> -> vector<16x128xf32>
    %c0_32 = arith.constant 0 : index
    %c0_33 = arith.constant 0 : index
    %58 = vector.load %arg9[%c0_32, %c0_33] : memref<1x128xf32, #tpu.memory_space<vmem>>, vector<1x128xf32>
    %59 = vector.broadcast %58 : vector<1x128xf32> to vector<16x128xf32>
    %60 = arith.addf %57, %59 : vector<16x128xf32>
    %cst_34 = arith.constant 0.000000e+00 : f32
    %61 = vector.broadcast %cst_34 : f32 to vector<16x128xf32>
    %62 = arith.cmpf ogt, %60, %61 : vector<16x128xf32>
    %cst_35 = arith.constant 2.000000e-01 : f32
    %63 = vector.broadcast %cst_35 : f32 to vector<16x128xf32>
    %64 = arith.mulf %63, %60 : vector<16x128xf32>
    %65 = arith.select %62, %60, %64 : vector<16x128xi1>, vector<16x128xf32>
    %66 = arith.truncf %65 : vector<16x128xf32> to vector<16x128xbf16>
    %c0_36 = arith.constant 0 : index
    %c0_37 = arith.constant 0 : index
    %67 = vector.load %arg10[%c0_36, %c0_37] : memref<128x128xbf16, #tpu.memory_space<vmem>>, vector<128x128xbf16>
    %cst_38 = arith.constant dense<0.000000e+00> : vector<16x128xf32>
    %68 = tpu.matmul %66, %67, %cst_38 {dimension_numbers = #tpu.dot_dimension_numbers<[1], [0], [0], [1], [0, 0, 1, 1], [], []>} : vector<16x128xbf16>, vector<128x128xbf16>, vector<16x128xf32> -> vector<16x128xf32>
    %c0_39 = arith.constant 0 : index
    %c0_40 = arith.constant 0 : index
    %69 = vector.load %arg11[%c0_39, %c0_40] : memref<1x128xf32, #tpu.memory_space<vmem>>, vector<1x128xf32>
    %70 = vector.broadcast %69 : vector<1x128xf32> to vector<16x128xf32>
    %71 = arith.addf %68, %70 : vector<16x128xf32>
    %cst_41 = arith.constant 0.000000e+00 : f32
    %72 = vector.broadcast %cst_41 : f32 to vector<16x128xf32>
    %73 = arith.cmpf ogt, %71, %72 : vector<16x128xf32>
    %cst_42 = arith.constant 2.000000e-01 : f32
    %74 = vector.broadcast %cst_42 : f32 to vector<16x128xf32>
    %75 = arith.mulf %74, %71 : vector<16x128xf32>
    %76 = arith.select %73, %71, %75 : vector<16x128xi1>, vector<16x128xf32>
    %77 = arith.truncf %76 : vector<16x128xf32> to vector<16x128xbf16>
    %c0_43 = arith.constant 0 : index
    %c0_44 = arith.constant 0 : index
    %78 = vector.load %arg12[%c0_43, %c0_44] : memref<128x128xbf16, #tpu.memory_space<vmem>>, vector<128x128xbf16>
    %cst_45 = arith.constant dense<0.000000e+00> : vector<16x128xf32>
    %79 = tpu.matmul %77, %78, %cst_45 {dimension_numbers = #tpu.dot_dimension_numbers<[1], [0], [0], [1], [0, 0, 1, 1], [], []>} : vector<16x128xbf16>, vector<128x128xbf16>, vector<16x128xf32> -> vector<16x128xf32>
    %c0_46 = arith.constant 0 : index
    %c0_47 = arith.constant 0 : index
    %80 = vector.load %arg13[%c0_46, %c0_47] : memref<1x128xf32, #tpu.memory_space<vmem>>, vector<1x128xf32>
    %81 = vector.broadcast %80 : vector<1x128xf32> to vector<16x128xf32>
    %82 = arith.addf %79, %81 : vector<16x128xf32>
    %83 = tpu.iota {dimensions = array<i32: 1>} : vector<16x128xi32>
    %c10_i32 = arith.constant 10 : i32
    %84 = vector.broadcast %c10_i32 : i32 to vector<16x128xi32>
    %85 = arith.cmpi slt, %83, %84 : vector<16x128xi32>
    %cst_48 = arith.constant -1.000000e+30 : f32
    %86 = vector.broadcast %cst_48 : f32 to vector<16x128xf32>
    %87 = arith.select %85, %82, %86 : vector<16x128xi1>, vector<16x128xf32>
    %cst_49 = arith.constant dense<0xFF800000> : vector<16xf32>
    %88 = vector.multi_reduction <maximumf>, %87, %cst_49 [1] : vector<16x128xf32> to vector<16xf32>
    %89 = vector.shape_cast %88 : vector<16xf32> to vector<16x1xf32>
    %90 = vector.broadcast %89 : vector<16x1xf32> to vector<16x128xf32>
    %91 = arith.subf %87, %90 : vector<16x128xf32>
    %92 = math.exp %91 : vector<16x128xf32>
    %cst_50 = arith.constant 0.000000e+00 : f32
    %93 = vector.broadcast %cst_50 : f32 to vector<16x128xf32>
    %94 = arith.select %85, %92, %93 : vector<16x128xi1>, vector<16x128xf32>
    %cst_51 = arith.constant dense<0.000000e+00> : vector<16xf32>
    %95 = vector.multi_reduction <add>, %94, %cst_51 [1] : vector<16x128xf32> to vector<16xf32>
    %96 = vector.shape_cast %95 : vector<16xf32> to vector<16x1xf32>
    %97 = math.log %96 : vector<16x1xf32>
    %98 = arith.addf %89, %97 : vector<16x1xf32>
    %99 = vector.broadcast %98 : vector<16x1xf32> to vector<16x128xf32>
    %100 = arith.subf %82, %99 : vector<16x128xf32>
    %c0_52 = arith.constant 0 : index
    %c0_53 = arith.constant 0 : index
    %101 = vector.load %arg14[%c0_52, %c0_53] : memref<16x128xf32, #tpu.memory_space<vmem>>, vector<16x128xf32>
    tpu.vector_store %arg14[%c0_52, %c0_53], %100 {strides = array<i32>} : memref<16x128xf32, #tpu.memory_space<vmem>>, vector<16x128xf32>,
    return
  }
}

</mosaic_0001>

<bundles_post_ra>
// kernel: _forward.4
= control target key start
LH: loop header
LB: loop body
LE: loop exit
PB: predicated region body
PF: predicated region fallthrough
CT: control target
= control target key end

     0   :  { %s3774_s1 = inlined_call_operand.vmem [shape: bf16[128,128], index: 1, kind: input, shape index: {}]   ;;  %s3775_s0 = inlined_call_operand.vmem [shape: bf16[512,128], index: 0, kind: input, shape index: {}]   ;;  %s3776_s2 = inlined_call_operand.vmem [shape: f32[1,128], index: 2, kind: input, shape index: {}]   ;;  %s3777_s3 = inlined_call_operand.vmem [shape: f32[1,128], index: 3, kind: input, shape index: {}]   ;;  %s3778_s4 = inlined_call_operand.vmem [shape: bf16[512,128], index: 4, kind: output, shape index: {}]  }
   0x1   :  { %v1992_v0 = vld [vmem:[%s3774_s1] sm:$0xff]   ;;  %v1993_v1 = vld [vmem:[%s3774_s1 + $0x8] sm:$0xff]   ;;  %v1994_v2 = vld [vmem:[%s3774_s1 + $0x10] sm:$0xff]  }
   0x2   :  { %1896 = vmatprep.subr.bf16.mxu0 %v1992_v0  ;;  %1976 = vmatprep.subr.bf16.mxu1 %v1992_v0  ;;  %v1995_v3 = vld [vmem:[%s3774_s1 + $0x18] sm:$0xff]   ;;  %v2000_v4 = vld [vmem:[%s3775_s0] sm:$0xff]   ;;  %v1997_v6 = vld [vmem:[%s3774_s1 + $0x28] sm:$0xff]  }
   0x3   :  { %1897 = vmatpush3.bf16.msra.mxu0 %v1992_v0  ;;  %1984 = vmatpush3.bf16.msra.mxu1 %v1992_v0  ;;  %v1996_v5 = vld [vmem:[%s3774_s1 + $0x20] sm:$0xff]   ;;  %v1998_v7 = vld [vmem:[%s3774_s1 + $0x30] sm:$0xff]   ;;  %v1999_v8 = vld [vmem:[%s3774_s1 + $0x38] sm:$0xff]  }
   0x4   :  { %1898 = vmatprep.subr.bf16.mxu0 %v1993_v1  ;;  %1977 = vmatprep.subr.bf16.mxu1 %v1993_v1  ;;  %v2016_v9 = vld [vmem:[%s3775_s0 + $0x80] sm:$0xff]   ;;  %v2001_v10 = vld [vmem:[%s3775_s0 + $0x8] sm:$0xff]   ;;  %v2002_v11 = vld [vmem:[%s3775_s0 + $0x10] sm:$0xff]  }
   0x5   :  { %1912 = vmatprep.mubr.bf16.mxu0 %v2000_v4  ;;  %1944 = vmatprep.mubr.bf16.mxu1 %v2016_v9  ;;  %v2017_v12 = vld [vmem:[%s3775_s0 + $0x88] sm:$0xff]   ;;  %v2018_v13 = vld [vmem:[%s3775_s0 + $0x90] sm:$0xff]   ;;  %v2003_v14 = vld [vmem:[%s3775_s0 + $0x18] sm:$0xff]  }
   0x6   :  { %v2004_v15 = vld [vmem:[%s3775_s0 + $0x20] sm:$0xff]   ;;  %v2019_v16 = vld [vmem:[%s3775_s0 + $0x98] sm:$0xff]   ;;  %v2005_v18 = vld [vmem:[%s3775_s0 + $0x28] sm:$0xff]  }
   0x7   :  { %1899 = vmatpush3.bf16.msra.mxu0 %v1993_v1  ;;  %1985 = vmatpush3.bf16.msra.mxu1 %v1993_v1  ;;  %v2020_v17 = vld [vmem:[%s3775_s0 + $0xa0] sm:$0xff]   ;;  %v2021_v19 = vld [vmem:[%s3775_s0 + $0xa8] sm:$0xff]   ;;  %v2006_v20 = vld [vmem:[%s3775_s0 + $0x30] sm:$0xff]  }
   0x8   :  { %1900 = vmatprep.subr.bf16.mxu0 %v1994_v2  ;;  %1978 = vmatprep.subr.bf16.mxu1 %v1994_v2  ;;  %v2022_v21 = vld [vmem:[%s3775_s0 + $0xb0] sm:$0xff]   ;;  %v2007_v22 = vld [vmem:[%s3775_s0 + $0x38] sm:$0xff]   ;;  %v2008_v24 = vld [vmem:[%s3775_s0 + $0x40] sm:$0xff]  }
   0x9   :  { %v2023_v23 = vld [vmem:[%s3775_s0 + $0xb8] sm:$0xff]   ;;  %v2024_v25 = vld [vmem:[%s3775_s0 + $0xc0] sm:$0xff]   ;;  %v2009_v26 = vld [vmem:[%s3775_s0 + $0x48] sm:$0xff]  }
   0xa   :  { %v2025_v27 = vld [vmem:[%s3775_s0 + $0xc8] sm:$0xff]   ;;  %v2010_v28 = vld [vmem:[%s3775_s0 + $0x50] sm:$0xff]   ;;  %v2011_v30 = vld [vmem:[%s3775_s0 + $0x58] sm:$0xff]  }
   0xb   :  { %1901 = vmatpush3.bf16.msra.mxu0 %v1994_v2  ;;  %1986 = vmatpush3.bf16.msra.mxu1 %v1994_v2  ;;  %v2026_v29 = vld [vmem:[%s3775_s0 + $0xd0] sm:$0xff]   ;;  %v2027_v31 = vld [vmem:[%s3775_s0 + $0xd8] sm:$0xff]   ;;  %v2012_v32 = vld [vmem:[%s3775_s0 + $0x60] sm:$0xff]  }
   0xc   :  { %1902 = vmatprep.subr.bf16.mxu0 %v1995_v3  ;;  %1979 = vmatprep.subr.bf16.mxu1 %v1995_v3  ;;  %v2028_v33 = vld [vmem:[%s3775_s0 + $0xe0] sm:$0xff]   ;;  %v2013_v34 = vld [vmem:[%s3775_s0 + $0x68] sm:$0xff]   ;;  %v2014_v36 = vld [vmem:[%s3775_s0 + $0x70] sm:$0xff]  }
   0xd   :  { %v2029_v35 = vld [vmem:[%s3775_s0 + $0xe8] sm:$0xff]   ;;  %v2030_v37 = vld [vmem:[%s3775_s0 + $0xf0] sm:$0xff]   ;;  %v2015_v38 = vld [vmem:[%s3775_s0 + $0x78] sm:$0xff]  }
   0xe   :  { %v2031_v39 = vld [vmem:[%s3775_s0 + $0xf8] sm:$0xff]  }
   0xf   :  { %1903 = vmatpush3.bf16.msra.mxu0 %v1995_v3  ;;  %1987 = vmatpush3.bf16.msra.mxu1 %v1995_v3 }
  0x10   :  { %1904 = vmatprep.subr.bf16.mxu0 %v1996_v5  ;;  %1980 = vmatprep.subr.bf16.mxu1 %v1996_v5 }
  0x13   :  { %1905 = vmatpush3.bf16.msra.mxu0 %v1996_v5  ;;  %1988 = vmatpush3.bf16.msra.mxu1 %v1996_v5 }
  0x14   :  { %1906 = vmatprep.subr.bf16.mxu0 %v1997_v6  ;;  %1981 = vmatprep.subr.bf16.mxu1 %v1997_v6 }
  0x17   :  { %1907 = vmatpush3.bf16.msra.mxu0 %v1997_v6  ;;  %1989 = vmatpush3.bf16.msra.mxu1 %v1997_v6 }
  0x18   :  { %1908 = vmatprep.subr.bf16.mxu0 %v1998_v7  ;;  %1982 = vmatprep.subr.bf16.mxu1 %v1998_v7 }
  0x1b   :  { %1909 = vmatpush3.bf16.msra.mxu0 %v1998_v7  ;;  %1990 = vmatpush3.bf16.msra.mxu1 %v1998_v7 }
  0x1c   :  { %1910 = vmatprep.subr.bf16.mxu0 %v1999_v8  ;;  %1983 = vmatprep.subr.bf16.mxu1 %v1999_v8 }
  0x1f   :  { %1911 = vmatpush3.bf16.msra.mxu0 %v1999_v8  ;;  %1991 = vmatpush3.bf16.msra.mxu1 %v1999_v8 }
  0x22   :  { %1913 = vmatmul.mubr.bf16.vlgmr.msra.gmra.mrb[0].mxu0 %v2001_v10  ;;  %1945 = vmatmul.mubr.bf16.vlgmr.msra.gmra.mrb[0].mxu1 %v2017_v12 }
  0x23   :  { %1916 = vmatprep.mubr.bf16.mxu0 %v2002_v11  ;;  %1948 = vmatprep.mubr.bf16.mxu1 %v2018_v13 }
  0x2a   :  { %1917 = vmatmul.mubr.bf16.gmra.mrb[4].mxu0 %v2003_v14  ;;  %1949 = vmatmul.mubr.bf16.gmra.mrb[4].mxu1 %v2019_v16 }
  0x2b   :  { %1920 = vmatprep.mubr.bf16.mxu0 %v2004_v15  ;;  %1952 = vmatprep.mubr.bf16.mxu1 %v2020_v17 }
  0x32   :  { %1921 = vmatmul.mubr.bf16.gmra.mrb[8].mxu0 %v2005_v18  ;;  %1953 = vmatmul.mubr.bf16.gmra.mrb[8].mxu1 %v2021_v19 }
  0x33   :  { %1924 = vmatprep.mubr.bf16.mxu0 %v2006_v20  ;;  %1956 = vmatprep.mubr.bf16.mxu1 %v2022_v21 }
  0x3a   :  { %1925 = vmatmul.mubr.bf16.gmra.mrb[12].mxu0 %v2007_v22  ;;  %1957 = vmatmul.mubr.bf16.gmra.mrb[12].mxu1 %v2023_v23 }
  0x3b   :  { %1928 = vmatprep.mubr.bf16.mxu0 %v2008_v24  ;;  %1960 = vmatprep.mubr.bf16.mxu1 %v2024_v25 }
  0x42   :  { %1929 = vmatmul.mubr.bf16.gmra.mrb[16].mxu0 %v2009_v26  ;;  %1961 = vmatmul.mubr.bf16.gmra.mrb[16].mxu1 %v2025_v27 }
  0x43   :  { %1932 = vmatprep.mubr.bf16.mxu0 %v2010_v28  ;;  %1964 = vmatprep.mubr.bf16.mxu1 %v2026_v29 }
  0x4a   :  { %1933 = vmatmul.mubr.bf16.gmra.mrb[20].mxu0 %v2011_v30  ;;  %1965 = vmatmul.mubr.bf16.gmra.mrb[20].mxu1 %v2027_v31 }
  0x4b   :  { %1936 = vmatprep.mubr.bf16.mxu0 %v2012_v32  ;;  %1968 = vmatprep.mubr.bf16.mxu1 %v2028_v33 }
  0x52   :  { %1937 = vmatmul.mubr.bf16.gmra.mrb[24].mxu0 %v2013_v34  ;;  %1969 = vmatmul.mubr.bf16.gmra.mrb[24].mxu1 %v2029_v35 }
  0x53   :  { %1940 = vmatprep.mubr.bf16.mxu0 %v2014_v36  ;;  %1972 = vmatprep.mubr.bf16.mxu1 %v2030_v37 }
  0x5a   :  { %1941 = vmatmul.mubr.bf16.gmra.mrb[28].mxu0 %v2015_v38  ;;  %1973 = vmatmul.mubr.bf16.gmra.mrb[28].mxu1 %v2031_v39 }
  0xf5   :  { %v2179_v40 = vpop.f32.mrb[0].mxu0  ;;  %v2181_v41 = vpop.f32.mrb[0].mxu1 }
  0xf6   :  { %v2183_v42 = vpop.f32.mrb[1].mxu0  ;;  %v2185_v43 = vpop.f32.mrb[1].mxu1  ;;  %v700_v51 = vmul.f32 %v2179_v40, %v2179_v40 }
  0xf7   :  { %v2187_v44 = vpop.f32.mrb[2].mxu0  ;;  %v2189_v45 = vpop.f32.mrb[2].mxu1  ;;  %v698_v48 = vmul.f32 %v2183_v42, %v2183_v42 }
  0xf8   :  { %v2191_v46 = vpop.f32.mrb[3].mxu0  ;;  %v2193_v47 = vpop.f32.mrb[3].mxu1  ;;  %v701_v54 = vmul.f32 %v2187_v44, %v2187_v44 }
  0xf9   :  { %v629_v49 = vadd.f32 %v2191_v46, %v2183_v42  ;;  %v699_v50 = vmul.f32 %v2191_v46, %v2191_v46 }
  0xfb   :  { %v630_v52 = vadd.f32 %v2179_v40, %v629_v49  ;;  %v762_v53 = vadd.f32 %v699_v50, %v698_v48 }
  0xfd   :  { %v763_v55 = vadd.f32 %v762_v53, %v700_v51  ;;  %v2206_v56 = vpop.f32.mrb[4].mxu0  ;;  %v631_v57 = vadd.f32 %v2187_v44, %v630_v52  ;;  %v2209_v58 = vpop.f32.mrb[4].mxu1 }
  0xfe   :  { %v2211_v59 = vpop.f32.mrb[5].mxu0  ;;  %v2213_v60 = vpop.f32.mrb[5].mxu1  ;;  %v704_v7 = vmul.f32 %v2206_v56, %v2206_v56 }
  0xff   :  { %v632_v61 = vadd.f32 %v631_v57, %v2211_v59  ;;  %v702_v62 = vmul.f32 %v2211_v59, %v2211_v59  ;;  %v764_v63 = vadd.f32 %v763_v55, %v701_v54  ;;  %v2218_v0 = vpop.f32.mrb[6].mxu0  ;;  %v2220_v1 = vpop.f32.mrb[6].mxu1 }
 0x100   :  { %v2222_v2 = vpop.f32.mrb[7].mxu0  ;;  %v2224_v3 = vpop.f32.mrb[7].mxu1  ;;  %v705_v10 = vmul.f32 %v2218_v0, %v2218_v0 }
 0x101   :  { %v765_v4 = vadd.f32 %v764_v63, %v702_v62  ;;  %v633_v5 = vadd.f32 %v632_v61, %v2222_v2  ;;  %v703_v6 = vmul.f32 %v2222_v2, %v2222_v2 }
 0x103   :  { %v634_v8 = vadd.f32 %v2206_v56, %v633_v5  ;;  %v766_v9 = vadd.f32 %v765_v4, %v703_v6 }
 0x105   :  { %v767_v11 = vadd.f32 %v766_v9, %v704_v7  ;;  %v2234_v12 = vpop.f32.mrb[8].mxu0  ;;  %v635_v13 = vadd.f32 %v2218_v0, %v634_v8  ;;  %v2237_v14 = vpop.f32.mrb[8].mxu1 }
 0x106   :  { %v2239_v15 = vpop.f32.mrb[9].mxu0  ;;  %v2241_v16 = vpop.f32.mrb[9].mxu1  ;;  %v708_v27 = vmul.f32 %v2234_v12, %v2234_v12 }
 0x107   :  { %v636_v17 = vadd.f32 %v635_v13, %v2239_v15  ;;  %v706_v18 = vmul.f32 %v2239_v15, %v2239_v15  ;;  %v768_v19 = vadd.f32 %v767_v11, %v705_v10  ;;  %v2246_v20 = vpop.f32.mrb[10].mxu0  ;;  %v2248_v21 = vpop.f32.mrb[10].mxu1 }
 0x108   :  { %v2250_v22 = vpop.f32.mrb[11].mxu0  ;;  %v2252_v23 = vpop.f32.mrb[11].mxu1  ;;  %v709_v30 = vmul.f32 %v2246_v20, %v2246_v20 }
 0x109   :  { %v769_v24 = vadd.f32 %v768_v19, %v706_v18  ;;  %v637_v25 = vadd.f32 %v636_v17, %v2250_v22  ;;  %v707_v26 = vmul.f32 %v2250_v22, %v2250_v22 }
 0x10b   :  { %v638_v28 = vadd.f32 %v2234_v12, %v637_v25  ;;  %v770_v29 = vadd.f32 %v769_v24, %v707_v26 }
 0x10d   :  { %v771_v31 = vadd.f32 %v770_v29, %v708_v27  ;;  %v2262_v32 = vpop.f32.mrb[12].mxu0  ;;  %v639_v33 = vadd.f32 %v2246_v20, %v638_v28  ;;  %v2265_v34 = vpop.f32.mrb[12].mxu1 }
 0x10e   :  { %v2267_v35 = vpop.f32.mrb[13].mxu0  ;;  %v2269_v36 = vpop.f32.mrb[13].mxu1  ;;  %v712_v55 = vmul.f32 %v2262_v32, %v2262_v32 }
 0x10f   :  { %v640_v37 = vadd.f32 %v639_v33, %v2267_v35  ;;  %v710_v38 = vmul.f32 %v2267_v35, %v2267_v35  ;;  %v772_v39 = vadd.f32 %v771_v31, %v709_v30  ;;  %v2274_v48 = vpop.f32.mrb[14].mxu0  ;;  %v2276_v49 = vpop.f32.mrb[14].mxu1 }
 0x110   :  { %3834 = vst [vmem:[#allocation2_spill] sm:$0xff] %v2274_v48  ;;  %v2278_v50 = vpop.f32.mrb[15].mxu0  ;;  %v2280_v51 = vpop.f32.mrb[15].mxu1  ;;  %v713_v62 = vmul.f32 %v2274_v48, %v2274_v48 }
 0x111   :  { %v773_v52 = vadd.f32 %v772_v39, %v710_v38  ;;  %v641_v53 = vadd.f32 %v640_v37, %v2278_v50  ;;  %v711_v54 = vmul.f32 %v2278_v50, %v2278_v50 }
 0x113   :  { %v642_v57 = vadd.f32 %v2262_v32, %v641_v53  ;;  %v774_v61 = vadd.f32 %v773_v52, %v711_v54 }
 0x115   :  { %v775_v63 = vadd.f32 %v774_v61, %v712_v55  ;;  %v2290_v4 = vpop.f32.mrb[16].mxu0  ;;  %v643_v5 = vadd.f32 %v2274_v48, %v642_v57  ;;  %v2293_v6 = vpop.f32.mrb[16].mxu1  ;;  %v731_v48 = vmul.f32 %v2193_v47, %v2193_v47 }
 0x116   :  { %3835 = vst [vmem:[#allocation3_spill] sm:$0xff] %v2290_v4  ;;  %v2295_v7 = vpop.f32.mrb[17].mxu0  ;;  %v2297_v8 = vpop.f32.mrb[17].mxu1  ;;  %v716_v27 = vmul.f32 %v2290_v4, %v2290_v4 }
 0x117   :  { %3836 = vst [vmem:[#allocation4_spill] sm:$0xff] %v2295_v7  ;;  %v644_v9 = vadd.f32 %v643_v5, %v2295_v7  ;;  %v714_v10 = vmul.f32 %v2295_v7, %v2295_v7  ;;  %v776_v11 = vadd.f32 %v775_v63, %v713_v62  ;;  %v2302_v13 = vpop.f32.mrb[18].mxu0  ;;  %v2304_v17 = vpop.f32.mrb[18].mxu1 }
 0x118   :  { %3837 = vst [vmem:[#allocation5_spill] sm:$0xff] %v2302_v13  ;;  %v2306_v18 = vpop.f32.mrb[19].mxu0  ;;  %v2308_v19 = vpop.f32.mrb[19].mxu1  ;;  %v717_v30 = vmul.f32 %v2302_v13, %v2302_v13 }
 0x119   :  { %3838 = vst [vmem:[#allocation6_spill] sm:$0xff] %v2306_v18  ;;  %v777_v24 = vadd.f32 %v776_v11, %v714_v10  ;;  %v645_v25 = vadd.f32 %v644_v9, %v2306_v18  ;;  %v715_v26 = vmul.f32 %v2306_v18, %v2306_v18 }
 0x11b   :  { %v646_v28 = vadd.f32 %v2290_v4, %v645_v25  ;;  %v778_v29 = vadd.f32 %v777_v24, %v715_v26 }
 0x11d   :  { %v779_v31 = vadd.f32 %v778_v29, %v716_v27  ;;  %v2318_v33 = vpop.f32.mrb[20].mxu0  ;;  %v647_v37 = vadd.f32 %v2302_v13, %v646_v28  ;;  %v2321_v38 = vpop.f32.mrb[20].mxu1 }
 0x11e   :  { %3839 = vst [vmem:[#allocation7_spill] sm:$0xff] %v2318_v33  ;;  %3840 = vst [vmem:[#allocation8_spill] sm:$0xff] %v2321_v38  ;;  %v2323_v39 = vpop.f32.mrb[21].mxu0  ;;  %v2325_v52 = vpop.f32.mrb[21].mxu1  ;;  %v720_v11 = vmul.f32 %v2318_v33, %v2318_v33 }
 0x11f   :  { %3841 = vst [vmem:[#allocation9_spill] sm:$0xff] %v2323_v39  ;;  %v648_v53 = vadd.f32 %v647_v37, %v2323_v39  ;;  %v718_v54 = vmul.f32 %v2323_v39, %v2323_v39  ;;  %v780_v55 = vadd.f32 %v779_v31, %v717_v30  ;;  %v2330_v57 = vpop.f32.mrb[22].mxu0  ;;  %v2332_v61 = vpop.f32.mrb[22].mxu1 }
 0x120   :  { %3842 = vst [vmem:[#allocation10_spill] sm:$0xff] %v2330_v57  ;;  %3843 = vst [vmem:[#allocation11_spill] sm:$0xff] %v2332_v61  ;;  %v2334_v62 = vpop.f32.mrb[23].mxu0  ;;  %v2336_v63 = vpop.f32.mrb[23].mxu1  ;;  %v721_v26 = vmul.f32 %v2330_v57, %v2330_v57 }
 0x121   :  { %3844 = vst [vmem:[#allocation12_spill] sm:$0xff] %v2334_v62  ;;  %v781_v5 = vadd.f32 %v780_v55, %v718_v54  ;;  %v649_v9 = vadd.f32 %v648_v53, %v2334_v62  ;;  %v719_v10 = vmul.f32 %v2334_v62, %v2334_v62 }
 0x123   :  { %v650_v24 = vadd.f32 %v2318_v33, %v649_v9  ;;  %v782_v25 = vadd.f32 %v781_v5, %v719_v10 }
 0x125   :  { %v783_v27 = vadd.f32 %v782_v25, %v720_v11  ;;  %v2346_v28 = vpop.f32.mrb[24].mxu0  ;;  %v651_v29 = vadd.f32 %v2330_v57, %v650_v24  ;;  %v2349_v30 = vpop.f32.mrb[24].mxu1 }
 0x126   :  { %3845 = vst [vmem:[#allocation13_spill] sm:$0xff] %v2346_v28  ;;  %3846 = vst [vmem:[#allocation14_spill] sm:$0xff] %v2349_v30  ;;  %v2351_v31 = vpop.f32.mrb[25].mxu0  ;;  %v2353_v37 = vpop.f32.mrb[25].mxu1 }
 0x127   :  { %3847 = vst [vmem:[#allocation15_spill] sm:$0xff] %v2351_v31  ;;  %3848 = vst [vmem:[#allocation16_spill] sm:$0xff] %v2353_v37  ;;  %v652_v53 = vadd.f32 %v651_v29, %v2351_v31  ;;  %v722_v54 = vmul.f32 %v2351_v31, %v2351_v31  ;;  %v784_v55 = vadd.f32 %v783_v27, %v721_v26  ;;  %v2358_v5 = vpop.f32.mrb[26].mxu0  ;;  %v2360_v9 = vpop.f32.mrb[26].mxu1 }
 0x128   :  { %3849 = vst [vmem:[#allocation17_spill] sm:$0xff] %v2358_v5  ;;  %3850 = vst [vmem:[#allocation18_spill] sm:$0xff] %v2360_v9  ;;  %v2362_v10 = vpop.f32.mrb[27].mxu0  ;;  %v2364_v11 = vpop.f32.mrb[27].mxu1  ;;  %v724_v29 = vmul.f32 %v2346_v28, %v2346_v28  ;;  %v725_v27 = vmul.f32 %v2358_v5, %v2358_v5 }
 0x129   :  { %3851 = vst [vmem:[#allocation19_spill] sm:$0xff] %v2362_v10  ;;  %3852 = vst [vmem:[#allocation20_spill] sm:$0xff] %v2364_v11  ;;  %v785_v24 = vadd.f32 %v784_v55, %v722_v54  ;;  %v653_v25 = vadd.f32 %v652_v53, %v2362_v10  ;;  %v723_v57 = vmul.f32 %v2362_v10, %v2362_v10 }
 0x12b   :  { %v654_v31 = vadd.f32 %v2346_v28, %v653_v25  ;;  %v786_v26 = vadd.f32 %v785_v24, %v723_v57 }
 0x12d   :  { %v787_v33 = vadd.f32 %v786_v26, %v724_v29  ;;  %v2374_v62 = vpop.f32.mrb[28].mxu0  ;;  %v655_v39 = vadd.f32 %v2358_v5, %v654_v31  ;;  %v2377_v54 = vpop.f32.mrb[28].mxu1 }
 0x12e   :  { %3853 = vst [vmem:[#allocation21_spill] sm:$0xff] %v2377_v54  ;;  %v2379_v53 = vpop.f32.mrb[29].mxu0  ;;  %v2381_v55 = vpop.f32.mrb[29].mxu1 }
 0x12f   :  { %3854 = vst [vmem:[#allocation22_spill] sm:$0xff] %v2379_v53  ;;  %3855 = vst [vmem:[#allocation23_spill] sm:$0xff] %v2381_v55  ;;  %v656_v10 = vadd.f32 %v655_v39, %v2379_v53  ;;  %v726_v25 = vmul.f32 %v2379_v53, %v2379_v53  ;;  %v788_v57 = vadd.f32 %v787_v33, %v725_v27  ;;  %v2386_v24 = vpop.f32.mrb[30].mxu0  ;;  %v2388_v28 = vpop.f32.mrb[30].mxu1 }
 0x130   :  { %v2390_v29 = vpop.f32.mrb[31].mxu0  ;;  %v2392_v26 = vpop.f32.mrb[31].mxu1  ;;  %v728_v39 = vmul.f32 %v2374_v62, %v2374_v62  ;;  %v729_v27 = vmul.f32 %v2386_v24, %v2386_v24 }
 0x131   :  { %3856 = vst [vmem:[#allocation24_spill] sm:$0xff] %v2390_v29  ;;  %3857 = vst [vmem:[#allocation25_spill] sm:$0xff] %v2392_v26  ;;  %v789_v31 = vadd.f32 %v788_v57, %v726_v25  ;;  %v657_v5 = vadd.f32 %v656_v10, %v2390_v29  ;;  %v727_v13 = vmul.f32 %v2390_v29, %v2390_v29 }
 0x132   :  { %v730_v25 = vmul.f32 %v2185_v43, %v2185_v43 }
 0x133   :  { %v658_v53 = vadd.f32 %v2374_v62, %v657_v5  ;;  %v790_v33 = vadd.f32 %v789_v31, %v727_v13  ;;  %v732_v13 = vmul.f32 %v2181_v41, %v2181_v41 }
 0x135   :  { %v791_v4 = vadd.f32 %v790_v33, %v728_v39  ;;  %v659_v18 = vadd.f32 %v2386_v24, %v658_v53  ;;  %v733_v53 = vmul.f32 %v2189_v45, %v2189_v45 }
 0x137   :  { %v660_v10 = vadd.f32 %v659_v18, %v2185_v43  ;;  %v792_v57 = vadd.f32 %v791_v4, %v729_v27  ;;  %v734_v4 = vmul.f32 %v2213_v60, %v2213_v60 }
 0x139   :  { %v793_v7 = vadd.f32 %v792_v57, %v730_v25  ;;  %v661_v29 = vadd.f32 %v660_v10, %v2193_v47  ;;  %v735_v57 = vmul.f32 %v2224_v3, %v2224_v3 }
 0x13b   :  { %v662_v5 = vadd.f32 %v2181_v41, %v661_v29  ;;  %v794_v31 = vadd.f32 %v793_v7, %v731_v48  ;;  %v736_v48 = vmul.f32 %v2209_v58, %v2209_v58 }
 0x13d   :  { %v795_v39 = vadd.f32 %v794_v31, %v732_v13  ;;  %v663_v33 = vadd.f32 %v2189_v45, %v662_v5  ;;  %v737_v13 = vmul.f32 %v2220_v1, %v2220_v1 }
 0x13f   :  { %v664_v18 = vadd.f32 %v663_v33, %v2213_v60  ;;  %v796_v27 = vadd.f32 %v795_v39, %v733_v53  ;;  %v738_v53 = vmul.f32 %v2241_v16, %v2241_v16 }
 0x141   :  { %v797_v25 = vadd.f32 %v796_v27, %v734_v4  ;;  %v665_v10 = vadd.f32 %v664_v18, %v2224_v3  ;;  %v739_v27 = vmul.f32 %v2252_v23, %v2252_v23 }
 0x143   :  { %v666_v7 = vadd.f32 %v2209_v58, %v665_v10  ;;  %v798_v29 = vadd.f32 %v797_v25, %v735_v57  ;;  %v740_v25 = vmul.f32 %v2237_v14, %v2237_v14 }
 0x145   :  { %v799_v5 = vadd.f32 %v798_v29, %v736_v48  ;;  %v667_v31 = vadd.f32 %v2220_v1, %v666_v7  ;;  %v741_v48 = vmul.f32 %v2248_v21, %v2248_v21 }
 0x147   :  { %v668_v39 = vadd.f32 %v667_v31, %v2241_v16  ;;  %v800_v33 = vadd.f32 %v799_v5, %v737_v13  ;;  %v742_v13 = vmul.f32 %v2269_v36, %v2269_v36 }
 0x149   :  { %v801_v4 = vadd.f32 %v800_v33, %v738_v53  ;;  %v669_v18 = vadd.f32 %v668_v39, %v2252_v23  ;;  %v743_v33 = vmul.f32 %v2280_v51, %v2280_v51 }
 0x14b   :  { %v670_v10 = vadd.f32 %v2237_v14, %v669_v18  ;;  %v802_v57 = vadd.f32 %v801_v4, %v739_v27  ;;  %v744_v4 = vmul.f32 %v2265_v34, %v2265_v34 }
 0x14d   :  { %v803_v7 = vadd.f32 %v802_v57, %v740_v25  ;;  %v671_v29 = vadd.f32 %v2248_v21, %v670_v10  ;;  %v745_v25 = vmul.f32 %v2276_v49, %v2276_v49 }
 0x14f   :  { %v672_v5 = vadd.f32 %v671_v29, %v2269_v36  ;;  %v804_v31 = vadd.f32 %v803_v7, %v741_v48  ;;  %v746_v48 = vmul.f32 %v2297_v8, %v2297_v8 }
 0x151   :  { %v805_v53 = vadd.f32 %v804_v31, %v742_v13  ;;  %v673_v39 = vadd.f32 %v672_v5, %v2280_v51  ;;  %v747_v31 = vmul.f32 %v2308_v19, %v2308_v19 }
 0x153   :  { %v674_v18 = vadd.f32 %v2265_v34, %v673_v39  ;;  %v806_v27 = vadd.f32 %v805_v53, %v743_v33  ;;  %v748_v53 = vmul.f32 %v2293_v6, %v2293_v6 }
 0x155   :  { %v807_v10 = vadd.f32 %v806_v27, %v744_v4  ;;  %v675_v57 = vadd.f32 %v2276_v49, %v674_v18  ;;  %v749_v4 = vmul.f32 %v2304_v17, %v2304_v17 }
 0x157   :  { %v676_v7 = vadd.f32 %v675_v57, %v2297_v8  ;;  %v808_v29 = vadd.f32 %v807_v10, %v745_v25  ;;  %v750_v25 = vmul.f32 %v2325_v52, %v2325_v52 }
 0x159   :  { %v809_v13 = vadd.f32 %v808_v29, %v746_v48  ;;  %v677_v5 = vadd.f32 %v676_v7, %v2308_v19  ;;  %v751_v29 = vmul.f32 %v2336_v63, %v2336_v63 }
 0x15b   :  { %v678_v39 = vadd.f32 %v2293_v6, %v677_v5  ;;  %v810_v33 = vadd.f32 %v809_v13, %v747_v31  ;;  %v752_v13 = vmul.f32 %v2321_v38, %v2321_v38 }
 0x15d   :  { %v811_v18 = vadd.f32 %v810_v33, %v748_v53  ;;  %v679_v27 = vadd.f32 %v2304_v17, %v678_v39  ;;  %v753_v53 = vmul.f32 %v2332_v61, %v2332_v61 }
 0x15f   :  { %v680_v10 = vadd.f32 %v679_v27, %v2325_v52  ;;  %v812_v57 = vadd.f32 %v811_v18, %v749_v4  ;;  %v754_v4 = vmul.f32 %v2353_v37, %v2353_v37 }
 0x161   :  { %v813_v48 = vadd.f32 %v812_v57, %v750_v25  ;;  %v681_v7 = vadd.f32 %v680_v10, %v2336_v63  ;;  %v755_v57 = vmul.f32 %v2364_v11, %v2364_v11 }
 0x163   :  { %v682_v5 = vadd.f32 %v2321_v38, %v681_v7  ;;  %v814_v31 = vadd.f32 %v813_v48, %v751_v29  ;;  %v756_v48 = vmul.f32 %v2349_v30, %v2349_v30 }
 0x165   :  { %v815_v39 = vadd.f32 %v814_v31, %v752_v13  ;;  %v683_v33 = vadd.f32 %v2332_v61, %v682_v5  ;;  %v757_v13 = vmul.f32 %v2360_v9, %v2360_v9 }
 0x167   :  { %v684_v18 = vadd.f32 %v683_v33, %v2353_v37  ;;  %v816_v27 = vadd.f32 %v815_v39, %v753_v53  ;;  %v758_v53 = vmul.f32 %v2381_v55, %v2381_v55 }
 0x169   :  { %v817_v25 = vadd.f32 %v816_v27, %v754_v4  ;;  %v685_v10 = vadd.f32 %v684_v18, %v2364_v11  ;;  %v759_v27 = vmul.f32 %v2392_v26, %v2392_v26 }
 0x16b   :  { %v686_v7 = vadd.f32 %v2349_v30, %v685_v10  ;;  %v818_v29 = vadd.f32 %v817_v25, %v755_v57  ;;  %v760_v25 = vmul.f32 %v2377_v54, %v2377_v54 }
 0x16d   :  { %v819_v5 = vadd.f32 %v818_v29, %v756_v48  ;;  %v687_v31 = vadd.f32 %v2360_v9, %v686_v7  ;;  %v761_v48 = vmul.f32 %v2388_v28, %v2388_v28 }
 0x16f   :  { %v688_v39 = vadd.f32 %v687_v31, %v2381_v55  ;;  %v820_v33 = vadd.f32 %v819_v5, %v757_v13 }
 0x171   :  { %v821_v4 = vadd.f32 %v820_v33, %v758_v53  ;;  %v689_v18 = vadd.f32 %v688_v39, %v2392_v26 }
 0x173   :  { %v690_v10 = vadd.f32 %v2377_v54, %v689_v18  ;;  %v822_v57 = vadd.f32 %v821_v4, %v759_v27 }
 0x175   :  { %v691_v7 = vadd.f32 %v2388_v28, %v690_v10  ;;  %v823_v29 = vadd.f32 %v822_v57, %v760_v25  ;;  %v842_v25 = vlaneseq }
 0x177   :  { %v692_v31 = vrot.slane %v691_v7, 4  ;;  %v824_v13 = vadd.f32 %v823_v29, %v761_v48  ;;  %v2499_v57 = vshrl.u32 %v842_v25, 7  ;;  %v627_v48 = vld [vmem:[%s3776_s2] sm:$0x1]  ;;  %v3865_v25 = vld [vmem:[#allocation7_spill] sm:$0xff] }
 0x179   :  { %v693_v5 = vadd.f32 %v692_v31, %v691_v7  ;;  %v825_v53 = vrot.slane %v824_v13, 4  ;;  %v3803_v7 = vsub.s32 0, %v2499_v57 }
 0x17b   :  { %v694_v39 = vrot.slane %v693_v5, 2  ;;  %v826_v33 = vadd.f32 %v825_v53, %v824_v13  ;;  %v3858_v13 = vld [vmem:[#allocation2_spill] sm:$0xff] }
 0x17c   :  { %v3860_v53 = vld [vmem:[#allocation6_spill] sm:$0xff] }
 0x17d   :  { %v695_v55 = vadd.f32 %v694_v39, %v693_v5  ;;  %v827_v26 = vrot.slane %v826_v33, 2  ;;  %v3859_v5 = vld [vmem:[#allocation4_spill] sm:$0xff]  ;;  %v3861_v39 = vld [vmem:[#allocation3_spill] sm:$0xff] }
 0x17f   :  { %v696_v9 = vrot.slane %v695_v55, 1  ;;  %v828_v30 = vadd.f32 %v827_v26, %v826_v33  ;;  %v3862_v33 = vld [vmem:[#allocation5_spill] sm:$0xff] }
 0x181   :  { %v697_v11 = vadd.f32 %v696_v9, %v695_v55  ;;  %v829_v37 = vrot.slane %v828_v30, 1 }
 0x183   :  { %v830_v18 = vadd.f32 %v829_v37, %v828_v30  ;;  %v831_v4 = vmul.f32 0.001953125, %v697_v11  ;;  %v2508_v30 = vld [vmem:[%s3777_s3] sm:$0x1] }
 0x185   :  { %v832_v27 = vmul.f32 0.001953125, %v830_v18  ;;  %v833_v54 = vmul.f32 %v831_v4, %v831_v4  ;;  %v3863_v18 = vld [vmem:[#allocation9_spill] sm:$0xff] }
 0x187   :  { %v834_v61 = vsub.f32 %v832_v27, %v833_v54  ;;  %v3864_v27 = vld [vmem:[#allocation12_spill] sm:$0xff] }
 0x189   :  { %v835_v38 = vmax.f32 %v834_v61, 0.0  ;;  %v3871_v61 = vld [vmem:[#allocation22_spill] sm:$0xff] }
 0x18b   :  { %v836_v10 = vadd.f32 1e-05, %v835_v38 }
 0x18d   :  { %2032 = vrsqrt.f32 %v836_v10 }
 0x197   :  { %v2033_v26 = vpop.eup %2032 }
 0x198   :  { %v838_v9 = vmul.f32 %v2033_v26, %v627_v48  ;;  %v3866_v26 = vld [vmem:[#allocation10_spill] sm:$0xff] }
 0x19a   :  { %v2510_v37 = vmul.f32 %v838_v9, %v831_v4  ;;  %v2514_v38 = vrot.slane %v838_v9, %v3803_v7  ;;  %v3872_v7 = vld [vmem:[#allocation24_spill] sm:$0xff] }
 0x19c   :  { %v2520_v11 = vmul.f32 %v2514_v38, %v2183_v42  ;;  %v2524_v54 = vmul.f32 %v2514_v38, %v2191_v46  ;;  %v2528_v55 = vmul.f32 %v2179_v40, %v2514_v38  ;;  %v2532_v29 = vmul.f32 %v2187_v44, %v2514_v38 }
 0x19d   :  { %v2536_v31 = vmul.f32 %v2514_v38, %v2211_v59  ;;  %v2540_v42 = vmul.f32 %v2514_v38, %v2222_v2  ;;  %v2544_v46 = vmul.f32 %v2206_v56, %v2514_v38  ;;  %v2548_v40 = vmul.f32 %v2218_v0, %v2514_v38 }
 0x19e   :  { %v2552_v44 = vmul.f32 %v2514_v38, %v2239_v15  ;;  %v2556_v59 = vmul.f32 %v2514_v38, %v2250_v22  ;;  %v2560_v2 = vmul.f32 %v2234_v12, %v2514_v38  ;;  %v2564_v56 = vmul.f32 %v2246_v20, %v2514_v38 }
 0x19f   :  { %v2568_v0 = vmul.f32 %v2514_v38, %v2267_v35  ;;  %v2572_v15 = vmul.f32 %v2514_v38, %v2278_v50  ;;  %v2576_v22 = vmul.f32 %v2262_v32, %v2514_v38  ;;  %v2580_v12 = vmul.f32 %v3858_v13, %v2514_v38  ;;  %v3867_v13 = vld [vmem:[#allocation15_spill] sm:$0xff] }
 0x1a0   :  { %v2584_v20 = vmul.f32 %v2514_v38, %v3859_v5  ;;  %v2588_v35 = vmul.f32 %v2514_v38, %v3860_v53  ;;  %v2592_v50 = vmul.f32 %v3861_v39, %v2514_v38  ;;  %v2596_v32 = vmul.f32 %v3862_v33, %v2514_v38  ;;  %v3868_v53 = vld [vmem:[#allocation19_spill] sm:$0xff]  ;;  %v3869_v33 = vld [vmem:[#allocation13_spill] sm:$0xff] }
 0x1a1   :  { %v2600_v4 = vmul.f32 %v2514_v38, %v3863_v18  ;;  %v2604_v10 = vmul.f32 %v2514_v38, %v3864_v27  ;;  %v2608_v48 = vmul.f32 %v3865_v25, %v2514_v38  ;;  %v2612_v9 = vmul.f32 %v3866_v26, %v2514_v38  ;;  %v3870_v27 = vld [vmem:[#allocation17_spill] sm:$0xff] }
 0x1a2   :  { %v2616_v5 = vmul.f32 %v2514_v38, %v3867_v13  ;;  %v2620_v39 = vmul.f32 %v2514_v38, %v3868_v53  ;;  %v2624_v18 = vmul.f32 %v3869_v33, %v2514_v38  ;;  %v2628_v25 = vmul.f32 %v3870_v27, %v2514_v38 }
 0x1a3   :  { %v2632_v26 = vmul.f32 %v2514_v38, %v3871_v61  ;;  %v2636_v13 = vmul.f32 %v2514_v38, %v3872_v7  ;;  %v2640_v53 = vmul.f32 %v2374_v62, %v2514_v38  ;;  %v2644_v33 = vmul.f32 %v2386_v24, %v2514_v38 }
 0x1a4   :  { %v2648_v27 = vmul.f32 %v2514_v38, %v2185_v43  ;;  %v2652_v61 = vmul.f32 %v2514_v38, %v2193_v47  ;;  %v2656_v7 = vmul.f32 %v2181_v41, %v2514_v38  ;;  %v2660_v62 = vmul.f32 %v2189_v45, %v2514_v38 }
 0x1a5   :  { %v2664_v24 = vmul.f32 %v2514_v38, %v2213_v60  ;;  %v2668_v43 = vmul.f32 %v2514_v38, %v2224_v3  ;;  %v2672_v47 = vmul.f32 %v2209_v58, %v2514_v38  ;;  %v2676_v41 = vmul.f32 %v2220_v1, %v2514_v38 }
 0x1a6   :  { %v2680_v45 = vmul.f32 %v2514_v38, %v2241_v16  ;;  %v2684_v60 = vmul.f32 %v2514_v38, %v2252_v23  ;;  %v2688_v3 = vmul.f32 %v2237_v14, %v2514_v38  ;;  %v2692_v58 = vmul.f32 %v2248_v21, %v2514_v38 }
 0x1a7   :  { %v2696_v1 = vmul.f32 %v2514_v38, %v2269_v36  ;;  %v2700_v16 = vmul.f32 %v2514_v38, %v2280_v51  ;;  %v2704_v23 = vmul.f32 %v2265_v34, %v2514_v38  ;;  %v2708_v14 = vmul.f32 %v2276_v49, %v2514_v38 }
 0x1a8   :  { %v2712_v21 = vmul.f32 %v2514_v38, %v2297_v8  ;;  %v2716_v36 = vmul.f32 %v2514_v38, %v2308_v19  ;;  %v2720_v51 = vmul.f32 %v2293_v6, %v2514_v38  ;;  %v2724_v34 = vmul.f32 %v2304_v17, %v2514_v38 }
 0x1a9   :  { %v2728_v49 = vmul.f32 %v2514_v38, %v2325_v52  ;;  %v2732_v8 = vmul.f32 %v2514_v38, %v2336_v63 }
 0x1aa   :  { %3873 = vst [vmem:[#allocation2_spill] sm:$0xff] %v2712_v21  ;;  %3874 = vst [vmem:[#allocation4_spill] sm:$0xff] %v2716_v36  ;;  %v3879_v21 = vld [vmem:[#allocation8_spill] sm:$0xff]  ;;  %v3881_v36 = vld [vmem:[#allocation11_spill] sm:$0xff] }
 0x1ab   :  { %3875 = vst [vmem:[#allocation6_spill] sm:$0xff] %v2720_v51  ;;  %3876 = vst [vmem:[#allocation3_spill] sm:$0xff] %v2724_v34  ;;  %v2736_v19 = vmul.f32 %v3879_v21, %v2514_v38  ;;  %v2740_v6 = vmul.f32 %v3881_v36, %v2514_v38  ;;  %v3883_v51 = vld [vmem:[#allocation16_spill] sm:$0xff] }
 0x1ac   :  { %3877 = vst [vmem:[#allocation5_spill] sm:$0xff] %v2728_v49  ;;  %3878 = vst [vmem:[#allocation9_spill] sm:$0xff] %v2732_v8  ;;  %v2744_v17 = vmul.f32 %v2514_v38, %v3883_v51  ;;  %v3885_v34 = vld [vmem:[#allocation20_spill] sm:$0xff]  ;;  %v3886_v49 = vld [vmem:[#allocation14_spill] sm:$0xff] }
 0x1ad   :  { %3880 = vst [vmem:[#allocation12_spill] sm:$0xff] %v2736_v19  ;;  %3882 = vst [vmem:[#allocation7_spill] sm:$0xff] %v2740_v6  ;;  %v2748_v52 = vmul.f32 %v2514_v38, %v3885_v34  ;;  %v2752_v63 = vmul.f32 %v3886_v49, %v2514_v38  ;;  %v3888_v8 = vld [vmem:[#allocation18_spill] sm:$0xff]  ;;  %v3890_v19 = vld [vmem:[#allocation23_spill] sm:$0xff]  ;;  %v2772_v49 = vmul.f32 %v2388_v28, %v2514_v38 }
 0x1ae   :  { %3884 = vst [vmem:[#allocation10_spill] sm:$0xff] %v2744_v17  ;;  %v2756_v21 = vmul.f32 %v3888_v8, %v2514_v38  ;;  %v2760_v36 = vmul.f32 %v2514_v38, %v3890_v19  ;;  %v3891_v6 = vld [vmem:[#allocation25_spill] sm:$0xff]  ;;  %v3894_v8 = vsub.f32 %v2508_v30, %v2510_v37 }
 0x1af   :  { %3887 = vst [vmem:[#allocation15_spill] sm:$0xff] %v2752_v63  ;;  %v2764_v51 = vmul.f32 %v2514_v38, %v3891_v6  ;;  %v3892_v17 = vld [vmem:[#allocation21_spill] sm:$0xff]  ;;  %v3893_v63 = vsub.s32 0, %v2499_v57 }
 0x1b0   :  { %3889 = vst [vmem:[#allocation19_spill] sm:$0xff] %v2756_v21  ;;  %v2768_v34 = vmul.f32 %v3892_v17, %v2514_v38 }
 0x1b1   :  { %v2779_v21 = vrot.slane %v3894_v8, %v3893_v63 }
 0x1b2   :  { %v3902_v63 = vld [vmem:[#allocation3_spill] sm:$0xff] }
 0x1b3   :  { %v2783_v19 = vadd.f32 %v2779_v21, %v2520_v11  ;;  %v2787_v6 = vadd.f32 %v2779_v21, %v2524_v54  ;;  %v2791_v17 = vadd.f32 %v2779_v21, %v2528_v55  ;;  %v2795_v28 = vadd.f32 %v2779_v21, %v2532_v29  ;;  %v3904_v8 = vld [vmem:[#allocation5_spill] sm:$0xff] }
 0x1b4   :  { %v2799_v57 = vadd.f32 %v2779_v21, %v2536_v31  ;;  %v2803_v30 = vadd.f32 %v2779_v21, %v2540_v42  ;;  %v2807_v37 = vadd.f32 %v2779_v21, %v2544_v46  ;;  %v2811_v38 = vadd.f32 %v2779_v21, %v2548_v40 }
 0x1b5   :  { %v2815_v11 = vadd.f32 %v2779_v21, %v2552_v44  ;;  %v2819_v54 = vadd.f32 %v2779_v21, %v2556_v59  ;;  %v2823_v55 = vadd.f32 %v2779_v21, %v2560_v2  ;;  %v2827_v29 = vadd.f32 %v2779_v21, %v2564_v56 }
 0x1b6   :  { %v2831_v31 = vadd.f32 %v2779_v21, %v2568_v0  ;;  %v2835_v42 = vadd.f32 %v2779_v21, %v2572_v15  ;;  %v2839_v46 = vadd.f32 %v2779_v21, %v2576_v22  ;;  %v2843_v40 = vadd.f32 %v2779_v21, %v2580_v12 }
 0x1b7   :  { %v2847_v44 = vadd.f32 %v2779_v21, %v2584_v20  ;;  %v2851_v59 = vadd.f32 %v2779_v21, %v2588_v35  ;;  %v2855_v2 = vadd.f32 %v2779_v21, %v2592_v50  ;;  %v2859_v56 = vadd.f32 %v2779_v21, %v2596_v32 }
 0x1b8   :  { %v2863_v0 = vadd.f32 %v2779_v21, %v2600_v4  ;;  %v2867_v15 = vadd.f32 %v2779_v21, %v2604_v10  ;;  %v2871_v22 = vadd.f32 %v2779_v21, %v2608_v48  ;;  %v2875_v12 = vadd.f32 %v2779_v21, %v2612_v9 }
 0x1b9   :  { %v2879_v20 = vadd.f32 %v2779_v21, %v2616_v5  ;;  %v2883_v35 = vadd.f32 %v2779_v21, %v2620_v39  ;;  %v2887_v50 = vadd.f32 %v2779_v21, %v2624_v18  ;;  %v2891_v32 = vadd.f32 %v2779_v21, %v2628_v25 }
 0x1ba   :  { %v2895_v4 = vadd.f32 %v2779_v21, %v2632_v26  ;;  %v2899_v10 = vadd.f32 %v2779_v21, %v2636_v13  ;;  %v2903_v48 = vadd.f32 %v2779_v21, %v2640_v53  ;;  %v2907_v9 = vadd.f32 %v2779_v21, %v2644_v33 }
 0x1bb   :  { %v2911_v5 = vadd.f32 %v2779_v21, %v2648_v27  ;;  %v2915_v39 = vadd.f32 %v2779_v21, %v2652_v61  ;;  %v2919_v18 = vadd.f32 %v2779_v21, %v2656_v7  ;;  %v2923_v25 = vadd.f32 %v2779_v21, %v2660_v62 }
 0x1bc   :  { %v2927_v26 = vadd.f32 %v2779_v21, %v2664_v24  ;;  %v2931_v13 = vadd.f32 %v2779_v21, %v2668_v43  ;;  %v2935_v53 = vadd.f32 %v2779_v21, %v2672_v47  ;;  %v2939_v33 = vadd.f32 %v2779_v21, %v2676_v41 }
 0x1bd   :  { %v2943_v27 = vadd.f32 %v2779_v21, %v2680_v45  ;;  %v2947_v61 = vadd.f32 %v2779_v21, %v2684_v60  ;;  %v2951_v7 = vadd.f32 %v2779_v21, %v2688_v3  ;;  %v2955_v62 = vadd.f32 %v2779_v21, %v2692_v58  ;;  %v3896_v45 = vld [vmem:[#allocation2_spill] sm:$0xff]  ;;  %v3898_v3 = vld [vmem:[#allocation4_spill] sm:$0xff] }
 0x1be   :  { %v2959_v24 = vadd.f32 %v2779_v21, %v2696_v1  ;;  %v2963_v43 = vadd.f32 %v2779_v21, %v2700_v16  ;;  %v2967_v47 = vadd.f32 %v2779_v21, %v2704_v23  ;;  %v2971_v41 = vadd.f32 %v2779_v21, %v2708_v14  ;;  %v3900_v1 = vld [vmem:[#allocation6_spill] sm:$0xff] }
 0x1bf   :  { %v2975_v60 = vadd.f32 %v2779_v21, %v3896_v45  ;;  %v2979_v58 = vadd.f32 %v2779_v21, %v3898_v3  ;;  %v2983_v16 = vadd.f32 %v2779_v21, %v3900_v1  ;;  %v2987_v23 = vadd.f32 %v2779_v21, %v3902_v63 }
 0x1c0   :  { %3895 = vst [vmem:[#allocation13_spill] sm:$0xff] %v2971_v41  ;;  %v2991_v14 = vadd.f32 %v2779_v21, %v3904_v8  ;;  %v3906_v41 = vld [vmem:[#allocation9_spill] sm:$0xff]  ;;  %v3011_v8 = vadd.f32 %v2779_v21, %v2748_v52  ;;  %v3031_v52 = vadd.f32 %v2779_v21, %v2768_v34  ;;  %vm981_vm0 = vcmp.gt.f32.partialorder %v2783_v19, 0.0 }
 0x1c1   :  { %3897 = vst [vmem:[#allocation17_spill] sm:$0xff] %v2975_v60  ;;  %3899 = vst [vmem:[#allocation22_spill] sm:$0xff] %v2979_v58  ;;  %v2995_v45 = vadd.f32 %v2779_v21, %v3906_v41  ;;  %v3908_v60 = vld [vmem:[#allocation12_spill] sm:$0xff]  ;;  %v3910_v58 = vld [vmem:[#allocation7_spill] sm:$0xff]  ;;  %vm982_vm1 = vcmp.gt.f32.partialorder %v2787_v6, 0.0  ;;  %vm983_vm2 = vcmp.gt.f32.partialorder %v2791_v17, 0.0 }
 0x1c2   :  { %3901 = vst [vmem:[#allocation24_spill] sm:$0xff] %v2983_v16  ;;  %3903 = vst [vmem:[#allocation8_spill] sm:$0xff] %v2987_v23  ;;  %v2999_v3 = vadd.f32 %v2779_v21, %v3908_v60  ;;  %v3003_v1 = vadd.f32 %v2779_v21, %v3910_v58  ;;  %v3912_v16 = vld [vmem:[#allocation10_spill] sm:$0xff]  ;;  %v3023_v58 = vadd.f32 %v2779_v21, %v2760_v36  ;;  %vm984_vm3 = vcmp.gt.f32.partialorder %v2795_v28, 0.0 }
 0x1c3   :  { %3905 = vst [vmem:[#allocation11_spill] sm:$0xff] %v2991_v14  ;;  %3907 = vst [vmem:[#allocation16_spill] sm:$0xff] %v2995_v45  ;;  %v3007_v63 = vadd.f32 %v2779_v21, %v3912_v16  ;;  %v3915_v14 = vld [vmem:[#allocation15_spill] sm:$0xff]  ;;  %v3027_v16 = vadd.f32 %v2779_v21, %v2764_v51  ;;  %vm985_vm4 = vcmp.gt.f32.partialorder %v2799_v57, 0.0  ;;  %vm986_vm5 = vcmp.gt.f32.partialorder %v2803_v30, 0.0 }
 0x1c4   :  { %3909 = vst [vmem:[#allocation20_spill] sm:$0xff] %v2999_v3  ;;  %3911 = vst [vmem:[#allocation14_spill] sm:$0xff] %v3003_v1  ;;  %v3015_v41 = vadd.f32 %v2779_v21, %v3915_v14  ;;  %v3917_v45 = vld [vmem:[#allocation19_spill] sm:$0xff]  ;;  %v3035_v14 = vadd.f32 %v2779_v21, %v2772_v49  ;;  %vm987_vm6 = vcmp.gt.f32.partialorder %v2807_v37, 0.0  ;;  %vm988_vm7 = vcmp.gt.f32.partialorder %v2811_v38, 0.0 }
 0x1c5   :  { %3913 = vst [vmem:[#allocation18_spill] sm:$0xff] %v3007_v63  ;;  %3914 = vst [vmem:[#allocation23_spill] sm:$0xff] %v3011_v8  ;;  %v3019_v60 = vadd.f32 %v2779_v21, %v3917_v45  ;;  %vm989_vm8 = vcmp.gt.f32.partialorder %v2815_v11, 0.0  ;;  %vm990_vm9 = vcmp.gt.f32.partialorder %v2819_v54, 0.0  ;;  %v1045_v21 = vmul.f32 0.2, %v2783_v19 }
 0x1c6   :  { %3916 = vst [vmem:[#allocation25_spill] sm:$0xff] %v3015_v41  ;;  %3919 = vst [vmem:[#allocation2_spill] sm:$0xff] %v3023_v58  ;;  %v1046_v36 = vmul.f32 0.2, %v2787_v6  ;;  %v1047_v51 = vmul.f32 0.2, %v2791_v17 }
 0x1c7   :  { %3918 = vst [vmem:[#allocation21_spill] sm:$0xff] %v3019_v60  ;;  %3920 = vst [vmem:[#allocation4_spill] sm:$0xff] %v3027_v16  ;;  %vm991_vm10 = vcmp.gt.f32.partialorder %v2823_v55, 0.0  ;;  %v1048_v34 = vmul.f32 0.2, %v2795_v28  ;;  %vm992_vm11 = vcmp.gt.f32.partialorder %v2827_v29, 0.0  ;;  %v3061_v58 = vsel %vm981_vm0, %v2783_v19, %v1045_v21 }
 0x1c8   :  { %3921 = vst [vmem:[#allocation6_spill] sm:$0xff] %v3031_v52  ;;  %3922 = vst [vmem:[#allocation3_spill] sm:$0xff] %v3035_v14  ;;  %v1049_v49 = vmul.f32 0.2, %v2799_v57  ;;  %v1050_v45 = vmul.f32 0.2, %v2803_v30  ;;  %v3072_v63 = vsel %vm982_vm1, %v2787_v6, %v1046_v36 }
 0x1c9   :  { %v1051_v14 = vmul.f32 0.2, %v2807_v37  ;;  %v1052_v52 = vmul.f32 0.2, %v2811_v38  ;;  %v1053_v16 = vmul.f32 0.2, %v2815_v11  ;;  %v3102_v3 = vsel %vm984_vm3, %v2795_v28, %v1048_v34 }
 0x1ca   :  { %3923 = vst [vmem:[#allocation5_spill] sm:$0xff] %v3061_v58  ;;  %vm993_vm12 = vcmp.gt.f32.partialorder %v2831_v31, 0.0  ;;  %v1054_v60 = vmul.f32 0.2, %v2819_v54  ;;  %v1055_v41 = vmul.f32 0.2, %v2823_v55  ;;  %v3087_v58 = vsel %vm983_vm2, %v2791_v17, %v1047_v51 }
 0x1cb   :  { %v3067_v8 = vmul.f32 0.2, %v2827_v29  ;;  %3924 = vst [vmem:[#allocation9_spill] sm:$0xff] %v3072_v63  ;;  %vm994_vm13 = vcmp.gt.f32.partialorder %v2835_v42, 0.0  ;;  %v3076_v1 = vmul.f32 0.2, %v2831_v31 }
 0x1cc   :  { %v3079_v19 = vmul.f32 0.2, %v2835_v42  ;;  %v3082_v21 = vmul.f32 0.2, %v2839_v46  ;;  %3925 = vst [vmem:[#allocation12_spill] sm:$0xff] %v3087_v58  ;;  %vm995_vm14 = vcmp.gt.f32.partialorder %v2839_v46, 0.0 }
 0x1cd   :  { %v3091_v6 = vmul.f32 0.2, %v2843_v40  ;;  %v3094_v36 = vmul.f32 0.2, %v2847_v44  ;;  %v3097_v63 = vmul.f32 0.2, %v2851_v59 }
 0x1ce   :  { %3927 = vst [vmem:[#allocation10_spill] sm:$0xff] %v3102_v3  ;;  %vm996_vm15 = vcmp.gt.f32.partialorder %v2843_v40, 0.0  ;;  %v3106_v17 = vmul.f32 0.2, %v2855_v2  ;;  %v3109_v51 = vmul.f32 0.2, %v2859_v56 }
 0x1cf   :  { %3926 = vst [vmem:[#allocation7_spill] sm:$0xff] %v3097_v63  ;;  %v3112_v58 = vmul.f32 0.2, %v2863_v0  ;;  %v3117_v63 = vsel %vm985_vm4, %v2799_v57, %v1049_v49  ;;  %vm997_vm0 = vcmp.gt.f32.partialorder %v2847_v44, 0.0  ;;  %v3121_v28 = vmul.f32 0.2, %v2867_v15 }
 0x1d0   :  { %3929 = vst [vmem:[#allocation19_spill] sm:$0xff] %v3117_v63  ;;  %v3124_v34 = vmul.f32 0.2, %v2871_v22  ;;  %v3127_v3 = vmul.f32 0.2, %v2875_v12  ;;  %vm998_vm1 = vcmp.gt.f32.partialorder %v2851_v59, 0.0 }
 0x1d1   :  { %3928 = vst [vmem:[#allocation15_spill] sm:$0xff] %v3112_v58  ;;  %v3132_v58 = vsel %vm986_vm5, %v2803_v30, %v1050_v45  ;;  %v3136_v57 = vmul.f32 0.2, %v2879_v20  ;;  %v3139_v49 = vmul.f32 0.2, %v2883_v35  ;;  %vm999_vm2 = vcmp.gt.f32.partialorder %v2855_v2, 0.0 }
 0x1d2   :  { %3930 = vst [vmem:[#allocation26_spill] sm:$0xff] %v3127_v3  ;;  %3931 = vst [vmem:[#allocation27_spill] sm:$0xff] %v3132_v58  ;;  %v3142_v63 = vmul.f32 0.2, %v2887_v50  ;;  %v3147_v3 = vsel %vm987_vm6, %v2807_v37, %v1051_v14  ;;  %v3151_v30 = vmul.f32 0.2, %v2891_v32 }
 0x1d3   :  { %3933 = vst [vmem:[#allocation29_spill] sm:$0xff] %v3147_v3  ;;  %v3154_v45 = vmul.f32 0.2, %v2895_v4  ;;  %v3157_v58 = vmul.f32 0.2, %v2899_v10  ;;  %vm1000_vm3 = vcmp.gt.f32.partialorder %v2859_v56, 0.0 }
 0x1d4   :  { %3932 = vst [vmem:[#allocation28_spill] sm:$0xff] %v3142_v63  ;;  %v3162_v63 = vsel %vm988_vm7, %v2811_v38, %v1052_v52  ;;  %v3168_v37 = vmul.f32 0.2, %v2903_v48  ;;  %v3171_v14 = vmul.f32 0.2, %v2907_v9  ;;  %v3179_v38 = vsel %vm989_vm8, %v2815_v11, %v1053_v16 }
 0x1d5   :  { %3934 = vst [vmem:[#allocation30_spill] sm:$0xff] %v3162_v63  ;;  %v3174_v3 = vmul.f32 0.2, %v2911_v5  ;;  %3936 = vst [vmem:[#allocation32_spill] sm:$0xff] %v3179_v38  ;;  %vm1003_vm6 = vcmp.gt.f32.partialorder %v2871_v22, 0.0  ;;  %v3197_v11 = vsel %vm990_vm9, %v2819_v54, %v1054_v60  ;;  %vm1007_vm8 = vcmp.gt.f32.partialorder %v2887_v50, 0.0 }
 0x1d6   :  { %v3186_v52 = vmul.f32 0.2, %v2915_v39  ;;  %v3189_v63 = vmul.f32 0.2, %v2919_v18  ;;  %3938 = vst [vmem:[#allocation34_spill] sm:$0xff] %v3197_v11  ;;  %v3215_v54 = vsel %vm991_vm10, %v2823_v55, %v1055_v41  ;;  %vm1011_vm9 = vcmp.gt.f32.partialorder %v2903_v48, 0.0 }
 0x1d7   :  { %3935 = vst [vmem:[#allocation31_spill] sm:$0xff] %v3174_v3  ;;  %v3192_v3 = vmul.f32 0.2, %v2923_v25  ;;  %v3204_v16 = vmul.f32 0.2, %v2927_v26  ;;  %3940 = vst [vmem:[#allocation36_spill] sm:$0xff] %v3215_v54  ;;  %v3234_v55 = vsel %vm992_vm11, %v2827_v29, %v3067_v8  ;;  %v3253_v29 = vsel %vm993_vm12, %v2831_v31, %v3076_v1 }
 0x1d8   :  { %v3207_v38 = vmul.f32 0.2, %v2931_v13  ;;  %v3222_v60 = vmul.f32 0.2, %v2939_v33  ;;  %v3225_v11 = vmul.f32 0.2, %v2943_v27  ;;  %v3272_v31 = vsel %vm994_vm13, %v2835_v42, %v3079_v19 }
 0x1d9   :  { %3937 = vst [vmem:[#allocation33_spill] sm:$0xff] %v3192_v3  ;;  %v3210_v3 = vmul.f32 0.2, %v2935_v53  ;;  %3942 = vst [vmem:[#allocation38_spill] sm:$0xff] %v3234_v55  ;;  %vm1015_vm10 = vcmp.gt.f32.partialorder %v2919_v18, 0.0  ;;  %vm1019_vm11 = vcmp.gt.f32.partialorder %v2935_v53, 0.0  ;;  %v3291_v42 = vsel %vm995_vm14, %v2839_v46, %v3082_v21 }
 0x1da   :  { %v3241_v41 = vmul.f32 0.2, %v2951_v7  ;;  %v3244_v54 = vmul.f32 0.2, %v2955_v62  ;;  %3946 = vst [vmem:[#allocation42_spill] sm:$0xff] %v3253_v29  ;;  %3951 = vst [vmem:[#allocation45_spill] sm:$0xff] %v3272_v31  ;;  %v3310_v46 = vsel %vm996_vm15, %v2843_v40, %v3091_v6  ;;  %v3323_v40 = vsel %vm997_vm0, %v2847_v44, %v3094_v36 }
 0x1db   :  { %3939 = vst [vmem:[#allocation35_spill] sm:$0xff] %v3210_v3  ;;  %v3228_v3 = vmul.f32 0.2, %v2947_v61  ;;  %v3260_v8 = vmul.f32 0.2, %v2963_v43  ;;  %vm1023_vm12 = vcmp.gt.f32.partialorder %v2951_v7, 0.0 }
 0x1dc   :  { %3943 = vst [vmem:[#allocation39_spill] sm:$0xff] %v3241_v41  ;;  %3944 = vst [vmem:[#allocation40_spill] sm:$0xff] %v3244_v54  ;;  %v3263_v55 = vmul.f32 0.2, %v2967_v47  ;;  %v3952_v1 = vld [vmem:[#allocation17_spill] sm:$0xff]  ;;  %vm1027_vm13 = vcmp.gt.f32.partialorder %v2967_v47, 0.0 }
 0x1dd   :  { %3941 = vst [vmem:[#allocation37_spill] sm:$0xff] %v3228_v3  ;;  %v3247_v3 = vmul.f32 0.2, %v2959_v24  ;;  %3947 = vst [vmem:[#allocation43_spill] sm:$0xff] %v3260_v8  ;;  %v3279_v29 = vmul.f32 0.2, %v3952_v1 }
 0x1de   :  { %3948 = vst [vmem:[#allocation44_spill] sm:$0xff] %v3263_v55  ;;  %v3954_v55 = vld [vmem:[#allocation22_spill] sm:$0xff]  ;;  %3958 = vst [vmem:[#allocation49_spill] sm:$0xff] %v3291_v42  ;;  %v3298_v19 = vmul.f32 0.2, %v2987_v23  ;;  %v3960_v31 = vld [vmem:[#allocation11_spill] sm:$0xff] }
 0x1df   :  { %3945 = vst [vmem:[#allocation41_spill] sm:$0xff] %v3247_v3  ;;  %v3949_v3 = vld [vmem:[#allocation13_spill] sm:$0xff]  ;;  %3953 = vst [vmem:[#allocation46_spill] sm:$0xff] %v3279_v29  ;;  %v3282_v8 = vmul.f32 0.2, %v3954_v55  ;;  %v3965_v21 = vld [vmem:[#allocation20_spill] sm:$0xff] }
 0x1e0   :  { %v3266_v54 = vmul.f32 0.2, %v3949_v3  ;;  %3959 = vst [vmem:[#allocation50_spill] sm:$0xff] %v3298_v19  ;;  %3964 = vst [vmem:[#allocation53_spill] sm:$0xff] %v3310_v46  ;;  %v1099_v42 = vmul.f32 0.2, %v3965_v21 }
 0x1e1   :  { %3955 = vst [vmem:[#allocation47_spill] sm:$0xff] %v3282_v8  ;;  %v3301_v8 = vmul.f32 0.2, %v3960_v31  ;;  %v3967_v55 = vld [vmem:[#allocation18_spill] sm:$0xff]  ;;  %3968 = vst [vmem:[#allocation54_spill] sm:$0xff] %v3323_v40  ;;  %vm1035_vm15 = vcmp.gt.f32.partialorder %v3965_v21, 0.0 }
 0x1e2   :  { %3950 = vst [vmem:[#allocation13_spill] sm:$0xff] %v3266_v54  ;;  %v3956_v54 = vld [vmem:[#allocation24_spill] sm:$0xff]  ;;  %v3969_v6 = vld [vmem:[#allocation23_spill] sm:$0xff]  ;;  %v3971_v23 = vld [vmem:[#allocation21_spill] sm:$0xff]  ;;  %vm3979_vm7 = vcmp.gt.f32.partialorder %v2863_v0, 0.0 }
 0x1e3   :  { %v3285_v41 = vmul.f32 0.2, %v3956_v54  ;;  %3961 = vst [vmem:[#allocation51_spill] sm:$0xff] %v3301_v8  ;;  %vm1031_vm14 = vcmp.gt.f32.partialorder %v3956_v54, 0.0  ;;  %v3966_v8 = vld [vmem:[#allocation14_spill] sm:$0xff]  ;;  %v3972_v1 = vld [vmem:[#allocation7_spill] sm:$0xff] }
 0x1e4   :  { %v1100_v19 = vmul.f32 0.2, %v3966_v8  ;;  %v1102_v46 = vmul.f32 0.2, %v3969_v6  ;;  %v1104_v54 = vmul.f32 0.2, %v3971_v23  ;;  %v3336_v44 = vsel %vm998_vm1, %v2851_v59, %v3972_v1 }
 0x1e5   :  { %3957 = vst [vmem:[#allocation48_spill] sm:$0xff] %v3285_v41  ;;  %v3962_v41 = vld [vmem:[#allocation16_spill] sm:$0xff]  ;;  %v3974_v36 = vld [vmem:[#allocation2_spill] sm:$0xff]  ;;  %v3349_v59 = vsel %vm999_vm2, %v2855_v2, %v3106_v17  ;;  %v3977_v1 = vld [vmem:[#allocation3_spill] sm:$0xff]  ;;  %vm3980_vm2 = vcmp.gt.f32.partialorder %v2867_v15, 0.0  ;;  %v3376_v17 = vsel %vm1003_vm6, %v2871_v22, %v3124_v34  ;;  %vm3986_vm6 = vcmp.gt.f32.partialorder %v2891_v32, 0.0 }
 0x1e6   :  { %v3304_v29 = vmul.f32 0.2, %v3962_v41  ;;  %v3970_v41 = vld [vmem:[#allocation25_spill] sm:$0xff]  ;;  %vm1041_vm4 = vcmp.gt.f32.partialorder %v3974_v36, 0.0  ;;  %v3975_v40 = vld [vmem:[#allocation4_spill] sm:$0xff]  ;;  %v3976_v8 = vld [vmem:[#allocation6_spill] sm:$0xff]  ;;  %v3370_v2 = vsel %vm3980_vm2, %v2867_v15, %v3121_v28 }
 0x1e7   :  { %v1103_v31 = vmul.f32 0.2, %v3970_v41  ;;  %3973 = vst [vmem:[#allocation25_spill] sm:$0xff] %v3336_v44  ;;  %vm1039_vm0 = vcmp.gt.f32.partialorder %v3970_v41, 0.0  ;;  %v1105_v6 = vmul.f32 0.2, %v3974_v36  ;;  %v3358_v36 = vsel %vm1000_vm3, %v2859_v56, %v3109_v51 }
 0x1e8   :  { %3963 = vst [vmem:[#allocation52_spill] sm:$0xff] %v3304_v29  ;;  %v1101_v29 = vmul.f32 0.2, %v3967_v55  ;;  %v1106_v55 = vmul.f32 0.2, %v3975_v40  ;;  %vm1043_vm1 = vcmp.gt.f32.partialorder %v3976_v8, 0.0 }
 0x1e9   :  { %v1107_v21 = vmul.f32 0.2, %v3976_v8  ;;  %vm1044_vm5 = vcmp.gt.f32.partialorder %v3977_v1, 0.0  ;;  %v1108_v44 = vmul.f32 0.2, %v3977_v1  ;;  %v3978_v40 = vld [vmem:[#allocation15_spill] sm:$0xff] }
 0x1ea   :  { %v3364_v23 = vsel %vm3979_vm7, %v2863_v0, %v3978_v40  ;;  %v3981_v56 = vld [vmem:[#allocation26_spill] sm:$0xff]  ;;  %vm3982_vm3 = vcmp.gt.f32.partialorder %v2875_v12, 0.0  ;;  %vm3983_vm7 = vcmp.gt.f32.partialorder %v2879_v20, 0.0  ;;  %vm3984_vm2 = vcmp.gt.f32.partialorder %v2883_v35, 0.0  ;;  %v3985_v22 = vld [vmem:[#allocation28_spill] sm:$0xff] }
 0x1eb   :  { %v3382_v51 = vsel %vm3982_vm3, %v2875_v12, %v3981_v56  ;;  %v3388_v0 = vsel %vm3983_vm7, %v2879_v20, %v3136_v57  ;;  %v3394_v15 = vsel %vm3984_vm2, %v2883_v35, %v3139_v49  ;;  %v3400_v28 = vsel %vm1007_vm8, %v2887_v50, %v3985_v22  ;;  %v4019_v40 = vld [vmem:[#allocation24_spill] sm:$0xff] }
 0x1ec   :  { %v3406_v12 = vsel %vm3986_vm6, %v2891_v32, %v3151_v30  ;;  %vm3987_vm3 = vcmp.gt.f32.partialorder %v2895_v4, 0.0  ;;  %vm3988_vm7 = vcmp.gt.f32.partialorder %v2899_v10, 0.0  ;;  %v3424_v50 = vsel %vm1011_vm9, %v2903_v48, %v3168_v37  ;;  %v4021_v22 = vld [vmem:[#allocation8_spill] sm:$0xff] }
 0x1ed   :  { %v3412_v20 = vsel %vm3987_vm3, %v2895_v4, %v3154_v45  ;;  %v3418_v35 = vsel %vm3988_vm7, %v2899_v10, %v3157_v58  ;;  %vm3989_vm8 = vcmp.gt.f32.partialorder %v2907_v9, 0.0  ;;  %v3990_v4 = vld [vmem:[#allocation31_spill] sm:$0xff]  ;;  %vm3991_vm2 = vcmp.gt.f32.partialorder %v2911_v5, 0.0 }
 0x1ee   :  { %v3430_v32 = vsel %vm3989_vm8, %v2907_v9, %v3171_v14  ;;  %v3436_v34 = vsel %vm3991_vm2, %v2911_v5, %v3990_v4  ;;  %vm3992_vm6 = vcmp.gt.f32.partialorder %v2915_v39, 0.0  ;;  %v3448_v48 = vsel %vm1015_vm10, %v2919_v18, %v3189_v63  ;;  %v3993_v9 = vld [vmem:[#allocation33_spill] sm:$0xff]  ;;  %v3997_v18 = vld [vmem:[#allocation35_spill] sm:$0xff] }
 0x1ef   :  { %v3442_v10 = vsel %vm3992_vm6, %v2915_v39, %v3186_v52  ;;  %vm3994_vm9 = vcmp.gt.f32.partialorder %v2923_v25, 0.0  ;;  %vm3995_vm3 = vcmp.gt.f32.partialorder %v2927_v26, 0.0  ;;  %vm3996_vm7 = vcmp.gt.f32.partialorder %v2931_v13, 0.0  ;;  %v4013_v52 = vld [vmem:[#allocation17_spill] sm:$0xff] }
 0x1f0   :  { %v3454_v58 = vsel %vm3994_vm9, %v2923_v25, %v3993_v9  ;;  %v3460_v5 = vsel %vm3995_vm3, %v2927_v26, %v3204_v16  ;;  %v3466_v39 = vsel %vm3996_vm7, %v2931_v13, %v3207_v38  ;;  %v3472_v63 = vsel %vm1019_vm11, %v2935_v53, %v3997_v18  ;;  %v4000_v13 = vld [vmem:[#allocation37_spill] sm:$0xff]  ;;  %v4002_v53 = vld [vmem:[#allocation39_spill] sm:$0xff]  ;;  %v4016_v16 = vld [vmem:[#allocation22_spill] sm:$0xff] }
 0x1f1   :  { %vm3998_vm10 = vcmp.gt.f32.partialorder %v2939_v33, 0.0  ;;  %vm3999_vm8 = vcmp.gt.f32.partialorder %v2943_v27, 0.0  ;;  %vm4001_vm2 = vcmp.gt.f32.partialorder %v2947_v61, 0.0  ;;  %v3496_v49 = vsel %vm1023_vm12, %v2951_v7, %v4002_v53  ;;  %v4009_v7 = vld [vmem:[#allocation44_spill] sm:$0xff]  ;;  %v4023_v9 = vld [vmem:[#allocation51_spill] sm:$0xff] }
 0x1f2   :  { %v3478_v25 = vsel %vm3998_vm10, %v2939_v33, %v3222_v60  ;;  %v3484_v26 = vsel %vm3999_vm8, %v2943_v27, %v3225_v11  ;;  %v3490_v57 = vsel %vm4001_vm2, %v2947_v61, %v4000_v13  ;;  %v4003_v33 = vld [vmem:[#allocation40_spill] sm:$0xff]  ;;  %vm4004_vm11 = vcmp.gt.f32.partialorder %v2955_v62, 0.0  ;;  %v4005_v27 = vld [vmem:[#allocation41_spill] sm:$0xff]  ;;  %v4007_v61 = vld [vmem:[#allocation43_spill] sm:$0xff] }
 0x1f3   :  { %v3502_v30 = vsel %vm4004_vm11, %v2955_v62, %v4003_v33  ;;  %vm4006_vm6 = vcmp.gt.f32.partialorder %v2959_v24, 0.0  ;;  %vm4008_vm9 = vcmp.gt.f32.partialorder %v2963_v43, 0.0  ;;  %v3520_v14 = vsel %vm1027_vm13, %v2967_v47, %v4009_v7  ;;  %v4010_v62 = vld [vmem:[#allocation13_spill] sm:$0xff]  ;;  %v4018_v47 = vld [vmem:[#allocation48_spill] sm:$0xff]  ;;  %v4024_v18 = vld [vmem:[#allocation11_spill] sm:$0xff] }
 0x1f4   :  { %v3508_v45 = vsel %vm4006_vm6, %v2959_v24, %v4005_v27  ;;  %v3514_v37 = vsel %vm4008_vm9, %v2963_v43, %v4007_v61  ;;  %vm4011_vm12 = vcmp.gt.f32.partialorder %v3949_v3, 0.0  ;;  %v4012_v24 = vld [vmem:[#allocation46_spill] sm:$0xff]  ;;  %vm4014_vm3 = vcmp.gt.f32.partialorder %v4013_v52, 0.0  ;;  %v4015_v43 = vld [vmem:[#allocation47_spill] sm:$0xff]  ;;  %v4026_v53 = vld [vmem:[#allocation52_spill] sm:$0xff] }
 0x1f5   :  { %v3526_v38 = vsel %vm4011_vm12, %v3949_v3, %v4010_v62  ;;  %v3532_v11 = vsel %vm4014_vm3, %v4013_v52, %v4012_v24  ;;  %vm4017_vm7 = vcmp.gt.f32.partialorder %v4016_v16, 0.0  ;;  %v3544_v56 = vsel %vm1031_vm14, %v4019_v40, %v4018_v47  ;;  %v4020_v3 = vld [vmem:[#allocation50_spill] sm:$0xff]  ;;  %v4027_v33 = vld [vmem:[#allocation16_spill] sm:$0xff]  ;;  %v4036_v40 = vld [vmem:[#allocation21_spill] sm:$0xff] }
 0x1f6   :  { %v3538_v60 = vsel %vm4017_vm7, %v4016_v16, %v4015_v43  ;;  %vm4022_vm13 = vcmp.gt.f32.partialorder %v4021_v22, 0.0  ;;  %vm4025_vm10 = vcmp.gt.f32.partialorder %v4024_v18, 0.0  ;;  %vm4028_vm8 = vcmp.gt.f32.partialorder %v4027_v33, 0.0  ;;  %v4029_v61 = vld [vmem:[#allocation20_spill] sm:$0xff]  ;;  %v4030_v62 = vld [vmem:[#allocation14_spill] sm:$0xff]  ;;  %v4034_v16 = vld [vmem:[#allocation23_spill] sm:$0xff] }
 0x1f7   :  { %v3550_v4 = vsel %vm4022_vm13, %v4021_v22, %v4020_v3  ;;  %v3556_v13 = vsel %vm4025_vm10, %v4024_v18, %v4023_v9  ;;  %v3562_v27 = vsel %vm4028_vm8, %v4027_v33, %v4026_v53  ;;  %v3567_v7 = vsel %vm1035_vm15, %v4029_v61, %v1099_v42  ;;  %v4032_v52 = vld [vmem:[#allocation18_spill] sm:$0xff]  ;;  %v4039_v22 = vld [vmem:[#allocation4_spill] sm:$0xff]  ;;  %v4044_v9 = vld [vmem:[#allocation9_spill] sm:$0xff] }
 0x1f8   :  { %vm4031_vm14 = vcmp.gt.f32.partialorder %v4030_v62, 0.0  ;;  %vm4033_vm2 = vcmp.gt.f32.partialorder %v4032_v52, 0.0  ;;  %vm4035_vm11 = vcmp.gt.f32.partialorder %v4034_v16, 0.0  ;;  %v3587_v42 = vsel %vm1039_vm0, %v3970_v41, %v1103_v31  ;;  %v4038_v3 = vld [vmem:[#allocation2_spill] sm:$0xff]  ;;  %v4043_v31 = vld [vmem:[#allocation5_spill] sm:$0xff]  ;;  %v4047_v61 = vld [vmem:[#allocation19_spill] sm:$0xff] }
 0x1f9   :  { %v3572_v24 = vsel %vm4031_vm14, %v4030_v62, %v1100_v19  ;;  %v3577_v43 = vsel %vm4033_vm2, %v4032_v52, %v1101_v29  ;;  %v3582_v47 = vsel %vm4035_vm11, %v4034_v16, %v1102_v46  ;;  %vm4037_vm15 = vcmp.gt.f32.partialorder %v4036_v40, 0.0  ;;  %v4046_v53 = vld [vmem:[#allocation10_spill] sm:$0xff]  ;;  %v4048_v62 = vld [vmem:[#allocation27_spill] sm:$0xff]  ;;  %v4049_v52 = vld [vmem:[#allocation29_spill] sm:$0xff] }
 0x1fa   :  { %v3592_v19 = vsel %vm4037_vm15, %v4036_v40, %v1104_v54  ;;  %v3597_v29 = vsel %vm1041_vm4, %v4038_v3, %v1105_v6  ;;  %vm4040_vm6 = vcmp.gt.f32.partialorder %v4039_v22, 0.0  ;;  %v3607_v41 = vsel %vm1043_vm1, %v3976_v8, %v1107_v21  ;;  %v4045_v6 = vld [vmem:[#allocation12_spill] sm:$0xff]  ;;  %v4050_v16 = vld [vmem:[#allocation30_spill] sm:$0xff] }
 0x1fb   :  { %v3602_v46 = vsel %vm4040_vm6, %v4039_v22, %v1106_v55  ;;  %4042 = vst [vmem:[#allocation6_spill] sm:$0xff] %v3607_v41  ;;  %v3612_v54 = vsel %vm1044_vm5, %v3977_v1, %v1108_v44  ;;  %v1668_v18 = vpack.c.bf16 %v4044_v9, %v4043_v31  ;;  %v1673_v33 = vpack.c.bf16 %v4046_v53, %v4045_v6  ;;  %v4051_v3 = vld [vmem:[#allocation32_spill] sm:$0xff]  ;;  %v4052_v8 = vld [vmem:[#allocation34_spill] sm:$0xff]  ;;  %v4056_v1 = vld [vmem:[#allocation45_spill] sm:$0xff] }
 0x1fc   :  { %4041 = vst [vmem:[#allocation7_spill] sm:$0xff] %v3602_v46  ;;  %v1678_v55 = vpack.c.bf16 %v4048_v62, %v4047_v61  ;;  %v1683_v40 = vpack.c.bf16 %v4050_v16, %v4049_v52  ;;  %v1688_v21 = vpack.c.bf16 %v4052_v8, %v4051_v3  ;;  %v4053_v22 = vld [vmem:[#allocation36_spill] sm:$0xff]  ;;  %v4054_v41 = vld [vmem:[#allocation38_spill] sm:$0xff]  ;;  %v4057_v9 = vld [vmem:[#allocation49_spill] sm:$0xff] }
 0x1fd   :  { %v1693_v46 = vpack.c.bf16 %v4054_v41, %v4053_v22  ;;  %1669 = vst [vmem:[%s3778_s4] sm:$0xff] %v1668_v18   ;;  %1825 = vst [vmem:[%s3778_s4 + $0x8] sm:$0xff] %v1673_v33   ;;  %v4055_v44 = vld [vmem:[#allocation42_spill] sm:$0xff]  ;;  %v4058_v6 = vld [vmem:[#allocation53_spill] sm:$0xff]  ;;  %v1713_v41 = vpack.c.bf16 %v3358_v36, %v3349_v59  ;;  %v1718_v18 = vpack.c.bf16 %v3370_v2, %v3364_v23 }
 0x1fe   :  { %v1698_v31 = vpack.c.bf16 %v4056_v1, %v4055_v44  ;;  %v1703_v53 = vpack.c.bf16 %v4058_v6, %v4057_v9  ;;  %v4059_v61 = vld [vmem:[#allocation54_spill] sm:$0xff]  ;;  %v4060_v62 = vld [vmem:[#allocation25_spill] sm:$0xff]  ;;  %1826 = vst [vmem:[%s3778_s4 + $0x10] sm:$0xff] %v1678_v55   ;;  %1827 = vst [vmem:[%s3778_s4 + $0x18] sm:$0xff] %v1683_v40   ;;  %v1723_v36 = vpack.c.bf16 %v3382_v51, %v3376_v17 }
 0x1ff   :  { %v1708_v52 = vpack.c.bf16 %v4060_v62, %v4059_v61  ;;  %1828 = vst [vmem:[%s3778_s4 + $0x20] sm:$0xff] %v1688_v21   ;;  %1829 = vst [vmem:[%s3778_s4 + $0x28] sm:$0xff] %v1693_v46   ;;  %v1728_v59 = vpack.c.bf16 %v3394_v15, %v3388_v0  ;;  %v1733_v33 = vpack.c.bf16 %v3406_v12, %v3400_v28 }
 0x200   :  { %1830 = vst [vmem:[%s3778_s4 + $0x30] sm:$0xff] %v1698_v31   ;;  %1831 = vst [vmem:[%s3778_s4 + $0x38] sm:$0xff] %v1703_v53   ;;  %v1738_v23 = vpack.c.bf16 %v3418_v35, %v3412_v20  ;;  %v1743_v2 = vpack.c.bf16 %v3430_v32, %v3424_v50  ;;  %v1748_v17 = vpack.c.bf16 %v3442_v10, %v3436_v34 }
 0x201   :  { %1832 = vst [vmem:[%s3778_s4 + $0x40] sm:$0xff] %v1708_v52   ;;  %1833 = vst [vmem:[%s3778_s4 + $0x48] sm:$0xff] %v1713_v41   ;;  %v1753_v51 = vpack.c.bf16 %v3454_v58, %v3448_v48  ;;  %v1758_v0 = vpack.c.bf16 %v3466_v39, %v3460_v5  ;;  %v1763_v15 = vpack.c.bf16 %v3478_v25, %v3472_v63 }
 0x202   :  { %1834 = vst [vmem:[%s3778_s4 + $0x50] sm:$0xff] %v1718_v18   ;;  %1835 = vst [vmem:[%s3778_s4 + $0x58] sm:$0xff] %v1723_v36   ;;  %v1768_v28 = vpack.c.bf16 %v3490_v57, %v3484_v26  ;;  %v1773_v12 = vpack.c.bf16 %v3502_v30, %v3496_v49  ;;  %v1778_v20 = vpack.c.bf16 %v3514_v37, %v3508_v45  ;;  %v4062_v63 = vld [vmem:[#allocation6_spill] sm:$0xff] }
 0x203   :  { %1836 = vst [vmem:[%s3778_s4 + $0x60] sm:$0xff] %v1728_v59   ;;  %1837 = vst [vmem:[%s3778_s4 + $0x68] sm:$0xff] %v1733_v33   ;;  %v1783_v35 = vpack.c.bf16 %v3526_v38, %v3520_v14  ;;  %v1788_v50 = vpack.c.bf16 %v3538_v60, %v3532_v11  ;;  %v1793_v32 = vpack.c.bf16 %v3550_v4, %v3544_v56  ;;  %v4061_v5 = vld [vmem:[#allocation7_spill] sm:$0xff] }
 0x204   :  { %1838 = vst [vmem:[%s3778_s4 + $0x70] sm:$0xff] %v1738_v23   ;;  %1839 = vst [vmem:[%s3778_s4 + $0x78] sm:$0xff] %v1743_v2   ;;  %v1798_v34 = vpack.c.bf16 %v3562_v27, %v3556_v13  ;;  %v1803_v10 = vpack.c.bf16 %v3572_v24, %v3567_v7  ;;  %v1808_v48 = vpack.c.bf16 %v3582_v47, %v3577_v43 }
 0x205   :  { %1840 = vst [vmem:[%s3778_s4 + $0x80] sm:$0xff] %v1748_v17   ;;  %1841 = vst [vmem:[%s3778_s4 + $0x88] sm:$0xff] %v1753_v51   ;;  %v1813_v58 = vpack.c.bf16 %v3592_v19, %v3587_v42  ;;  %v1818_v39 = vpack.c.bf16 %v4061_v5, %v3597_v29  ;;  %v1823_v25 = vpack.c.bf16 %v3612_v54, %v4062_v63 }
 0x206   :  { %1842 = vst [vmem:[%s3778_s4 + $0x90] sm:$0xff] %v1758_v0   ;;  %1843 = vst [vmem:[%s3778_s4 + $0x98] sm:$0xff] %v1763_v15  }
 0x207   :  { %1844 = vst [vmem:[%s3778_s4 + $0xa0] sm:$0xff] %v1768_v28   ;;  %1845 = vst [vmem:[%s3778_s4 + $0xa8] sm:$0xff] %v1773_v12  }
 0x208   :  { %1846 = vst [vmem:[%s3778_s4 + $0xb0] sm:$0xff] %v1778_v20   ;;  %1847 = vst [vmem:[%s3778_s4 + $0xb8] sm:$0xff] %v1783_v35  }
 0x209   :  { %1848 = vst [vmem:[%s3778_s4 + $0xc0] sm:$0xff] %v1788_v50   ;;  %1849 = vst [vmem:[%s3778_s4 + $0xc8] sm:$0xff] %v1793_v32  }
 0x20a   :  { %1850 = vst [vmem:[%s3778_s4 + $0xd0] sm:$0xff] %v1798_v34   ;;  %1851 = vst [vmem:[%s3778_s4 + $0xd8] sm:$0xff] %v1803_v10  }
 0x20b   :  { %1852 = vst [vmem:[%s3778_s4 + $0xe0] sm:$0xff] %v1808_v48   ;;  %1853 = vst [vmem:[%s3778_s4 + $0xe8] sm:$0xff] %v1813_v58  }
 0x20c   :  { %1854 = vst [vmem:[%s3778_s4 + $0xf0] sm:$0xff] %v1818_v39   ;;  %1855 = vst [vmem:[%s3778_s4 + $0xf8] sm:$0xff] %v1823_v25  }

// kernel: _forward.5
= control target key start
LH: loop header
LB: loop body
LE: loop exit
PB: predicated region body
PF: predicated region fallthrough
CT: control target
= control target key end

     0   :  { %s881_s1 = inlined_call_operand.vmem [shape: bf16[128,128], index: 1, kind: input, shape index: {}]   ;;  %s882_s0 = inlined_call_operand.vmem [shape: bf16[128,128], index: 0, kind: input, shape index: {}]   ;;  %s883_s2 = inlined_call_operand.vmem [shape: f32[1,128], index: 2, kind: input, shape index: {}]   ;;  %s884_s3 = inlined_call_operand.vmem [shape: f32[1,128], index: 3, kind: input, shape index: {}]   ;;  %s885_s4 = inlined_call_operand.vmem [shape: bf16[128,128], index: 4, kind: output, shape index: {}]  }
   0x1   :  { %v648_v0 = vld [vmem:[%s881_s1] sm:$0xff]   ;;  %v649_v1 = vld [vmem:[%s881_s1 + $0x8] sm:$0xff]   ;;  %v650_v2 = vld [vmem:[%s881_s1 + $0x10] sm:$0xff]  }
   0x2   :  { %600 = vmatprep.subr.bf16.mxu0 %v648_v0  ;;  %632 = vmatprep.subr.bf16.mxu1 %v648_v0  ;;  %v651_v3 = vld [vmem:[%s881_s1 + $0x18] sm:$0xff]   ;;  %v656_v4 = vld [vmem:[%s882_s0] sm:$0xff]   ;;  %v653_v7 = vld [vmem:[%s881_s1 + $0x28] sm:$0xff]  }
   0x3   :  { %601 = vmatpush3.bf16.msra.mxu0 %v648_v0  ;;  %640 = vmatpush3.bf16.msra.mxu1 %v648_v0  ;;  %v652_v5 = vld [vmem:[%s881_s1 + $0x20] sm:$0xff]   ;;  %v654_v8 = vld [vmem:[%s881_s1 + $0x30] sm:$0xff]   ;;  %v655_v9 = vld [vmem:[%s881_s1 + $0x38] sm:$0xff]  }
   0x4   :  { %602 = vmatprep.subr.bf16.mxu0 %v649_v1  ;;  %633 = vmatprep.subr.bf16.mxu1 %v649_v1  ;;  %v660_v6 = vld [vmem:[%s882_s0 + $0x20] sm:$0xff]   ;;  %v657_v10 = vld [vmem:[%s882_s0 + $0x8] sm:$0xff]   ;;  %v658_v12 = vld [vmem:[%s882_s0 + $0x10] sm:$0xff]  }
   0x5   :  { %616 = vmatprep.mubr.bf16.mxu0 %v656_v4  ;;  %624 = vmatprep.mubr.bf16.mxu1 %v660_v6  ;;  %v661_v11 = vld [vmem:[%s882_s0 + $0x28] sm:$0xff]   ;;  %v662_v13 = vld [vmem:[%s882_s0 + $0x30] sm:$0xff]   ;;  %v659_v14 = vld [vmem:[%s882_s0 + $0x18] sm:$0xff]  }
   0x6   :  { %v663_v15 = vld [vmem:[%s882_s0 + $0x38] sm:$0xff]  }
   0x7   :  { %603 = vmatpush3.bf16.msra.mxu0 %v649_v1  ;;  %641 = vmatpush3.bf16.msra.mxu1 %v649_v1 }
   0x8   :  { %604 = vmatprep.subr.bf16.mxu0 %v650_v2  ;;  %634 = vmatprep.subr.bf16.mxu1 %v650_v2 }
   0xb   :  { %605 = vmatpush3.bf16.msra.mxu0 %v650_v2  ;;  %642 = vmatpush3.bf16.msra.mxu1 %v650_v2 }
   0xc   :  { %606 = vmatprep.subr.bf16.mxu0 %v651_v3  ;;  %635 = vmatprep.subr.bf16.mxu1 %v651_v3 }
   0xf   :  { %607 = vmatpush3.bf16.msra.mxu0 %v651_v3  ;;  %643 = vmatpush3.bf16.msra.mxu1 %v651_v3 }
  0x10   :  { %608 = vmatprep.subr.bf16.mxu0 %v652_v5  ;;  %636 = vmatprep.subr.bf16.mxu1 %v652_v5 }
  0x13   :  { %609 = vmatpush3.bf16.msra.mxu0 %v652_v5  ;;  %644 = vmatpush3.bf16.msra.mxu1 %v652_v5 }
  0x14   :  { %610 = vmatprep.subr.bf16.mxu0 %v653_v7  ;;  %637 = vmatprep.subr.bf16.mxu1 %v653_v7 }
  0x17   :  { %611 = vmatpush3.bf16.msra.mxu0 %v653_v7  ;;  %645 = vmatpush3.bf16.msra.mxu1 %v653_v7 }
  0x18   :  { %612 = vmatprep.subr.bf16.mxu0 %v654_v8  ;;  %638 = vmatprep.subr.bf16.mxu1 %v654_v8 }
  0x1b   :  { %613 = vmatpush3.bf16.msra.mxu0 %v654_v8  ;;  %646 = vmatpush3.bf16.msra.mxu1 %v654_v8 }
  0x1c   :  { %614 = vmatprep.subr.bf16.mxu0 %v655_v9  ;;  %639 = vmatprep.subr.bf16.mxu1 %v655_v9 }
  0x1f   :  { %615 = vmatpush3.bf16.msra.mxu0 %v655_v9  ;;  %647 = vmatpush3.bf16.msra.mxu1 %v655_v9 }
  0x22   :  { %617 = vmatmul.mubr.bf16.vlgmr.msra.gmra.mrb[0].mxu0 %v657_v10  ;;  %625 = vmatmul.mubr.bf16.vlgmr.msra.gmra.mrb[0].mxu1 %v661_v11 }
  0x23   :  { %620 = vmatprep.mubr.bf16.mxu0 %v658_v12  ;;  %628 = vmatprep.mubr.bf16.mxu1 %v662_v13 }
  0x2a   :  { %621 = vmatmul.mubr.bf16.gmra.mrb[4].mxu0 %v659_v14  ;;  %629 = vmatmul.mubr.bf16.gmra.mrb[4].mxu1 %v663_v15 }
  0xf5   :  { %v739_v16 = vpop.f32.mrb[0].mxu0  ;;  %v741_v17 = vpop.f32.mrb[0].mxu1 }
  0xf6   :  { %v743_v18 = vpop.f32.mrb[1].mxu0  ;;  %v745_v19 = vpop.f32.mrb[1].mxu1  ;;  %v268_v27 = vmul.f32 %v739_v16, %v739_v16  ;;  %v276_v59 = vmul.f32 %v741_v17, %v741_v17 }
  0xf7   :  { %v747_v20 = vpop.f32.mrb[2].mxu0  ;;  %v749_v21 = vpop.f32.mrb[2].mxu1  ;;  %v266_v24 = vmul.f32 %v743_v18, %v743_v18  ;;  %v274_v53 = vmul.f32 %v745_v19, %v745_v19 }
  0xf8   :  { %v751_v22 = vpop.f32.mrb[3].mxu0  ;;  %v753_v23 = vpop.f32.mrb[3].mxu1  ;;  %v269_v30 = vmul.f32 %v747_v20, %v747_v20  ;;  %v277_v62 = vmul.f32 %v749_v21, %v749_v21 }
  0xf9   :  { %v245_v25 = vadd.f32 %v751_v22, %v743_v18  ;;  %v267_v26 = vmul.f32 %v751_v22, %v751_v22  ;;  %v275_v58 = vmul.f32 %v753_v23, %v753_v23 }
  0xfb   :  { %v246_v28 = vadd.f32 %v739_v16, %v245_v25  ;;  %v282_v29 = vadd.f32 %v267_v26, %v266_v24 }
  0xfd   :  { %v283_v31 = vadd.f32 %v282_v29, %v268_v27  ;;  %v766_v32 = vpop.f32.mrb[4].mxu0  ;;  %v247_v33 = vadd.f32 %v747_v20, %v246_v28  ;;  %v769_v34 = vpop.f32.mrb[4].mxu1 }
  0xfe   :  { %v771_v35 = vpop.f32.mrb[5].mxu0  ;;  %v773_v36 = vpop.f32.mrb[5].mxu1  ;;  %v272_v47 = vmul.f32 %v766_v32, %v766_v32  ;;  %v280_v7 = vmul.f32 %v769_v34, %v769_v34 }
  0xff   :  { %v248_v37 = vadd.f32 %v247_v33, %v771_v35  ;;  %v270_v38 = vmul.f32 %v771_v35, %v771_v35  ;;  %v284_v39 = vadd.f32 %v283_v31, %v269_v30  ;;  %v778_v40 = vpop.f32.mrb[6].mxu0  ;;  %v780_v41 = vpop.f32.mrb[6].mxu1  ;;  %v278_v1 = vmul.f32 %v773_v36, %v773_v36 }
 0x100   :  { %v782_v42 = vpop.f32.mrb[7].mxu0  ;;  %v784_v43 = vpop.f32.mrb[7].mxu1  ;;  %v273_v50 = vmul.f32 %v778_v40, %v778_v40  ;;  %v281_v10 = vmul.f32 %v780_v41, %v780_v41 }
 0x101   :  { %v285_v44 = vadd.f32 %v284_v39, %v270_v38  ;;  %v249_v45 = vadd.f32 %v248_v37, %v782_v42  ;;  %v271_v46 = vmul.f32 %v782_v42, %v782_v42  ;;  %v279_v6 = vmul.f32 %v784_v43, %v784_v43 }
 0x103   :  { %v250_v48 = vadd.f32 %v766_v32, %v249_v45  ;;  %v286_v49 = vadd.f32 %v285_v44, %v271_v46 }
 0x105   :  { %v287_v51 = vadd.f32 %v286_v49, %v272_v47  ;;  %v251_v52 = vadd.f32 %v778_v40, %v250_v48  ;;  %v314_v48 = vlaneseq }
 0x107   :  { %v252_v54 = vadd.f32 %v251_v52, %v745_v19  ;;  %v288_v55 = vadd.f32 %v287_v51, %v273_v50  ;;  %v315_v49 = vshrl.u32 %v314_v48, 7  ;;  %v243_v50 = vld [vmem:[%s883_s2] sm:$0x1] }
 0x109   :  { %v289_v56 = vadd.f32 %v288_v55, %v274_v53  ;;  %v253_v57 = vadd.f32 %v252_v54, %v753_v23  ;;  %v316_v51 = vsub.s32 0, %v315_v49  ;;  %v244_v54 = vld [vmem:[%s884_s3] sm:$0x1] }
 0x10b   :  { %v254_v60 = vadd.f32 %v741_v17, %v253_v57  ;;  %v290_v61 = vadd.f32 %v289_v56, %v275_v58 }
 0x10d   :  { %v291_v63 = vadd.f32 %v290_v61, %v276_v59  ;;  %v255_v0 = vadd.f32 %v749_v21, %v254_v60 }
 0x10f   :  { %v256_v2 = vadd.f32 %v255_v0, %v773_v36  ;;  %v292_v3 = vadd.f32 %v291_v63, %v277_v62 }
 0x111   :  { %v293_v4 = vadd.f32 %v292_v3, %v278_v1  ;;  %v257_v5 = vadd.f32 %v256_v2, %v784_v43 }
 0x113   :  { %v258_v8 = vadd.f32 %v769_v34, %v257_v5  ;;  %v294_v9 = vadd.f32 %v293_v4, %v279_v6 }
 0x115   :  { %v259_v11 = vadd.f32 %v780_v41, %v258_v8  ;;  %v295_v12 = vadd.f32 %v294_v9, %v280_v7 }
 0x117   :  { %v260_v13 = vrot.slane %v259_v11, 4  ;;  %v296_v14 = vadd.f32 %v295_v12, %v281_v10 }
 0x119   :  { %v261_v15 = vadd.f32 %v260_v13, %v259_v11  ;;  %v297_v24 = vrot.slane %v296_v14, 4 }
 0x11b   :  { %v262_v25 = vrot.slane %v261_v15, 2  ;;  %v298_v26 = vadd.f32 %v297_v24, %v296_v14 }
 0x11d   :  { %v263_v27 = vadd.f32 %v262_v25, %v261_v15  ;;  %v299_v28 = vrot.slane %v298_v26, 2 }
 0x11f   :  { %v264_v29 = vrot.slane %v263_v27, 1  ;;  %v300_v30 = vadd.f32 %v299_v28, %v298_v26 }
 0x121   :  { %v265_v31 = vadd.f32 %v264_v29, %v263_v27  ;;  %v301_v33 = vrot.slane %v300_v30, 1 }
 0x123   :  { %v302_v37 = vadd.f32 %v301_v33, %v300_v30  ;;  %v303_v38 = vmul.f32 0.0078125, %v265_v31 }
 0x125   :  { %v304_v39 = vmul.f32 0.0078125, %v302_v37  ;;  %v305_v44 = vmul.f32 %v303_v38, %v303_v38 }
 0x127   :  { %v306_v45 = vsub.f32 %v304_v39, %v305_v44 }
 0x129   :  { %v307_v46 = vmax.f32 %v306_v45, 0.0 }
 0x12b   :  { %v308_v47 = vadd.f32 1e-05, %v307_v46 }
 0x12d   :  { %664 = vrsqrt.f32 %v308_v47 }
 0x137   :  { %v665_v52 = vpop.eup %664 }
 0x138   :  { %v310_v53 = vmul.f32 %v665_v52, %v243_v50 }
 0x13a   :  { %v311_v55 = vmul.f32 %v310_v53, %v303_v38  ;;  %v317_v56 = vrot.slane %v310_v53, %v316_v51 }
 0x13c   :  { %v312_v57 = vsub.f32 %v244_v54, %v311_v55  ;;  %v319_v58 = vmul.f32 %v317_v56, %v743_v18  ;;  %v320_v59 = vmul.f32 %v317_v56, %v751_v22  ;;  %v321_v60 = vmul.f32 %v739_v16, %v317_v56 }
 0x13d   :  { %v322_v61 = vmul.f32 %v747_v20, %v317_v56  ;;  %v323_v62 = vmul.f32 %v317_v56, %v771_v35  ;;  %v324_v63 = vmul.f32 %v317_v56, %v782_v42  ;;  %v325_v0 = vmul.f32 %v766_v32, %v317_v56 }
 0x13e   :  { %v326_v1 = vmul.f32 %v778_v40, %v317_v56  ;;  %v327_v2 = vmul.f32 %v317_v56, %v745_v19  ;;  %v328_v3 = vmul.f32 %v317_v56, %v753_v23  ;;  %v329_v18 = vmul.f32 %v741_v17, %v317_v56 }
 0x13f   :  { %v330_v22 = vmul.f32 %v749_v21, %v317_v56  ;;  %v331_v16 = vmul.f32 %v317_v56, %v773_v36  ;;  %v332_v20 = vmul.f32 %v317_v56, %v784_v43  ;;  %v333_v35 = vmul.f32 %v769_v34, %v317_v56 }
 0x140   :  { %v334_v42 = vmul.f32 %v780_v41, %v317_v56  ;;  %v339_v4 = vrot.slane %v312_v57, %v316_v51 }
 0x142   :  { %v341_v32 = vadd.f32 %v339_v4, %v319_v58  ;;  %v342_v5 = vadd.f32 %v339_v4, %v320_v59  ;;  %v343_v40 = vadd.f32 %v339_v4, %v321_v60  ;;  %v344_v6 = vadd.f32 %v339_v4, %v322_v61 }
 0x143   :  { %v345_v19 = vadd.f32 %v339_v4, %v323_v62  ;;  %v346_v7 = vadd.f32 %v339_v4, %v324_v63  ;;  %v347_v23 = vadd.f32 %v339_v4, %v325_v0  ;;  %v348_v8 = vadd.f32 %v339_v4, %v326_v1 }
 0x144   :  { %v349_v17 = vadd.f32 %v339_v4, %v327_v2  ;;  %v350_v9 = vadd.f32 %v339_v4, %v328_v3  ;;  %v351_v21 = vadd.f32 %v339_v4, %v329_v18  ;;  %v352_v10 = vadd.f32 %v339_v4, %v330_v22 }
 0x145   :  { %v353_v36 = vadd.f32 %v339_v4, %v331_v16  ;;  %v354_v11 = vadd.f32 %v339_v4, %v332_v20  ;;  %v355_v43 = vadd.f32 %v339_v4, %v333_v35  ;;  %v356_v12 = vadd.f32 %v339_v4, %v334_v42 }
 0x146   :  { %vm357_vm0 = vcmp.gt.f32.partialorder %v341_v32, 0.0  ;;  %vm358_vm1 = vcmp.gt.f32.partialorder %v342_v5, 0.0  ;;  %vm359_vm2 = vcmp.gt.f32.partialorder %v343_v40, 0.0  ;;  %vm360_vm3 = vcmp.gt.f32.partialorder %v344_v6, 0.0 }
 0x147   :  { %vm361_vm4 = vcmp.gt.f32.partialorder %v345_v19, 0.0  ;;  %vm362_vm5 = vcmp.gt.f32.partialorder %v346_v7, 0.0  ;;  %vm363_vm6 = vcmp.gt.f32.partialorder %v347_v23, 0.0  ;;  %vm364_vm7 = vcmp.gt.f32.partialorder %v348_v8, 0.0 }
 0x148   :  { %vm365_vm8 = vcmp.gt.f32.partialorder %v349_v17, 0.0  ;;  %vm366_vm9 = vcmp.gt.f32.partialorder %v350_v9, 0.0  ;;  %vm367_vm10 = vcmp.gt.f32.partialorder %v351_v21, 0.0  ;;  %vm368_vm11 = vcmp.gt.f32.partialorder %v352_v10, 0.0 }
 0x149   :  { %vm369_vm12 = vcmp.gt.f32.partialorder %v353_v36, 0.0  ;;  %vm370_vm13 = vcmp.gt.f32.partialorder %v354_v11, 0.0  ;;  %vm371_vm14 = vcmp.gt.f32.partialorder %v355_v43, 0.0  ;;  %vm372_vm15 = vcmp.gt.f32.partialorder %v356_v12, 0.0 }
 0x14a   :  { %v373_v34 = vmul.f32 0.2, %v341_v32  ;;  %v374_v41 = vmul.f32 0.2, %v342_v5  ;;  %v375_v13 = vmul.f32 0.2, %v343_v40 }
 0x14b   :  { %v376_v14 = vmul.f32 0.2, %v344_v6  ;;  %v377_v15 = vmul.f32 0.2, %v345_v19  ;;  %v378_v24 = vmul.f32 0.2, %v346_v7 }
 0x14c   :  { %v379_v25 = vmul.f32 0.2, %v347_v23  ;;  %v380_v26 = vmul.f32 0.2, %v348_v8  ;;  %v381_v27 = vmul.f32 0.2, %v349_v17  ;;  %v389_v28 = vsel %vm357_vm0, %v341_v32, %v373_v34 }
 0x14d   :  { %v382_v29 = vmul.f32 0.2, %v350_v9  ;;  %v383_v30 = vmul.f32 0.2, %v351_v21  ;;  %v384_v31 = vmul.f32 0.2, %v352_v10  ;;  %v390_v33 = vsel %vm358_vm1, %v342_v5, %v374_v41 }
 0x14e   :  { %v385_v37 = vmul.f32 0.2, %v353_v36  ;;  %v386_v38 = vmul.f32 0.2, %v354_v11  ;;  %v387_v39 = vmul.f32 0.2, %v355_v43  ;;  %v391_v44 = vsel %vm359_vm2, %v343_v40, %v375_v13 }
 0x14f   :  { %v388_v45 = vmul.f32 0.2, %v356_v12  ;;  %v392_v46 = vsel %vm360_vm3, %v344_v6, %v376_v14  ;;  %v393_v47 = vsel %vm361_vm4, %v345_v19, %v377_v15  ;;  %v394_v48 = vsel %vm362_vm5, %v346_v7, %v378_v24 }
 0x150   :  { %v395_v49 = vsel %vm363_vm6, %v347_v23, %v379_v25  ;;  %v396_v50 = vsel %vm364_vm7, %v348_v8, %v380_v26  ;;  %v397_v51 = vsel %vm365_vm8, %v349_v17, %v381_v27  ;;  %v398_v52 = vsel %vm366_vm9, %v350_v9, %v382_v29 }
 0x151   :  { %v399_v53 = vsel %vm367_vm10, %v351_v21, %v383_v30  ;;  %v400_v54 = vsel %vm368_vm11, %v352_v10, %v384_v31  ;;  %v401_v55 = vsel %vm369_vm12, %v353_v36, %v385_v37  ;;  %v402_v56 = vsel %vm370_vm13, %v354_v11, %v386_v38 }
 0x152   :  { %v403_v57 = vsel %vm371_vm14, %v355_v43, %v387_v39  ;;  %v404_v58 = vsel %vm372_vm15, %v356_v12, %v388_v45  ;;  %v540_v59 = vpack.c.bf16 %v390_v33, %v389_v28  ;;  %v545_v60 = vpack.c.bf16 %v392_v46, %v391_v44 }
 0x153   :  { %v550_v61 = vpack.c.bf16 %v394_v48, %v393_v47  ;;  %v555_v62 = vpack.c.bf16 %v396_v50, %v395_v49  ;;  %v560_v63 = vpack.c.bf16 %v398_v52, %v397_v51  ;;  %v565_v0 = vpack.c.bf16 %v400_v54, %v399_v53 }
 0x154   :  { %541 = vst [vmem:[%s885_s4] sm:$0xff] %v540_v59   ;;  %577 = vst [vmem:[%s885_s4 + $0x8] sm:$0xff] %v545_v60   ;;  %v570_v1 = vpack.c.bf16 %v402_v56, %v401_v55  ;;  %v575_v2 = vpack.c.bf16 %v404_v58, %v403_v57 }
 0x155   :  { %578 = vst [vmem:[%s885_s4 + $0x10] sm:$0xff] %v550_v61   ;;  %579 = vst [vmem:[%s885_s4 + $0x18] sm:$0xff] %v555_v62  }
 0x156   :  { %580 = vst [vmem:[%s885_s4 + $0x20] sm:$0xff] %v560_v63   ;;  %581 = vst [vmem:[%s885_s4 + $0x28] sm:$0xff] %v565_v0  }
 0x157   :  { %582 = vst [vmem:[%s885_s4 + $0x30] sm:$0xff] %v570_v1   ;;  %583 = vst [vmem:[%s885_s4 + $0x38] sm:$0xff] %v575_v2  }

// kernel: _forward.6
= control target key start
LH: loop header
LB: loop body
LE: loop exit
PB: predicated region body
PF: predicated region fallthrough
CT: control target
= control target key end

     0   :  { %v254_v60 = vlaneseq  ;;  %s513_s1 = inlined_call_operand.vmem [shape: bf16[256,128], index: 1, kind: input, shape index: {}]   ;;  %s514_s0 = inlined_call_operand.vmem [shape: bf16[32,256], index: 0, kind: input, shape index: {}]   ;;  %s515_s2 = inlined_call_operand.vmem [shape: f32[1,128], index: 2, kind: input, shape index: {}]   ;;  %s516_s3 = inlined_call_operand.vmem [shape: f32[1,128], index: 3, kind: input, shape index: {}]   ;;  %s517_s4 = inlined_call_operand.vmem [shape: bf16[32,128], index: 4, kind: output, shape index: {}]  }
   0x1   :  { %v392_v0 = vld [vmem:[%s513_s1 + $0x40] sm:$0xff]   ;;  %v394_v2 = vld [vmem:[%s513_s1 + $0x48] sm:$0xff]   ;;  %v396_v4 = vld [vmem:[%s513_s1 + $0x50] sm:$0xff]  }
   0x2   :  { %v393_v1 = vld [vmem:[%s513_s1] sm:$0xff]   ;;  %348 = vmatprep.subr.bf16.mxu0 %v392_v0  ;;  %376 = vmatprep.subr.bf16.mxu1 %v392_v0  ;;  %v395_v3 = vld [vmem:[%s513_s1 + $0x8] sm:$0xff]   ;;  %v397_v5 = vld [vmem:[%s513_s1 + $0x10] sm:$0xff]   ;;  %v255_v61 = vshrl.u32 %v254_v60, 7 }
   0x3   :  { %349 = vmatpush3.bf16.msra.mxu0 %v393_v1  ;;  %384 = vmatpush3.bf16.msra.mxu1 %v393_v1  ;;  %v398_v6 = vld [vmem:[%s513_s1 + $0x58] sm:$0xff]   ;;  %v400_v8 = vld [vmem:[%s513_s1 + $0x60] sm:$0xff]   ;;  %v402_v10 = vld [vmem:[%s513_s1 + $0x68] sm:$0xff]  }
   0x4   :  { %350 = vmatprep.subr.bf16.mxu0 %v394_v2  ;;  %377 = vmatprep.subr.bf16.mxu1 %v394_v2  ;;  %v399_v7 = vld [vmem:[%s513_s1 + $0x18] sm:$0xff]   ;;  %v401_v9 = vld [vmem:[%s513_s1 + $0x20] sm:$0xff]   ;;  %v403_v13 = vld [vmem:[%s513_s1 + $0x28] sm:$0xff]   ;;  %v256_v63 = vsub.s32 0, %v255_v61 }
   0x5   :  { %v410_v11 = vld [vmem:[%s514_s0 + $0x4] ss:$8 sps:$4 sm:$0xff]   ;;  %v413_v12 = vld [vmem:[%s514_s0 + $0x14] ss:$8 sps:$4 sm:$0xff]   ;;  %v408_v18 = vld [vmem:[%s514_s0] ss:$8 sps:$4 sm:$0xff]  }
   0x6   :  { %v404_v14 = vld [vmem:[%s513_s1 + $0x70] sm:$0xff]   ;;  %202 = vmatprep.mubr.bf16.mxu0 %v410_v11  ;;  %210 = vmatprep.mubr.bf16.mxu1 %v413_v12  ;;  %v406_v16 = vld [vmem:[%s513_s1 + $0x78] sm:$0xff]   ;;  %v219_v62 = vld [vmem:[%s515_s2] sm:$0x1] }
   0x7   :  { %351 = vmatpush3.bf16.msra.mxu0 %v395_v3  ;;  %385 = vmatpush3.bf16.msra.mxu1 %v395_v3  ;;  %v405_v15 = vld [vmem:[%s513_s1 + $0x30] sm:$0xff]   ;;  %v407_v17 = vld [vmem:[%s513_s1 + $0x38] sm:$0xff]   ;;  %v220_v2 = vld [vmem:[%s516_s3] sm:$0x1] }
   0x8   :  { %352 = vmatprep.subr.bf16.mxu0 %v396_v4  ;;  %378 = vmatprep.subr.bf16.mxu1 %v396_v4  ;;  %v411_v19 = vld [vmem:[%s514_s0 + $0x10] ss:$8 sps:$4 sm:$0xff]  }
   0xb   :  { %353 = vmatpush3.bf16.msra.mxu0 %v397_v5  ;;  %386 = vmatpush3.bf16.msra.mxu1 %v397_v5 }
   0xc   :  { %354 = vmatprep.subr.bf16.mxu0 %v398_v6  ;;  %379 = vmatprep.subr.bf16.mxu1 %v398_v6 }
   0xf   :  { %355 = vmatpush3.bf16.msra.mxu0 %v399_v7  ;;  %387 = vmatpush3.bf16.msra.mxu1 %v399_v7 }
  0x10   :  { %356 = vmatprep.subr.bf16.mxu0 %v400_v8  ;;  %380 = vmatprep.subr.bf16.mxu1 %v400_v8 }
  0x13   :  { %357 = vmatpush3.bf16.msra.mxu0 %v401_v9  ;;  %388 = vmatpush3.bf16.msra.mxu1 %v401_v9 }
  0x14   :  { %358 = vmatprep.subr.bf16.mxu0 %v402_v10  ;;  %381 = vmatprep.subr.bf16.mxu1 %v402_v10 }
  0x17   :  { %359 = vmatpush3.bf16.msra.mxu0 %v403_v13  ;;  %389 = vmatpush3.bf16.msra.mxu1 %v403_v13 }
  0x18   :  { %360 = vmatprep.subr.bf16.mxu0 %v404_v14  ;;  %382 = vmatprep.subr.bf16.mxu1 %v404_v14 }
  0x1b   :  { %361 = vmatpush3.bf16.msra.mxu0 %v405_v15  ;;  %390 = vmatpush3.bf16.msra.mxu1 %v405_v15 }
  0x1c   :  { %362 = vmatprep.subr.bf16.mxu0 %v406_v16  ;;  %383 = vmatprep.subr.bf16.mxu1 %v406_v16 }
  0x1f   :  { %363 = vmatpush3.bf16.msra.mxu0 %v407_v17  ;;  %391 = vmatpush3.bf16.msra.mxu1 %v407_v17 }
  0x22   :  { %203 = vmatmul.mubr.bf16.vlgmr.msra.gmra.mrb[0].mxu0 %v408_v18  ;;  %211 = vmatmul.mubr.bf16.vlgmr.msra.gmra.mrb[0].mxu1 %v411_v19 }
  0xf5   :  { %v364_v20 = vpop.f32.mrb[0].mxu0  ;;  %v370_v21 = vpop.f32.mrb[0].mxu1 }
  0xf6   :  { %v365_v22 = vpop.f32.mrb[1].mxu0  ;;  %v371_v23 = vpop.f32.mrb[1].mxu1 }
  0xf7   :  { %v366_v24 = vadd.f32 %v365_v22, %v364_v20  ;;  %v367_v25 = vpop.f32.mrb[2].mxu0  ;;  %v372_v26 = vadd.f32 %v371_v23, %v370_v21  ;;  %v373_v27 = vpop.f32.mrb[2].mxu1 }
  0xf8   :  { %v368_v28 = vpop.f32.mrb[3].mxu0  ;;  %v374_v29 = vpop.f32.mrb[3].mxu1 }
  0xf9   :  { %v369_v30 = vadd.f32 %v368_v28, %v367_v25  ;;  %v375_v31 = vadd.f32 %v374_v29, %v373_v27  ;;  %v230_v32 = vmul.f32 %v366_v24, %v366_v24  ;;  %v232_v33 = vmul.f32 %v372_v26, %v372_v26 }
  0xfb   :  { %v221_v34 = vadd.f32 %v369_v30, %v366_v24  ;;  %v231_v35 = vmul.f32 %v369_v30, %v369_v30  ;;  %v233_v39 = vmul.f32 %v375_v31, %v375_v31 }
  0xfd   :  { %v234_v36 = vadd.f32 %v231_v35, %v230_v32  ;;  %v222_v37 = vadd.f32 %v372_v26, %v221_v34 }
  0xff   :  { %v223_v38 = vadd.f32 %v375_v31, %v222_v37  ;;  %v235_v40 = vadd.f32 %v234_v36, %v232_v33 }
 0x101   :  { %v224_v41 = vrot.slane %v223_v38, 4  ;;  %v236_v42 = vadd.f32 %v235_v40, %v233_v39 }
 0x103   :  { %v225_v43 = vadd.f32 %v224_v41, %v223_v38  ;;  %v237_v44 = vrot.slane %v236_v42, 4 }
 0x105   :  { %v226_v45 = vrot.slane %v225_v43, 2  ;;  %v238_v46 = vadd.f32 %v237_v44, %v236_v42 }
 0x107   :  { %v227_v47 = vadd.f32 %v226_v45, %v225_v43  ;;  %v239_v48 = vrot.slane %v238_v46, 2 }
 0x109   :  { %v228_v49 = vrot.slane %v227_v47, 1  ;;  %v240_v50 = vadd.f32 %v239_v48, %v238_v46 }
 0x10b   :  { %v229_v51 = vadd.f32 %v228_v49, %v227_v47  ;;  %v241_v52 = vrot.slane %v240_v50, 1 }
 0x10d   :  { %v242_v53 = vadd.f32 %v241_v52, %v240_v50  ;;  %v243_v54 = vmul.f32 0.03125, %v229_v51 }
 0x10f   :  { %v244_v55 = vmul.f32 0.03125, %v242_v53  ;;  %v245_v56 = vmul.f32 %v243_v54, %v243_v54 }
 0x111   :  { %v246_v57 = vsub.f32 %v244_v55, %v245_v56 }
 0x113   :  { %v247_v58 = vmax.f32 %v246_v57, 0.0 }
 0x115   :  { %v248_v59 = vadd.f32 1e-05, %v247_v58 }
 0x117   :  { %414 = vrsqrt.f32 %v248_v59 }
 0x121   :  { %v415_v0 = vpop.eup %414 }
 0x122   :  { %v250_v1 = vmul.f32 %v415_v0, %v219_v62 }
 0x124   :  { %v251_v3 = vmul.f32 %v250_v1, %v243_v54  ;;  %v257_v4 = vrot.slane %v250_v1, %v256_v63 }
 0x126   :  { %v252_v5 = vsub.f32 %v220_v2, %v251_v3  ;;  %v259_v6 = vmul.f32 %v366_v24, %v257_v4  ;;  %v260_v7 = vmul.f32 %v369_v30, %v257_v4  ;;  %v261_v8 = vmul.f32 %v372_v26, %v257_v4 }
 0x127   :  { %v262_v9 = vmul.f32 %v375_v31, %v257_v4 }
 0x128   :  { %v267_v10 = vrot.slane %v252_v5, %v256_v63 }
 0x12a   :  { %v269_v11 = vadd.f32 %v267_v10, %v259_v6  ;;  %v270_v12 = vadd.f32 %v267_v10, %v260_v7  ;;  %v271_v13 = vadd.f32 %v267_v10, %v261_v8  ;;  %v272_v14 = vadd.f32 %v267_v10, %v262_v9 }
 0x12c   :  { %vm273_vm0 = vcmp.gt.f32.partialorder %v269_v11, 0.0  ;;  %vm274_vm1 = vcmp.gt.f32.partialorder %v270_v12, 0.0  ;;  %vm275_vm2 = vcmp.gt.f32.partialorder %v271_v13, 0.0  ;;  %vm276_vm3 = vcmp.gt.f32.partialorder %v272_v14, 0.0 }
 0x12d   :  { %v277_v15 = vmul.f32 0.2, %v269_v11  ;;  %v278_v16 = vmul.f32 0.2, %v270_v12  ;;  %v279_v17 = vmul.f32 0.2, %v271_v13 }
 0x12e   :  { %v280_v18 = vmul.f32 0.2, %v272_v14 }
 0x12f   :  { %v281_v19 = vsel %vm273_vm0, %v269_v11, %v277_v15  ;;  %v282_v20 = vsel %vm274_vm1, %v270_v12, %v278_v16  ;;  %v283_v21 = vsel %vm275_vm2, %v271_v13, %v279_v17 }
 0x130   :  { %v284_v22 = vsel %vm276_vm3, %v272_v14, %v280_v18  ;;  %v340_v23 = vpack.c.bf16 %v282_v20, %v281_v19 }
 0x131   :  { %v345_v24 = vpack.c.bf16 %v284_v22, %v283_v21 }
 0x132   :  { %341 = vst [vmem:[%s517_s4] sm:$0xff] %v340_v23  }
 0x133   :  { %347 = vst [vmem:[%s517_s4 + $0x8] sm:$0xff] %v345_v24  }

// kernel: _forward.7
= control target key start
LH: loop header
LB: loop body
LE: loop exit
PB: predicated region body
PF: predicated region fallthrough
CT: control target
= control target key end

     0   :  { %v1444_v37 = vmov 0.0   ;;  %vm1445_vm0 = vmmov 0   ;;  %s1832_s1 = inlined_call_operand.vmem [shape: bf16[512,128], index: 1, kind: input, shape index: {}]   ;;  %s1833_s0 = inlined_call_operand.vmem [shape: bf16[16,512], index: 0, kind: input, shape index: {}]   ;;  %s1834_s4 = inlined_call_operand.vmem [shape: bf16[128,128], index: 4, kind: input, shape index: {}]   ;;  %s1835_s6 = inlined_call_operand.vmem [shape: bf16[128,128], index: 6, kind: input, shape index: {}]   ;;  %s1836_s2 = inlined_call_operand.vmem [shape: f32[1,128], index: 2, kind: input, shape index: {}]   ;;  %s1837_s3 = inlined_call_operand.vmem [shape: f32[1,128], index: 3, kind: input, shape index: {}]   ;;  %s1838_s8 = inlined_call_operand.vmem [shape: bf16[128,128], index: 8, kind: input, shape index: {}]   ;;  %s1839_s5 = inlined_call_operand.vmem [shape: f32[1,128], index: 5, kind: input, shape index: {}]   ;;  %s1840_s10 = inlined_call_operand.vmem [shape: bf16[128,128], index: 10, kind: input, shape index: {}]   ;;  %s1841_s7 = inlined_call_operand.vmem [shape: f32[1,128], index: 7, kind: input, shape index: {}]   ;;  %s1842_s12 = inlined_call_operand.vmem [shape: bf16[128,128], index: 12, kind: input, shape index: {}]   ;;  %s1843_s9 = inlined_call_operand.vmem [shape: f32[1,128], index: 9, kind: input, shape index: {}]   ;;  %s1844_s11 = inlined_call_operand.vmem [shape: f32[1,128], index: 11, kind: input, shape index: {}]   ;;  %s1845_s13 = inlined_call_operand.vmem [shape: f32[1,128], index: 13, kind: input, shape index: {}]   ;;  %s1846_s14 = inlined_call_operand.vmem [shape: f32[16,128], index: 14, kind: output, shape index: {}]  }
   0x1   :  { %v1356_v0 = vld [vmem:[%s1832_s1 + $0x40] sm:$0xff]   ;;  %v1360_v4 = vld [vmem:[%s1832_s1 + $0x48] sm:$0xff]   ;;  %v1364_v8 = vld [vmem:[%s1832_s1 + $0x50] sm:$0xff]  }
   0x2   :  { %v1357_v1 = vld [vmem:[%s1832_s1 + $0xc0] sm:$0xff]   ;;  %1165 = vmatprep.subr.bf16.mxu0 %v1356_v0  ;;  %v1361_v5 = vld [vmem:[%s1832_s1 + $0xc8] sm:$0xff]   ;;  %v1365_v9 = vld [vmem:[%s1832_s1 + $0xd0] sm:$0xff]  }
   0x3   :  { %v1358_v2 = vld [vmem:[%s1832_s1] sm:$0xff]   ;;  %1187 = vmatprep.subr.bf16.mxu1 %v1357_v1  ;;  %v1362_v6 = vld [vmem:[%s1832_s1 + $0x8] sm:$0xff]   ;;  %v1366_v10 = vld [vmem:[%s1832_s1 + $0x10] sm:$0xff]  }
   0x4   :  { %v1359_v3 = vld [vmem:[%s1832_s1 + $0x80] sm:$0xff]   ;;  %1166 = vmatpush3.bf16.msra.mxu0 %v1358_v2  ;;  %v1363_v7 = vld [vmem:[%s1832_s1 + $0x88] sm:$0xff]   ;;  %v1367_v11 = vld [vmem:[%s1832_s1 + $0x90] sm:$0xff]  }
   0x5   :  { %1188 = vmatpush3.bf16.msra.mxu1 %v1359_v3  ;;  %1167 = vmatprep.subr.bf16.mxu0 %v1360_v4  ;;  %v1368_v12 = vld [vmem:[%s1832_s1 + $0x58] sm:$0xff]   ;;  %v1372_v16 = vld [vmem:[%s1832_s1 + $0x60] sm:$0xff]   ;;  %v1376_v20 = vld [vmem:[%s1832_s1 + $0x68] sm:$0xff]  }
   0x6   :  { %1189 = vmatprep.subr.bf16.mxu1 %v1361_v5  ;;  %v1369_v13 = vld [vmem:[%s1832_s1 + $0xd8] sm:$0xff]   ;;  %v1373_v17 = vld [vmem:[%s1832_s1 + $0xe0] sm:$0xff]   ;;  %v1377_v21 = vld [vmem:[%s1832_s1 + $0xe8] sm:$0xff]  }
   0x7   :  { %v1370_v14 = vld [vmem:[%s1832_s1 + $0x18] sm:$0xff]   ;;  %v1374_v18 = vld [vmem:[%s1832_s1 + $0x20] sm:$0xff]   ;;  %v1378_v22 = vld [vmem:[%s1832_s1 + $0x28] sm:$0xff]  }
   0x8   :  { %1168 = vmatpush3.bf16.msra.mxu0 %v1362_v6  ;;  %v1371_v15 = vld [vmem:[%s1832_s1 + $0x98] sm:$0xff]   ;;  %v1375_v19 = vld [vmem:[%s1832_s1 + $0xa0] sm:$0xff]   ;;  %v1379_v23 = vld [vmem:[%s1832_s1 + $0xa8] sm:$0xff]  }
   0x9   :  { %1190 = vmatpush3.bf16.msra.mxu1 %v1363_v7  ;;  %1169 = vmatprep.subr.bf16.mxu0 %v1364_v8  ;;  %v1380_v24 = vld [vmem:[%s1832_s1 + $0x70] sm:$0xff]   ;;  %v1384_v28 = vld [vmem:[%s1832_s1 + $0x78] sm:$0xff]   ;;  %v1394_v36 = vld [vmem:[%s1834_s4] sm:$0xff]  }
   0xa   :  { %1191 = vmatprep.subr.bf16.mxu1 %v1365_v9  ;;  %v1381_v25 = vld [vmem:[%s1832_s1 + $0xf0] sm:$0xff]   ;;  %v1385_v29 = vld [vmem:[%s1832_s1 + $0xf8] sm:$0xff]   ;;  %v1395_v38 = vld [vmem:[%s1834_s4 + $0x8] sm:$0xff]  }
   0xb   :  { %v1382_v26 = vld [vmem:[%s1832_s1 + $0x30] sm:$0xff]   ;;  %v1386_v30 = vld [vmem:[%s1832_s1 + $0x38] sm:$0xff]   ;;  %v1398_v41 = vld [vmem:[%s1834_s4 + $0x20] sm:$0xff]  }
   0xc   :  { %1170 = vmatpush3.bf16.msra.mxu0 %v1366_v10  ;;  %v1383_v27 = vld [vmem:[%s1832_s1 + $0xb0] sm:$0xff]   ;;  %v1387_v31 = vld [vmem:[%s1832_s1 + $0xb8] sm:$0xff]   ;;  %v1399_v42 = vld [vmem:[%s1834_s4 + $0x28] sm:$0xff]  }
   0xd   :  { %1192 = vmatpush3.bf16.msra.mxu1 %v1367_v11  ;;  %1171 = vmatprep.subr.bf16.mxu0 %v1368_v12  ;;  %v1388_v32 = vld [vmem:[%s1833_s0] ss:$16 sps:$4 sm:$0xff]   ;;  %v1390_v33 = vld [vmem:[%s1833_s0 + $0x4] ss:$16 sps:$4 sm:$0xff]   ;;  %v1391_v34 = vld [vmem:[%s1833_s0 + $0x8] ss:$16 sps:$4 sm:$0xff]  }
   0xe   :  { %1193 = vmatprep.subr.bf16.mxu1 %v1369_v13  ;;  %v1393_v35 = vld [vmem:[%s1833_s0 + $0xc] ss:$16 sps:$4 sm:$0xff]   ;;  %360 = vmatprep.mubr.bf16.mxu0 %v1390_v33  ;;  %v1396_v39 = vld [vmem:[%s1834_s4 + $0x10] sm:$0xff]   ;;  %v1402_v45 = vld [vmem:[%s1835_s6] sm:$0xff]  }
   0xf   :  { %401 = vmatprep.mubr.bf16.mxu1 %v1393_v35  ;;  %v1397_v40 = vld [vmem:[%s1834_s4 + $0x18] sm:$0xff]   ;;  %v1400_v43 = vld [vmem:[%s1834_s4 + $0x30] sm:$0xff]   ;;  %v1403_v46 = vld [vmem:[%s1835_s6 + $0x8] sm:$0xff]  }
  0x10   :  { %1172 = vmatpush3.bf16.msra.mxu0 %v1370_v14  ;;  %v1401_v44 = vld [vmem:[%s1834_s4 + $0x38] sm:$0xff]   ;;  %v1404_v47 = vld [vmem:[%s1835_s6 + $0x10] sm:$0xff]   ;;  %v1406_v49 = vld [vmem:[%s1835_s6 + $0x20] sm:$0xff]  }
  0x11   :  { %1194 = vmatpush3.bf16.msra.mxu1 %v1371_v15  ;;  %1173 = vmatprep.subr.bf16.mxu0 %v1372_v16  ;;  %v1405_v48 = vld [vmem:[%s1835_s6 + $0x18] sm:$0xff]   ;;  %v1407_v50 = vld [vmem:[%s1835_s6 + $0x28] sm:$0xff]  }
  0x12   :  { %1195 = vmatprep.subr.bf16.mxu1 %v1373_v17 }
  0x14   :  { %1174 = vmatpush3.bf16.msra.mxu0 %v1374_v18 }
  0x15   :  { %1196 = vmatpush3.bf16.msra.mxu1 %v1375_v19  ;;  %1175 = vmatprep.subr.bf16.mxu0 %v1376_v20 }
  0x16   :  { %1197 = vmatprep.subr.bf16.mxu1 %v1377_v21 }
  0x18   :  { %1176 = vmatpush3.bf16.msra.mxu0 %v1378_v22 }
  0x19   :  { %1198 = vmatpush3.bf16.msra.mxu1 %v1379_v23  ;;  %1177 = vmatprep.subr.bf16.mxu0 %v1380_v24  ;;  %v439_v23 = vlaneseq }
  0x1a   :  { %1199 = vmatprep.subr.bf16.mxu1 %v1381_v25  ;;  %v410_v25 = vld [vmem:[%s1836_s2] sm:$0x1] }
  0x1b   :  { %v440_v24 = vshrl.u32 %v439_v23, 7 }
  0x1c   :  { %1178 = vmatpush3.bf16.msra.mxu0 %v1382_v26 }
  0x1d   :  { %1200 = vmatpush3.bf16.msra.mxu1 %v1383_v27  ;;  %1179 = vmatprep.subr.bf16.mxu0 %v1384_v28  ;;  %v441_v26 = vsub.s32 0, %v440_v24  ;;  %v1427_v24 = vld [vmem:[%s1842_s12 + $0x8] sm:$0xff]  }
  0x1e   :  { %1201 = vmatprep.subr.bf16.mxu1 %v1385_v29  ;;  %v411_v29 = vld [vmem:[%s1837_s3] sm:$0x1] }
  0x20   :  { %1180 = vmatpush3.bf16.msra.mxu0 %v1386_v30 }
  0x21   :  { %1202 = vmatpush3.bf16.msra.mxu1 %v1387_v31  ;;  %1254 = vmatprep.subr.bf16.mxu0 %v1444_v37 }
  0x22   :  { %1274 = vmatprep.subr.bf16.mxu1 %v1444_v37 }
  0x23   :  { %361 = vmatmul.mubr.bf16.vlgmr.msra.gmra.mrb[0].mxu0 %v1388_v32 }
  0x24   :  { %402 = vmatmul.mubr.bf16.vlgmr.msra.gmra.mrb[0].mxu1 %v1391_v34  ;;  %1255 = vmatpush3.bf16.msra.mxu0 %v1394_v36 }
  0x25   :  { %1256 = vmatprep.subr.bf16.mxu0 %v1444_v37  ;;  %1270 = vmatprep.mubr.msk.bf16.mxu0 %vm1445_vm0, %v1444_v37 }
  0x26   :  { %1290 = vmatprep.mubr.msk.bf16.mxu1 %vm1445_vm0, %v1444_v37  ;;  %1275 = vmatpush3.bf16.msra.mxu1 %v1402_v45  ;;  %v1409_v45 = vld [vmem:[%s1835_s6 + $0x38] sm:$0xff]  }
  0x27   :  { %1276 = vmatprep.subr.bf16.mxu1 %v1444_v37 }
  0x28   :  { %1257 = vmatpush3.bf16.msra.mxu0 %v1395_v38 }
  0x29   :  { %1258 = vmatprep.subr.bf16.mxu0 %v1444_v37 }
  0x2a   :  { %1277 = vmatpush3.bf16.msra.mxu1 %v1403_v46  ;;  %v1410_v46 = vld [vmem:[%s1838_s8] sm:$0xff]  }
  0x2b   :  { %1278 = vmatprep.subr.bf16.mxu1 %v1444_v37 }
  0x2c   :  { %1259 = vmatpush3.bf16.msra.mxu0 %v1396_v39 }
  0x2d   :  { %1260 = vmatprep.subr.bf16.mxu0 %v1444_v37 }
  0x2e   :  { %1279 = vmatpush3.bf16.msra.mxu1 %v1404_v47  ;;  %v1411_v47 = vld [vmem:[%s1838_s8 + $0x8] sm:$0xff]  }
  0x2f   :  { %1280 = vmatprep.subr.bf16.mxu1 %v1444_v37 }
  0x30   :  { %1261 = vmatpush3.bf16.msra.mxu0 %v1397_v40 }
  0x31   :  { %1262 = vmatprep.subr.bf16.mxu0 %v1444_v37 }
  0x32   :  { %1281 = vmatpush3.bf16.msra.mxu1 %v1405_v48  ;;  %v1412_v48 = vld [vmem:[%s1838_s8 + $0x10] sm:$0xff]  }
  0x33   :  { %1282 = vmatprep.subr.bf16.mxu1 %v1444_v37 }
  0x34   :  { %1263 = vmatpush3.bf16.msra.mxu0 %v1398_v41 }
  0x35   :  { %1264 = vmatprep.subr.bf16.mxu0 %v1444_v37 }
  0x36   :  { %1283 = vmatpush3.bf16.msra.mxu1 %v1406_v49  ;;  %v1413_v49 = vld [vmem:[%s1838_s8 + $0x18] sm:$0xff]  }
  0x37   :  { %1284 = vmatprep.subr.bf16.mxu1 %v1444_v37 }
  0x38   :  { %1265 = vmatpush3.bf16.msra.mxu0 %v1399_v42 }
  0x39   :  { %1266 = vmatprep.subr.bf16.mxu0 %v1444_v37 }
  0x3a   :  { %1285 = vmatpush3.bf16.msra.mxu1 %v1407_v50  ;;  %v1414_v50 = vld [vmem:[%s1838_s8 + $0x20] sm:$0xff]  }
  0x3b   :  { %1286 = vmatprep.subr.bf16.mxu1 %v1444_v37 }
  0x3c   :  { %1267 = vmatpush3.bf16.msra.mxu0 %v1400_v43 }
  0x3d   :  { %1268 = vmatprep.subr.bf16.mxu0 %v1444_v37 }
  0x40   :  { %1269 = vmatpush3.bf16.msra.mxu0 %v1401_v44  ;;  %v1408_v44 = vld [vmem:[%s1835_s6 + $0x30] sm:$0xff]  }
  0x41   :  { %1294 = vmatprep.subr.bf16.mxu0 %v1444_v37  ;;  %1287 = vmatpush3.bf16.msra.mxu1 %v1408_v44  ;;  %v1147_v44 = vld [vmem:[%s1844_s11] ss:$0 sm:$0xff] }
  0x42   :  { %1288 = vmatprep.subr.bf16.mxu1 %v1444_v37 }
  0x45   :  { %1289 = vmatpush3.bf16.msra.mxu1 %v1409_v45 }
  0x46   :  { %1314 = vmatprep.subr.bf16.mxu1 %v1444_v37 }
  0xf6   :  { %v1181_v51 = vpop.f32.mrb[0].mxu0 }
  0xf7   :  { %v1203_v52 = vpop.f32.mrb[0].mxu1  ;;  %v1182_v53 = vpop.f32.mrb[1].mxu0 }
  0xf8   :  { %v1183_v54 = vadd.f32 %v1182_v53, %v1181_v51  ;;  %v1204_v55 = vpop.f32.mrb[1].mxu1  ;;  %v1184_v56 = vpop.f32.mrb[2].mxu0  ;;  %v1415_v51 = vld [vmem:[%s1838_s8 + $0x28] sm:$0xff]  }
  0xf9   :  { %v1205_v57 = vadd.f32 %v1204_v55, %v1203_v52  ;;  %v1206_v58 = vpop.f32.mrb[2].mxu1  ;;  %v1185_v59 = vpop.f32.mrb[3].mxu0  ;;  %v1120_v52 = vld [vmem:[%s1839_s5] ss:$0 sm:$0xff] }
  0xfa   :  { %v1186_v60 = vadd.f32 %v1185_v59, %v1184_v56  ;;  %v1207_v61 = vpop.f32.mrb[3].mxu1 }
  0xfb   :  { %v404_v62 = vadd.f32 %v1205_v57, %v1183_v54  ;;  %v1208_v63 = vadd.f32 %v1207_v61, %v1206_v58 }
  0xfd   :  { %v407_v0 = vadd.f32 %v1208_v63, %v1186_v60  ;;  %v419_v1 = vmul.f32 %v404_v62, %v404_v62 }
  0xff   :  { %v412_v2 = vadd.f32 %v407_v0, %v404_v62  ;;  %v420_v3 = vmul.f32 %v407_v0, %v407_v0 }
 0x101   :  { %v413_v4 = vrot.slane %v412_v2, 4  ;;  %v421_v5 = vadd.f32 %v420_v3, %v419_v1  ;;  %v1417_v1 = vld [vmem:[%s1838_s8 + $0x38] sm:$0xff]   ;;  %v1419_v3 = vld [vmem:[%s1840_s10 + $0x8] sm:$0xff]  }
 0x103   :  { %v414_v6 = vadd.f32 %v413_v4, %v412_v2  ;;  %v422_v7 = vrot.slane %v421_v5, 4  ;;  %v1418_v2 = vld [vmem:[%s1840_s10] sm:$0xff]   ;;  %v1420_v4 = vld [vmem:[%s1840_s10 + $0x10] sm:$0xff]  }
 0x105   :  { %v415_v8 = vrot.slane %v414_v6, 2  ;;  %v423_v9 = vadd.f32 %v422_v7, %v421_v5  ;;  %v1421_v5 = vld [vmem:[%s1840_s10 + $0x18] sm:$0xff]   ;;  %v1423_v7 = vld [vmem:[%s1840_s10 + $0x28] sm:$0xff]  }
 0x107   :  { %v416_v10 = vadd.f32 %v415_v8, %v414_v6  ;;  %v424_v11 = vrot.slane %v423_v9, 2  ;;  %v1422_v6 = vld [vmem:[%s1840_s10 + $0x20] sm:$0xff]  }
 0x108   :  { %v1129_v8 = vld [vmem:[%s1841_s7] ss:$0 sm:$0xff] }
 0x109   :  { %v417_v12 = vrot.slane %v416_v10, 1  ;;  %v425_v13 = vadd.f32 %v424_v11, %v423_v9 }
 0x10b   :  { %v418_v14 = vadd.f32 %v417_v12, %v416_v10  ;;  %v426_v15 = vrot.slane %v425_v13, 1 }
 0x10d   :  { %v427_v16 = vadd.f32 %v426_v15, %v425_v13  ;;  %v428_v17 = vmul.f32 0.5, %v418_v14 }
 0x10f   :  { %v429_v18 = vmul.f32 0.5, %v427_v16  ;;  %v430_v19 = vmul.f32 %v428_v17, %v428_v17 }
 0x111   :  { %v431_v20 = vsub.f32 %v429_v18, %v430_v19 }
 0x113   :  { %v432_v21 = vmax.f32 %v431_v20, 0.0  ;;  %v1424_v20 = vld [vmem:[%s1840_s10 + $0x30] sm:$0xff]  }
 0x115   :  { %v433_v22 = vadd.f32 1e-05, %v432_v21  ;;  %v1425_v21 = vld [vmem:[%s1840_s10 + $0x38] sm:$0xff]  }
 0x117   :  { %1434 = vrsqrt.f32 %v433_v22  ;;  %v1426_v22 = vld [vmem:[%s1842_s12] sm:$0xff]  }
 0x121   :  { %v1435_v27 = vpop.eup %1434 }
 0x122   :  { %v435_v28 = vmul.f32 %v1435_v27, %v410_v25  ;;  %v1428_v25 = vld [vmem:[%s1842_s12 + $0x10] sm:$0xff]   ;;  %v1430_v27 = vld [vmem:[%s1842_s12 + $0x20] sm:$0xff]  }
 0x124   :  { %v436_v30 = vmul.f32 %v435_v28, %v428_v17  ;;  %v442_v31 = vrot.slane %v435_v28, %v441_v26  ;;  %v1431_v28 = vld [vmem:[%s1842_s12 + $0x28] sm:$0xff]  }
 0x126   :  { %v437_v32 = vsub.f32 %v411_v29, %v436_v30  ;;  %v444_v33 = vmul.f32 %v442_v31, %v404_v62  ;;  %v445_v34 = vmul.f32 %v442_v31, %v407_v0  ;;  %v1416_v0 = vld [vmem:[%s1838_s8 + $0x30] sm:$0xff]   ;;  %v1138_v29 = vld [vmem:[%s1843_s9] ss:$0 sm:$0xff] }
 0x128   :  { %v450_v35 = vrot.slane %v437_v32, %v441_v26  ;;  %v1429_v26 = vld [vmem:[%s1842_s12 + $0x18] sm:$0xff]  }
 0x12a   :  { %v453_v36 = vadd.f32 %v450_v35, %v445_v34  ;;  %v452_v38 = vadd.f32 %v450_v35, %v444_v33 }
 0x12c   :  { %vm454_vm1 = vcmp.gt.f32.partialorder %v452_v38, 0.0  ;;  %vm455_vm2 = vcmp.gt.f32.partialorder %v453_v36, 0.0  ;;  %v456_v39 = vmul.f32 0.2, %v452_v38  ;;  %v457_v40 = vmul.f32 0.2, %v453_v36 }
 0x12e   :  { %v458_v41 = vsel %vm454_vm1, %v452_v38, %v456_v39  ;;  %v459_v42 = vsel %vm455_vm2, %v453_v36, %v457_v40 }
 0x12f   :  { %v460_v43 = vpack.c.bf16 %v459_v42, %v458_v41  ;;  %v1432_v42 = vld [vmem:[%s1842_s12 + $0x30] sm:$0xff]  }
 0x131   :  { %1271 = vmatmul.mubr.bf16.vlgmr.msra.gmra.mrb[4].mxu0 %v460_v43  ;;  %v1433_v43 = vld [vmem:[%s1842_s12 + $0x38] sm:$0xff]  }
 0x132   :  { %1310 = vmatprep.mubr.msk.bf16.mxu0 %vm1445_vm0, %v1444_v37  ;;  %1295 = vmatpush3.bf16.msra.mxu0 %v1410_v46 }
 0x133   :  { %1296 = vmatprep.subr.bf16.mxu0 %v1444_v37 }
 0x136   :  { %1297 = vmatpush3.bf16.msra.mxu0 %v1411_v47 }
 0x137   :  { %1298 = vmatprep.subr.bf16.mxu0 %v1444_v37 }
 0x13a   :  { %1299 = vmatpush3.bf16.msra.mxu0 %v1412_v48 }
 0x13b   :  { %1300 = vmatprep.subr.bf16.mxu0 %v1444_v37 }
 0x13e   :  { %1301 = vmatpush3.bf16.msra.mxu0 %v1413_v49 }
 0x13f   :  { %1302 = vmatprep.subr.bf16.mxu0 %v1444_v37 }
 0x142   :  { %1303 = vmatpush3.bf16.msra.mxu0 %v1414_v50 }
 0x143   :  { %1304 = vmatprep.subr.bf16.mxu0 %v1444_v37 }
 0x146   :  { %1305 = vmatpush3.bf16.msra.mxu0 %v1415_v51 }
 0x147   :  { %1306 = vmatprep.subr.bf16.mxu0 %v1444_v37 }
 0x14a   :  { %1307 = vmatpush3.bf16.msra.mxu0 %v1416_v0 }
 0x14b   :  { %1308 = vmatprep.subr.bf16.mxu0 %v1444_v37 }
 0x14e   :  { %1309 = vmatpush3.bf16.msra.mxu0 %v1417_v1 }
 0x14f   :  { %1334 = vmatprep.subr.bf16.mxu0 %v1444_v37 }
 0x204   :  { %v566_v53 = vpop.f32.mrb[4].mxu0 }
 0x205   :  { %v567_v54 = vadd.f32 %v1120_v52, %v566_v53  ;;  %v1272_v55 = vpop.f32.mrb[5].mxu0 }
 0x206   :  { %v569_v56 = vpop.f32.mrb[6].mxu0  ;;  %v1050_v55 = vand.u32 127, %v439_v23 }
 0x207   :  { %v575_v57 = vmul.f32 0.2, %v567_v54  ;;  %v570_v58 = vadd.f32 %v1120_v52, %v569_v56  ;;  %v1273_v59 = vpop.f32.mrb[7].mxu0  ;;  %vm573_vm3 = vcmp.gt.f32.partialorder %v567_v54, 0.0  ;;  %v1156_v56 = vld [vmem:[%s1845_s13] ss:$0 sm:$0xff] }
 0x208   :  { %vm1051_vm11 = vcmp.lt.s32.totalorder %v1050_v55, 10 }
 0x209   :  { %vm574_vm4 = vcmp.gt.f32.partialorder %v570_v58, 0.0  ;;  %v576_v60 = vmul.f32 0.2, %v570_v58  ;;  %v577_v61 = vsel %vm573_vm3, %v567_v54, %v575_v57 }
 0x20b   :  { %v578_v62 = vsel %vm574_vm4, %v570_v58, %v576_v60 }
 0x20c   :  { %v579_v63 = vpack.c.bf16 %v578_v62, %v577_v61 }
 0x20e   :  { %1291 = vmatmul.mubr.bf16.vlgmr.msra.gmra.mrb[4].mxu1 %v579_v63 }
 0x20f   :  { %1330 = vmatprep.mubr.msk.bf16.mxu1 %vm1445_vm0, %v1444_v37  ;;  %1315 = vmatpush3.bf16.msra.mxu1 %v1418_v2 }
 0x210   :  { %1316 = vmatprep.subr.bf16.mxu1 %v1444_v37 }
 0x213   :  { %1317 = vmatpush3.bf16.msra.mxu1 %v1419_v3 }
 0x214   :  { %1318 = vmatprep.subr.bf16.mxu1 %v1444_v37 }
 0x217   :  { %1319 = vmatpush3.bf16.msra.mxu1 %v1420_v4 }
 0x218   :  { %1320 = vmatprep.subr.bf16.mxu1 %v1444_v37 }
 0x21b   :  { %1321 = vmatpush3.bf16.msra.mxu1 %v1421_v5 }
 0x21c   :  { %1322 = vmatprep.subr.bf16.mxu1 %v1444_v37 }
 0x21f   :  { %1323 = vmatpush3.bf16.msra.mxu1 %v1422_v6 }
 0x220   :  { %1324 = vmatprep.subr.bf16.mxu1 %v1444_v37 }
 0x223   :  { %1325 = vmatpush3.bf16.msra.mxu1 %v1423_v7 }
 0x224   :  { %1326 = vmatprep.subr.bf16.mxu1 %v1444_v37 }
 0x227   :  { %1327 = vmatpush3.bf16.msra.mxu1 %v1424_v20 }
 0x228   :  { %1328 = vmatprep.subr.bf16.mxu1 %v1444_v37 }
 0x22b   :  { %1329 = vmatpush3.bf16.msra.mxu1 %v1425_v21 }
 0x2e1   :  { %v685_v9 = vpop.f32.mrb[4].mxu1 }
 0x2e2   :  { %v686_v10 = vadd.f32 %v1129_v8, %v685_v9  ;;  %v1292_v11 = vpop.f32.mrb[5].mxu1 }
 0x2e3   :  { %v688_v12 = vpop.f32.mrb[6].mxu1 }
 0x2e4   :  { %v694_v13 = vmul.f32 0.2, %v686_v10  ;;  %v689_v14 = vadd.f32 %v1129_v8, %v688_v12  ;;  %v1293_v15 = vpop.f32.mrb[7].mxu1  ;;  %vm692_vm5 = vcmp.gt.f32.partialorder %v686_v10, 0.0 }
 0x2e6   :  { %vm693_vm6 = vcmp.gt.f32.partialorder %v689_v14, 0.0  ;;  %v695_v16 = vmul.f32 0.2, %v689_v14  ;;  %v696_v17 = vsel %vm692_vm5, %v686_v10, %v694_v13 }
 0x2e8   :  { %v697_v18 = vsel %vm693_vm6, %v689_v14, %v695_v16 }
 0x2e9   :  { %v698_v19 = vpack.c.bf16 %v697_v18, %v696_v17 }
 0x2eb   :  { %1311 = vmatmul.mubr.bf16.vlgmr.msra.gmra.mrb[8].mxu0 %v698_v19 }
 0x2ec   :  { %1350 = vmatprep.mubr.msk.bf16.mxu0 %vm1445_vm0, %v1444_v37  ;;  %1335 = vmatpush3.bf16.msra.mxu0 %v1426_v22 }
 0x2ed   :  { %1336 = vmatprep.subr.bf16.mxu0 %v1444_v37 }
 0x2f0   :  { %1337 = vmatpush3.bf16.msra.mxu0 %v1427_v24 }
 0x2f1   :  { %1338 = vmatprep.subr.bf16.mxu0 %v1444_v37 }
 0x2f4   :  { %1339 = vmatpush3.bf16.msra.mxu0 %v1428_v25 }
 0x2f5   :  { %1340 = vmatprep.subr.bf16.mxu0 %v1444_v37 }
 0x2f8   :  { %1341 = vmatpush3.bf16.msra.mxu0 %v1429_v26 }
 0x2f9   :  { %1342 = vmatprep.subr.bf16.mxu0 %v1444_v37 }
 0x2fc   :  { %1343 = vmatpush3.bf16.msra.mxu0 %v1430_v27 }
 0x2fd   :  { %1344 = vmatprep.subr.bf16.mxu0 %v1444_v37 }
 0x300   :  { %1345 = vmatpush3.bf16.msra.mxu0 %v1431_v28 }
 0x301   :  { %1346 = vmatprep.subr.bf16.mxu0 %v1444_v37 }
 0x304   :  { %1347 = vmatpush3.bf16.msra.mxu0 %v1432_v42 }
 0x305   :  { %1348 = vmatprep.subr.bf16.mxu0 %v1444_v37 }
 0x308   :  { %1349 = vmatpush3.bf16.msra.mxu0 %v1433_v43 }
 0x3be   :  { %v804_v30 = vpop.f32.mrb[8].mxu0 }
 0x3bf   :  { %v805_v31 = vadd.f32 %v1138_v29, %v804_v30  ;;  %v1312_v32 = vpop.f32.mrb[9].mxu0 }
 0x3c0   :  { %v807_v33 = vpop.f32.mrb[10].mxu0 }
 0x3c1   :  { %v813_v34 = vmul.f32 0.2, %v805_v31  ;;  %v808_v35 = vadd.f32 %v1138_v29, %v807_v33  ;;  %v1313_v36 = vpop.f32.mrb[11].mxu0  ;;  %vm811_vm7 = vcmp.gt.f32.partialorder %v805_v31, 0.0 }
 0x3c3   :  { %vm812_vm8 = vcmp.gt.f32.partialorder %v808_v35, 0.0  ;;  %v814_v38 = vmul.f32 0.2, %v808_v35  ;;  %v815_v39 = vsel %vm811_vm7, %v805_v31, %v813_v34 }
 0x3c5   :  { %v816_v40 = vsel %vm812_vm8, %v808_v35, %v814_v38 }
 0x3c6   :  { %v817_v41 = vpack.c.bf16 %v816_v40, %v815_v39 }
 0x3c8   :  { %1331 = vmatmul.mubr.bf16.vlgmr.msra.gmra.mrb[8].mxu1 %v817_v41 }
 0x49b   :  { %v923_v45 = vpop.f32.mrb[8].mxu1 }
 0x49c   :  { %v924_v46 = vadd.f32 %v1147_v44, %v923_v45  ;;  %v1332_v47 = vpop.f32.mrb[9].mxu1 }
 0x49d   :  { %v926_v48 = vpop.f32.mrb[10].mxu1 }
 0x49e   :  { %v932_v49 = vmul.f32 0.2, %v924_v46  ;;  %v927_v50 = vadd.f32 %v1147_v44, %v926_v48  ;;  %v1333_v51 = vpop.f32.mrb[11].mxu1  ;;  %vm930_vm9 = vcmp.gt.f32.partialorder %v924_v46, 0.0 }
 0x4a0   :  { %vm931_vm10 = vcmp.gt.f32.partialorder %v927_v50, 0.0  ;;  %v933_v52 = vmul.f32 0.2, %v927_v50  ;;  %v934_v37 = vsel %vm930_vm9, %v924_v46, %v932_v49 }
 0x4a2   :  { %v935_v53 = vsel %vm931_vm10, %v927_v50, %v933_v52 }
 0x4a3   :  { %v936_v54 = vpack.c.bf16 %v935_v53, %v934_v37 }
 0x4a5   :  { %1351 = vmatmul.mubr.bf16.vlgmr.msra.gmra.mrb[12].mxu0 %v936_v54 }
 0x578   :  { %v1042_v57 = vpop.f32.mrb[12].mxu0 }
 0x579   :  { %v1043_v58 = vadd.f32 %v1156_v56, %v1042_v57  ;;  %v1352_v59 = vpop.f32.mrb[13].mxu0 }
 0x57a   :  { %v1045_v60 = vpop.f32.mrb[14].mxu0 }
 0x57b   :  { %v1046_v61 = vadd.f32 %v1156_v56, %v1045_v60  ;;  %v1353_v62 = vpop.f32.mrb[15].mxu0  ;;  %v1052_v63 = vsel %vm1051_vm11, %v1043_v58, -1e+30 }
 0x57c   :  { %1054 = vmax.xlane.f32.xlu0 %v1052_v63 }
 0x57d   :  { %v1053_v0 = vsel %vm1051_vm11, %v1046_v61, -1e+30 }
 0x580   :  { %1056 = vmax.xlane.f32.xlu0 %v1053_v0 }
 0x609   :  { %v1055_v1 = vpop.xlane.xlu0 %1054 }
 0x60a   :  { %v1058_v2 = vsub.f32 %v1052_v63, %v1055_v1 }
 0x60c   :  { %v1060_v23 = vmul.f32 1.442695, %v1058_v2 }
 0x60d   :  { %v1057_v3 = vpop.xlane.xlu0 %1056 }
 0x60e   :  { %1436 = vpow2.f32 %v1060_v23  ;;  %v1059_v4 = vsub.f32 %v1053_v0, %v1057_v3 }
 0x610   :  { %v1062_v5 = vmul.f32 1.442695, %v1059_v4 }
 0x612   :  { %1438 = vpow2.f32 %v1062_v5 }
 0x618   :  { %v1437_v6 = vpop.eup %1436 }
 0x619   :  { %v1064_v7 = vsel %vm1051_vm11, %v1437_v6, 0.0 }
 0x61a   :  { %1066 = vadd.xlane.f32.xlu1 %v1064_v7 }
 0x61c   :  { %v1439_v8 = vpop.eup %1438 }
 0x61d   :  { %v1065_v9 = vsel %vm1051_vm11, %v1439_v8, 0.0 }
 0x61e   :  { %1068 = vadd.xlane.f32.xlu1 %v1065_v9 }
 0x6a7   :  { %v1067_v10 = vpop.xlane.xlu1 %1066 }
 0x6a8   :  { %1440 = vlog2.f32 %v1067_v10 }
 0x6ab   :  { %v1069_v11 = vpop.xlane.xlu1 %1068 }
 0x6ac   :  { %1442 = vlog2.f32 %v1069_v11 }
 0x6b2   :  { %v1441_v12 = vpop.eup %1440 }
 0x6b3   :  { %v1071_v13 = vmul.f32 0.6931472, %v1441_v12 }
 0x6b5   :  { %v1074_v14 = vadd.f32 %v1071_v13, %v1055_v1 }
 0x6b6   :  { %v1443_v15 = vpop.eup %1442 }
 0x6b7   :  { %v1076_v16 = vsub.f32 %v1043_v58, %v1074_v14  ;;  %v1073_v17 = vmul.f32 0.6931472, %v1443_v15 }
 0x6b9   :  { %1078 = vst [vmem:[%s1846_s14] sm:$0xff] %v1076_v16  ;;  %v1075_v18 = vadd.f32 %v1073_v17, %v1057_v3 }
 0x6bb   :  { %v1077_v19 = vsub.f32 %v1046_v61, %v1075_v18 }
 0x6bd   :  { %1079 = vst [vmem:[%s1846_s14 + $0x8] sm:$0xff] %v1077_v19 }

</bundles_post_ra>
